<compile_context>
chip_gen: v6e
topology: v6e:2x2x1
jax: 0.10.0
libtpu: 0.0.40
codegen_flags: <defaults>
</compile_context>

<pallas_src>
import math
from functools import partial

import jax
import jax.numpy as jnp
from jax import lax
from jax.experimental import pallas as pl
from jax.experimental.pallas import tpu as pltpu

LN_EPS = 1e-5
MASK_FILL = -1e10  # matches masked_fill(mask == 0, -10000000000.0)


# ---------------------------------------------------------------------------
# Kernel factories
# ---------------------------------------------------------------------------
def make_attention_block_kernel(d_model, n_heads, seq_q, seq_kv, batch_block,
                                compute_dtype, has_mask, approx_recip):
    """Fused: QKV projection -> scores -> (mask) -> softmax -> context ->
    output projection -> residual add (vs. the q input) -> LayerNorm.
    Also emits the (H, Sq, Skv) attention map.  Dropout == identity."""
    per_head = d_model // n_heads
    inv_scale = 1.0 / math.sqrt(d_model)  # module scales by sqrt(d_model), NOT per-head

    def kernel(*refs):
        if has_mask:
            (q_ref, k_ref, v_ref, mask_ref, wqkv_ref, wp_ref, bp_ref,
             gamma_ref, beta_ref, out_ref, attn_ref) = refs
        else:
            (q_ref, k_ref, v_ref, wqkv_ref, wp_ref, bp_ref,
             gamma_ref, beta_ref, out_ref, attn_ref) = refs
            mask_ref = None

        # Weights arrive pre-transposed ((in, out) layout) and QKV pre-stacked.
        wq = wqkv_ref[0].astype(compute_dtype)   # (D, D)
        wk = wqkv_ref[1].astype(compute_dtype)
        wv = wqkv_ref[2].astype(compute_dtype)
        wp = wp_ref[...].astype(compute_dtype)   # (D, D)
        bp = bp_ref[...]                         # (1, D), f32
        gamma = gamma_ref[...]                   # (1, D), f32
        beta = beta_ref[...]                     # (1, D), f32

        # Static unroll over the batch elements in this block (amortizes the
        # ~0.35us per-grid-step overhead for tiny shapes).
        for b in range(batch_block):
            x_res = q_ref[b]                      # (Sq, D) residual path, f32
            xq = x_res.astype(compute_dtype)
            xk = k_ref[b].astype(compute_dtype)
            xv = v_ref[b].astype(compute_dtype)

            Q = jnp.dot(xq, wq, preferred_element_type=jnp.float32)   # (Sq, D)
            K = jnp.dot(xk, wk, preferred_element_type=jnp.float32)   # (Skv, D)
            V = jnp.dot(xv, wv, preferred_element_type=jnp.float32)   # (Skv, D)

            # Head-major layout (H, S, per_head): single relayout per tensor.
            Qh = jnp.swapaxes(Q.reshape(seq_q, n_heads, per_head), 0, 1)
            Kh = jnp.swapaxes(K.reshape(seq_kv, n_heads, per_head), 0, 1)
            Vh = jnp.swapaxes(V.reshape(seq_kv, n_heads, per_head), 0, 1)

            s = jnp.einsum("hqd,hkd->hqk",
                           Qh.astype(compute_dtype), Kh.astype(compute_dtype),
                           preferred_element_type=jnp.float32) * inv_scale

            if has_mask:
                m = mask_ref[b]                                     # (Sq, Skv) f32 {0,1}
                keep = jnp.broadcast_to(m[None, :, :] > 0.0, s.shape)
                s = jnp.where(keep, s, MASK_FILL)

            # Softmax in f32.
            s_max = jnp.max(s, axis=-1, keepdims=True)
            e = jnp.exp(s - s_max)
            denom = jnp.sum(e, axis=-1, keepdims=True)
            p = e * pl.reciprocal(denom, approx=approx_recip)        # (H, Sq, Skv)

            attn_ref[b] = p.astype(attn_ref.dtype)

            ctx = jnp.einsum("hqk,hkd->hqd",
                             p.astype(compute_dtype), Vh.astype(compute_dtype),
                             preferred_element_type=jnp.float32)     # (H, Sq, ph)
            ctx = jnp.swapaxes(ctx, 0, 1).reshape(seq_q, d_model)    # (Sq, D)

            proj = jnp.dot(ctx.astype(compute_dtype), wp,
                           preferred_element_type=jnp.float32) + bp  # (Sq, D)

            # Residual + LayerNorm fused in (dropout = identity, inference).
            y = x_res.astype(jnp.float32) + proj
            mu = jnp.mean(y, axis=-1, keepdims=True)
            yc = y - mu
            var = jnp.mean(yc * yc, axis=-1, keepdims=True)
            out = yc * lax.rsqrt(var + LN_EPS) * gamma + beta
            out_ref[b] = out.astype(out_ref.dtype)

    return kernel


def make_ffn_block_kernel(batch_block, compute_dtype):
    """Fused: fc2(relu(fc1(x))) -> residual add -> LayerNorm."""
    def kernel(x_ref, w1_ref, b1_ref, w2_ref, b2_ref, gamma_ref, beta_ref, out_ref):
        w1 = w1_ref[...].astype(compute_dtype)   # (D, Dh)
        w2 = w2_ref[...].astype(compute_dtype)   # (Dh, D)
        b1 = b1_ref[...]                         # (1, Dh), f32
        b2 = b2_ref[...]                         # (1, D), f32
        gamma = gamma_ref[...]
        beta = beta_ref[...]
        for b in range(batch_block):
            x = x_ref[b]                         # (S, D), f32
            h = jnp.dot(x.astype(compute_dtype), w1,
                        preferred_element_type=jnp.float32) + b1
            h = jnp.maximum(h, 0.0)
            y = jnp.dot(h.astype(compute_dtype), w2,
                        preferred_element_type=jnp.float32) + b2
            z = x.astype(jnp.float32) + y
            mu = jnp.mean(z, axis=-1, keepdims=True)
            zc = z - mu
            var = jnp.mean(zc * zc, axis=-1, keepdims=True)
            out = zc * lax.rsqrt(var + LN_EPS) * gamma + beta
            out_ref[b] = out.astype(out_ref.dtype)
    return kernel


def make_linear_kernel(batch_block, compute_dtype):
    """Generator head: y = x @ W + b."""
    def kernel(x_ref, w_ref, b_ref, out_ref):
        w = w_ref[...].astype(compute_dtype)     # (D, V)
        b = b_ref[...]                           # (1, V), f32
        for i in range(batch_block):
            y = jnp.dot(x_ref[i].astype(compute_dtype), w,
                        preferred_element_type=jnp.float32) + b
            out_ref[i] = y.astype(out_ref.dtype)
    return kernel


# ---------------------------------------------------------------------------
# Pallas-call wrappers
# ---------------------------------------------------------------------------
def _batch_block(B):
    return B if B <= 8 else 1


def attention_block_pallas(x_q, x_kv, mask, p, *, n_heads, compute_dtype, approx_recip):
    """x_q: (B, Sq, D); x_kv: (B, Skv, D); mask: (B, Sq, Skv) f32 {0,1} or None.
    Returns (LayerNorm(x_q + attn_out) (B, Sq, D), attention_map (B, H, Sq, Skv))."""
    B, Sq, D = x_q.shape
    _, Skv, _ = x_kv.shape
    batch_block = _batch_block(B)
    assert B % batch_block == 0
    n_grid = B // batch_block
    has_mask = mask is not None

    kernel = make_attention_block_kernel(D, n_heads, Sq, Skv, batch_block,
                                         compute_dtype, has_mask, approx_recip)

    in_specs = [pl.BlockSpec((batch_block, Sq, D), lambda i: (i, 0, 0)),
                pl.BlockSpec((batch_block, Skv, D), lambda i: (i, 0, 0)),
                pl.BlockSpec((batch_block, Skv, D), lambda i: (i, 0, 0))]
    inputs = [x_q, x_kv, x_kv]
    if has_mask:
        in_specs.append(pl.BlockSpec((batch_block, Sq, Skv), lambda i: (i, 0, 0)))
        inputs.append(mask)
    in_specs += [pl.BlockSpec((3, D, D), lambda i: (0, 0, 0)),     # stacked QKV weights
                 pl.BlockSpec((D, D), lambda i: (0, 0)),           # output proj weight
                 pl.BlockSpec((1, D), lambda i: (0, 0)),           # output proj bias
                 pl.BlockSpec((1, D), lambda i: (0, 0)),           # LN gamma
                 pl.BlockSpec((1, D), lambda i: (0, 0))]           # LN beta
    inputs += [p['wqkv'], p['wp'], p['bp'], p['gamma'], p['beta']]

    out_shape = (jax.ShapeDtypeStruct((B, Sq, D), x_q.dtype),
                 jax.ShapeDtypeStruct((B, n_heads, Sq, Skv), jnp.float32))
    out_specs = [pl.BlockSpec((batch_block, Sq, D), lambda i: (i, 0, 0)),
                 pl.BlockSpec((batch_block, n_heads, Sq, Skv), lambda i: (i, 0, 0, 0))]

    per_head = D // n_heads
    flops = 2 * B * ((2 * Sq + 2 * Skv) * D * D + 2 * n_heads * Sq * Skv * per_head)
    bytes_accessed = 4 * (B * (Sq + 2 * Skv) * D + 4 * D * D + 5 * D
                          + B * Sq * D + B * n_heads * Sq * Skv
                          + (B * Sq * Skv if has_mask else 0))

    return pl.pallas_call(
        kernel,
        out_shape=out_shape,
        grid_spec=pltpu.PrefetchScalarGridSpec(
            num_scalar_prefetch=0, grid=(n_grid,),
            in_specs=in_specs, out_specs=out_specs),
        compiler_params=pltpu.CompilerParams(dimension_semantics=("parallel",)),
        cost_estimate=pl.CostEstimate(flops=flops,
                                      transcendentals=B * n_heads * Sq * Skv,
                                      bytes_accessed=bytes_accessed),
    )(*inputs)


def ffn_block_pallas(x, p, *, compute_dtype):
    """Returns LayerNorm(x + fc2(relu(fc1(x))))."""
    B, S, D = x.shape
    Dh = p['w1'].shape[1]
    batch_block = _batch_block(B)
    n_grid = B // batch_block
    kernel = make_ffn_block_kernel(batch_block, compute_dtype)

    return pl.pallas_call(
        kernel,
        out_shape=jax.ShapeDtypeStruct((B, S, D), x.dtype),
        grid_spec=pltpu.PrefetchScalarGridSpec(
            num_scalar_prefetch=0, grid=(n_grid,),
            in_specs=[pl.BlockSpec((batch_block, S, D), lambda i: (i, 0, 0)),
                      pl.BlockSpec((D, Dh), lambda i: (0, 0)),
                      pl.BlockSpec((1, Dh), lambda i: (0, 0)),
                      pl.BlockSpec((Dh, D), lambda i: (0, 0)),
                      pl.BlockSpec((1, D), lambda i: (0, 0)),
                      pl.BlockSpec((1, D), lambda i: (0, 0)),
                      pl.BlockSpec((1, D), lambda i: (0, 0))],
            out_specs=pl.BlockSpec((batch_block, S, D), lambda i: (i, 0, 0))),
        compiler_params=pltpu.CompilerParams(dimension_semantics=("parallel",)),
    )(x, p['w1'], p['b1'], p['w2'], p['b2'], p['gamma'], p['beta'])


def linear_pallas(x, w, b, *, compute_dtype):
    """Generator: (B, S, D) @ (D, V) + (1, V)."""
    B, S, D = x.shape
    V = w.shape[1]
    batch_block = _batch_block(B)
    n_grid = B // batch_block
    kernel = make_linear_kernel(batch_block, compute_dtype)

    return pl.pallas_call(
        kernel,
        out_shape=jax.ShapeDtypeStruct((B, S, V), x.dtype),
        grid_spec=pltpu.PrefetchScalarGridSpec(
            num_scalar_prefetch=0, grid=(n_grid,),
            in_specs=[pl.BlockSpec((batch_block, S, D), lambda i: (i, 0, 0)),
                      pl.BlockSpec((D, V), lambda i: (0, 0)),
                      pl.BlockSpec((1, V), lambda i: (0, 0))],
            out_specs=pl.BlockSpec((batch_block, S, V), lambda i: (i, 0, 0))),
        compiler_params=pltpu.CompilerParams(dimension_semantics=("parallel",)),
    )(x, w, b)


# ---------------------------------------------------------------------------
# Full model forward (Pallas) and pure-JAX reference
# ---------------------------------------------------------------------------
def transformer_forward_pallas(p, src_ids, tgt_ids, *, n_heads,
                               compute_dtype=jnp.bfloat16, approx_recip=True):
    B, S_src = src_ids.shape
    _, S_tgt = tgt_ids.shape

    # Mask generation (same semantics as TransformerModel.generate_mask),
    # flattened to (B, Sq, Skv) {0,1} f32 — head dim broadcast inside the kernel.
    enc_mask = jnp.broadcast_to((src_ids != 0)[:, None, :].astype(jnp.float32),
                                (B, S_src, S_src))
    nopeak = jnp.arange(S_tgt)[:, None] >= jnp.arange(S_tgt)[None, :]
    dec_mask = ((tgt_ids != 0)[:, :, None] & nopeak[None]).astype(jnp.float32)

    # TODO(synk): embedding-table gather + positional-encoding add done in plain JAX.
    src_x = jnp.take(p['src_emb'], src_ids, axis=0) + p['pe'][:S_src][None]
    tgt_x = jnp.take(p['tgt_emb'], tgt_ids, axis=0) + p['pe'][:S_tgt][None]

    kw = dict(n_heads=n_heads, compute_dtype=compute_dtype, approx_recip=approx_recip)

    # Encoder stack.
    out = src_x
    enc_map = None
    for layer in p['encoder']:
        out, enc_map = attention_block_pallas(out, out, enc_mask, layer['attn'], **kw)
        out = ffn_block_pallas(out, layer['ffn'], compute_dtype=compute_dtype)
    memory = out

    # Decoder stack (memory is the fixed encoder output, as in the module).
    tgt = tgt_x
    dec_map = cross_map = None
    for layer in p['decoder']:
        tgt, dec_map = attention_block_pallas(tgt, tgt, dec_mask,
                                              layer['self_attn'], **kw)
        tgt, cross_map = attention_block_pallas(tgt, memory, None,
                                                layer['cross_attn'], **kw)
        tgt = ffn_block_pallas(tgt, layer['ffn'], compute_dtype=compute_dtype)

    logits = linear_pallas(tgt, p['gen_w'], p['gen_b'], compute_dtype=compute_dtype)
    return {'logits': logits, 'encoder_attention_map': enc_map,
            'decoder_attention_map': dec_map, 'cross_attention_map': cross_map}


def reference_forward(raw, src_ids, tgt_ids, n_heads):
    """Pure-JAX mirror of the PyTorch forward (inference mode: dropout = identity)."""
    B, S_src = src_ids.shape
    _, S_tgt = tgt_ids.shape
    D = raw['src_emb'].shape[1]

    def linear(x, w, b=None):
        y = x @ w.T
        return y if b is None else y + b

    def mha(q, k, v, mask, p):
        Sq, Skv, ph = q.shape[1], k.shape[1], D // n_heads
        def split(x, s):
            return x.reshape(B, s, n_heads, ph).transpose(0, 2, 1, 3)
        Q = split(linear(q, p['w_q']), Sq)
        K = split(linear(k, p['w_k']), Skv)
        V = split(linear(v, p['w_v']), Skv)
        s = jnp.einsum('bhqd,bhkd->bhqk', Q, K) / math.sqrt(D)
        if mask is not None:
            s = jnp.where(mask, s, MASK_FILL)
        a = jax.nn.softmax(s, axis=-1)
        r = jnp.einsum('bhqk,bhkd->bhqd', a, V).transpose(0, 2, 1, 3).reshape(B, Sq, D)
        return linear(r, p['w_p'], p['b_p']), a

    def layer_norm(x, ln):
        mu = jnp.mean(x, axis=-1, keepdims=True)
        var = jnp.mean((x - mu) ** 2, axis=-1, keepdims=True)
        return (x - mu) / jnp.sqrt(var + LN_EPS) * ln['g'] + ln['b']

    def ffn(x, p):
        return linear(jnp.maximum(linear(x, p['w1'], p['b1']), 0.0), p['w2'], p['b2'])

    src_mask = (src_ids != 0)[:, None, None, :]
    nopeak = jnp.arange(S_tgt)[:, None] >= jnp.arange(S_tgt)[None, :]
    tgt_mask = (tgt_ids != 0)[:, None, :, None] & nopeak[None, None, :, :]

    src_x = jnp.take(raw['src_emb'], src_ids, axis=0) + raw['pe'][:S_src][None]
    tgt_x = jnp.take(raw['tgt_emb'], tgt_ids, axis=0) + raw['pe'][:S_tgt][None]

    out = src_x
    enc_map = None
    for l in raw['encoder']:
        a, enc_map = mha(out, out, out, src_mask, l['mha'])
        out = layer_norm(out + a, l['ln1'])
        out = layer_norm(out + ffn(out, l['ffn']), l['ln2'])
    memory = out

    tgt = tgt_x
    dec_map = cross_map = None
    for l in raw['decoder']:
        a, dec_map = mha(tgt, tgt, tgt, tgt_mask, l['mha1'])
        tgt = layer_norm(tgt + a, l['ln1'])
        a2, cross_map = mha(tgt, memory, memory, None, l['mha2'])
        tgt = layer_norm(tgt + a2, l['ln2'])
        tgt = layer_norm(tgt + ffn(tgt, l['ffn']), l['ln3'])

    logits = linear(tgt, raw['gen_w'], raw['gen_b'])
    return {'logits': logits, 'encoder_attention_map': enc_map,
            'decoder_attention_map': dec_map, 'cross_attention_map': cross_map}


# ---------------------------------------------------------------------------
# Parameter construction (PyTorch layouts) and Pallas-layout preparation
# ---------------------------------------------------------------------------
def make_positional_encoding(max_len, d_model):
    pos = jnp.arange(max_len, dtype=jnp.float32)[:, None]
    div = jnp.exp(jnp.arange(0, d_model, 2, dtype=jnp.float32)
                  * (-math.log(10000.0) / d_model))
    pe = jnp.zeros((max_len, d_model), dtype=jnp.float32)
    pe = pe.at[:, 0::2].set(jnp.sin(pos * div))
    pe = pe.at[:, 1::2].set(jnp.cos(pos * div))
    return pe


def init_raw_params(key, d_model, d_hidden, n_heads, n_blocks,
                    vocab_src, vocab_tgt, max_len):
    keys = iter(jax.random.split(key, 512))

    def lin_w(in_f, out_f):
        bound = 1.0 / math.sqrt(in_f)
        return jax.random.uniform(next(keys), (out_f, in_f), jnp.float32, -bound, bound)

    def lin_b(in_f, out_f):
        bound = 1.0 / math.sqrt(in_f)
        return jax.random.uniform(next(keys), (out_f,), jnp.float32, -bound, bound)

    def mha_p():
        return {'w_q': lin_w(d_model, d_model), 'w_k': lin_w(d_model, d_model),
                'w_v': lin_w(d_model, d_model), 'w_p': lin_w(d_model, d_model),
                'b_p': lin_b(d_model, d_model)}

    def ln_p():
        return {'g': jnp.ones((d_model,), jnp.float32),
                'b': jnp.zeros((d_model,), jnp.float32)}

    def ffn_p():
        return {'w1': lin_w(d_model, d_hidden), 'b1': lin_b(d_model, d_hidden),
                'w2': lin_w(d_hidden, d_model), 'b2': lin_b(d_hidden, d_model)}

    enc = [{'mha': mha_p(), 'ln1': ln_p(), 'ffn': ffn_p(), 'ln2': ln_p()}
           for _ in range(n_blocks)]
    dec = [{'mha1': mha_p(), 'ln1': ln_p(), 'mha2': mha_p(), 'ln2': ln_p(),
            'ffn': ffn_p(), 'ln3': ln_p()} for _ in range(n_blocks)]

    return {'src_emb': jax.random.normal(next(keys), (vocab_src, d_model), jnp.float32),
            'tgt_emb': jax.random.normal(next(keys), (vocab_tgt, d_model), jnp.float32),
            'encoder': enc, 'decoder': dec,
            'gen_w': lin_w(d_model, vocab_tgt), 'gen_b': lin_b(d_model, vocab_tgt),
            'pe': make_positional_encoding(max_len, d_model)}


def prep_params(raw):
    """Host-side prep: transpose weights to (in, out), stack QKV, 2-D biases."""
    def prep_attn(mha, ln):
        return {'wqkv': jnp.stack([mha['w_q'].T, mha['w_k'].T, mha['w_v'].T], axis=0),
                'wp': mha['w_p'].T, 'bp': mha['b_p'].reshape(1, -1),
                'gamma': ln['g'].reshape(1, -1), 'beta': ln['b'].reshape(1, -1)}

    def prep_ffn(ffn, ln):
        return {'w1': ffn['w1'].T, 'b1': ffn['b1'].reshape(1, -1),
                'w2': ffn['w2'].T, 'b2': ffn['b2'].reshape(1, -1),
                'gamma': ln['g'].reshape(1, -1), 'beta': ln['b'].reshape(1, -1)}

    enc = [{'attn': prep_attn(l['mha'], l['ln1']), 'ffn': prep_ffn(l['ffn'], l['ln2'])}
           for l in raw['encoder']]
    dec = [{'self_attn': prep_attn(l['mha1'], l['ln1']),
            'cross_attn': prep_attn(l['mha2'], l['ln2']),
            'ffn': prep_ffn(l['ffn'], l['ln3'])} for l in raw['decoder']]
    return {'src_emb': raw['src_emb'], 'tgt_emb': raw['tgt_emb'], 'pe': raw['pe'],
            'encoder': enc, 'decoder': dec,
            'gen_w': raw['gen_w'].T, 'gen_b': raw['gen_b'].reshape(1, -1)}


# ---------------------------------------------------------------------------
# Main
# ---------------------------------------------------------------------------
if __name__ == "__main__":
    D_MODEL, D_HIDDEN, N_HEADS, N_BLOCKS = 32, 64, 4, 2
    VOCAB_SRC, VOCAB_TGT, MAX_LEN = 50, 64, 32
    B, S = 2, 8

    key = jax.random.PRNGKey(0)
    kp, ks, kt = jax.random.split(key, 3)

    raw = init_raw_params(kp, D_MODEL, D_HIDDEN, N_HEADS, N_BLOCKS,
                          VOCAB_SRC, VOCAB_TGT, MAX_LEN)
    prepped = prep_params(raw)

    src_ids = jax.random.randint(ks, (B, S), 1, VOCAB_SRC, dtype=jnp.int32)
    tgt_ids = jax.random.randint(kt, (B, S), 1, VOCAB_TGT, dtype=jnp.int32)
    # A few pad (=0) tokens to exercise padding / causal masks.
    src_ids = src_ids.at[1, 6:].set(0)
    tgt_ids = tgt_ids.at[0, 7].set(0)

    ref = reference_forward(raw, src_ids, tgt_ids, N_HEADS)

    # --- Precise path (f32 MXU operands, exact reciprocal): correctness check ---
    fwd_f32 = jax.jit(partial(transformer_forward_pallas, n_heads=N_HEADS,
                              compute_dtype=jnp.float32, approx_recip=False))
    out_f32 = jax.block_until_ready(fwd_f32(prepped, src_ids, tgt_ids))

    assert out_f32['logits'].shape == (B, S, VOCAB_TGT)
    assert out_f32['encoder_attention_map'].shape == (B, N_HEADS, S, S)
    assert out_f32['decoder_attention_map'].shape == (B, N_HEADS, S, S)
    assert out_f32['cross_attention_map'].shape == (B, N_HEADS, S, S)
    assert jnp.allclose(out_f32['logits'], ref['logits'], atol=5e-4, rtol=1e-3)
    assert jnp.allclose(out_f32['encoder_attention_map'],
                        ref['encoder_attention_map'], atol=1e-4)
    assert jnp.allclose(out_f32['decoder_attention_map'],
                        ref['decoder_attention_map'], atol=1e-4)
    assert jnp.allclose(out_f32['cross_attention_map'],
                        ref['cross_attention_map'], atol=1e-4)

    # --- Fast path (bf16 MXU operands, EUP approx reciprocal): run + sanity ------
    fwd_fast = jax.jit(partial(transformer_forward_pallas, n_heads=N_HEADS,
                               compute_dtype=jnp.bfloat16, approx_recip=True))
    out_fast = jax.block_until_ready(fwd_fast(prepped, src_ids, tgt_ids))
    assert out_fast['logits'].shape == (B, S, VOCAB_TGT)
    assert bool(jnp.all(jnp.isfinite(out_fast['logits'])))

    print("KERNEL_OK")
</pallas_src>

<mosaic_0001>
module attributes {stable_mosaic.version = 11 : i64} {
  func.func @kernel(%arg0: i32, %arg1: memref<2x8x32xf32, #tpu.memory_space<vmem>>, %arg2: memref<32x64xf32, #tpu.memory_space<vmem>>, %arg3: memref<1x64xf32, #tpu.memory_space<vmem>>, %arg4: memref<64x32xf32, #tpu.memory_space<vmem>>, %arg5: memref<1x32xf32, #tpu.memory_space<vmem>>, %arg6: memref<1x32xf32, #tpu.memory_space<vmem>>, %arg7: memref<1x32xf32, #tpu.memory_space<vmem>>, %arg8: memref<2x8x32xf32, #tpu.memory_space<vmem>>) attributes {dimension_semantics = [#tpu.dimension_semantics<parallel>], iteration_bounds = array<i64: 1>, scalar_prefetch = 0 : i64, scratch_operands = 0 : i64, tpu.core_type = #tpu.core_type<tc>, window_params = [{transform_indices = @transform_0, window_bounds = array<i64: 2, 8, 32>}, {pipeline_mode = #tpu.pipeline_mode<synchronous>, transform_indices = @transform_1, window_bounds = array<i64: 32, 64>}, {pipeline_mode = #tpu.pipeline_mode<synchronous>, transform_indices = @transform_2, window_bounds = array<i64: 1, 64>}, {pipeline_mode = #tpu.pipeline_mode<synchronous>, transform_indices = @transform_3, window_bounds = array<i64: 64, 32>}, {pipeline_mode = #tpu.pipeline_mode<synchronous>, transform_indices = @transform_4, window_bounds = array<i64: 1, 32>}, {pipeline_mode = #tpu.pipeline_mode<synchronous>, transform_indices = @transform_5, window_bounds = array<i64: 1, 32>}, {pipeline_mode = #tpu.pipeline_mode<synchronous>, transform_indices = @transform_6, window_bounds = array<i64: 1, 32>}, {transform_indices = @transform_7, window_bounds = array<i64: 2, 8, 32>}]} {
    %c0 = arith.constant 0 : index
    %c0_0 = arith.constant 0 : index
    %0 = vector.load %arg2[%c0, %c0_0] : memref<32x64xf32, #tpu.memory_space<vmem>>, vector<32x64xf32>
    %c0_1 = arith.constant 0 : index
    %c0_2 = arith.constant 0 : index
    %1 = vector.load %arg4[%c0_1, %c0_2] : memref<64x32xf32, #tpu.memory_space<vmem>>, vector<64x32xf32>
    %c0_3 = arith.constant 0 : index
    %c0_4 = arith.constant 0 : index
    %2 = vector.load %arg3[%c0_3, %c0_4] : memref<1x64xf32, #tpu.memory_space<vmem>>, vector<1x64xf32>
    %c0_5 = arith.constant 0 : index
    %c0_6 = arith.constant 0 : index
    %3 = vector.load %arg5[%c0_5, %c0_6] : memref<1x32xf32, #tpu.memory_space<vmem>>, vector<1x32xf32>
    %c0_7 = arith.constant 0 : index
    %c0_8 = arith.constant 0 : index
    %4 = vector.load %arg6[%c0_7, %c0_8] : memref<1x32xf32, #tpu.memory_space<vmem>>, vector<1x32xf32>
    %c0_9 = arith.constant 0 : index
    %c0_10 = arith.constant 0 : index
    %5 = vector.load %arg7[%c0_9, %c0_10] : memref<1x32xf32, #tpu.memory_space<vmem>>, vector<1x32xf32>
    %c0_11 = arith.constant 0 : index
    %c0_12 = arith.constant 0 : index
    %c0_13 = arith.constant 0 : index
    %6 = vector.load %arg1[%c0_11, %c0_12, %c0_13] : memref<2x8x32xf32, #tpu.memory_space<vmem>>, vector<1x8x32xf32>
    %7 = vector.shape_cast %6 : vector<1x8x32xf32> to vector<8x32xf32>
    %cst = arith.constant dense<0.000000e+00> : vector<8x64xf32>
    %8 = tpu.matmul %7, %0, %cst {dimension_numbers = #tpu.dot_dimension_numbers<[1], [0], [0], [1], [0, 0, 1, 1], [], []>} : vector<8x32xf32>, vector<32x64xf32>, vector<8x64xf32> -> vector<8x64xf32>
    %9 = vector.broadcast %2 : vector<1x64xf32> to vector<8x64xf32>
    %10 = arith.addf %8, %9 : vector<8x64xf32>
    %cst_14 = arith.constant 0.000000e+00 : f32
    %11 = vector.broadcast %cst_14 : f32 to vector<8x64xf32>
    %12 = arith.maximumf %10, %11 : vector<8x64xf32>
    %cst_15 = arith.constant dense<0.000000e+00> : vector<8x32xf32>
    %13 = tpu.matmul %12, %1, %cst_15 {dimension_numbers = #tpu.dot_dimension_numbers<[1], [0], [0], [1], [0, 0, 1, 1], [], []>} : vector<8x64xf32>, vector<64x32xf32>, vector<8x32xf32> -> vector<8x32xf32>
    %14 = vector.broadcast %3 : vector<1x32xf32> to vector<8x32xf32>
    %15 = arith.addf %13, %14 : vector<8x32xf32>
    %16 = arith.addf %7, %15 : vector<8x32xf32>
    %cst_16 = arith.constant dense<0.000000e+00> : vector<8xf32>
    %17 = vector.multi_reduction <add>, %16, %cst_16 [1] : vector<8x32xf32> to vector<8xf32>
    %18 = vector.shape_cast %17 : vector<8xf32> to vector<8x1xf32>
    %cst_17 = arith.constant 3.200000e+01 : f32
    %19 = vector.broadcast %cst_17 : f32 to vector<8x1xf32>
    %20 = arith.divf %18, %19 : vector<8x1xf32>
    %21 = vector.broadcast %20 : vector<8x1xf32> to vector<8x32xf32>
    %22 = arith.subf %16, %21 : vector<8x32xf32>
    %23 = arith.mulf %22, %22 : vector<8x32xf32>
    %cst_18 = arith.constant dense<0.000000e+00> : vector<8xf32>
    %24 = vector.multi_reduction <add>, %23, %cst_18 [1] : vector<8x32xf32> to vector<8xf32>
    %25 = vector.shape_cast %24 : vector<8xf32> to vector<8x1xf32>
    %cst_19 = arith.constant 3.200000e+01 : f32
    %26 = vector.broadcast %cst_19 : f32 to vector<8x1xf32>
    %27 = arith.divf %25, %26 : vector<8x1xf32>
    %cst_20 = arith.constant 9.99999974E-6 : f32
    %28 = vector.broadcast %cst_20 : f32 to vector<8x1xf32>
    %29 = arith.addf %27, %28 : vector<8x1xf32>
    %30 = math.rsqrt %29 : vector<8x1xf32>
    %31 = vector.broadcast %30 : vector<8x1xf32> to vector<8x32xf32>
    %32 = arith.mulf %22, %31 : vector<8x32xf32>
    %33 = vector.broadcast %4 : vector<1x32xf32> to vector<8x32xf32>
    %34 = arith.mulf %32, %33 : vector<8x32xf32>
    %35 = vector.broadcast %5 : vector<1x32xf32> to vector<8x32xf32>
    %36 = arith.addf %34, %35 : vector<8x32xf32>
    %c0_21 = arith.constant 0 : index
    %c0_22 = arith.constant 0 : index
    %c0_23 = arith.constant 0 : index
    %37 = vector.load %arg8[%c0_21, %c0_22, %c0_23] : memref<2x8x32xf32, #tpu.memory_space<vmem>>, vector<1x8x32xf32>
    %38 = vector.shape_cast %37 : vector<1x8x32xf32> to vector<8x32xf32>
    %39 = vector.shape_cast %36 : vector<8x32xf32> to vector<1x8x32xf32>
    tpu.vector_store %arg8[%c0_21, %c0_22, %c0_23], %39 {strides = array<i32>} : memref<2x8x32xf32, #tpu.memory_space<vmem>>, vector<1x8x32xf32>,
    %c1 = arith.constant 1 : index
    %c0_24 = arith.constant 0 : index
    %c0_25 = arith.constant 0 : index
    %40 = vector.load %arg1[%c1, %c0_24, %c0_25] : memref<2x8x32xf32, #tpu.memory_space<vmem>>, vector<1x8x32xf32>
    %41 = vector.shape_cast %40 : vector<1x8x32xf32> to vector<8x32xf32>
    %cst_26 = arith.constant dense<0.000000e+00> : vector<8x64xf32>
    %42 = tpu.matmul %41, %0, %cst_26 {dimension_numbers = #tpu.dot_dimension_numbers<[1], [0], [0], [1], [0, 0, 1, 1], [], []>} : vector<8x32xf32>, vector<32x64xf32>, vector<8x64xf32> -> vector<8x64xf32>
    %43 = vector.broadcast %2 : vector<1x64xf32> to vector<8x64xf32>
    %44 = arith.addf %42, %43 : vector<8x64xf32>
    %cst_27 = arith.constant 0.000000e+00 : f32
    %45 = vector.broadcast %cst_27 : f32 to vector<8x64xf32>
    %46 = arith.maximumf %44, %45 : vector<8x64xf32>
    %cst_28 = arith.constant dense<0.000000e+00> : vector<8x32xf32>
    %47 = tpu.matmul %46, %1, %cst_28 {dimension_numbers = #tpu.dot_dimension_numbers<[1], [0], [0], [1], [0, 0, 1, 1], [], []>} : vector<8x64xf32>, vector<64x32xf32>, vector<8x32xf32> -> vector<8x32xf32>
    %48 = vector.broadcast %3 : vector<1x32xf32> to vector<8x32xf32>
    %49 = arith.addf %47, %48 : vector<8x32xf32>
    %50 = arith.addf %41, %49 : vector<8x32xf32>
    %cst_29 = arith.constant dense<0.000000e+00> : vector<8xf32>
    %51 = vector.multi_reduction <add>, %50, %cst_29 [1] : vector<8x32xf32> to vector<8xf32>
    %52 = vector.shape_cast %51 : vector<8xf32> to vector<8x1xf32>
    %cst_30 = arith.constant 3.200000e+01 : f32
    %53 = vector.broadcast %cst_30 : f32 to vector<8x1xf32>
    %54 = arith.divf %52, %53 : vector<8x1xf32>
    %55 = vector.broadcast %54 : vector<8x1xf32> to vector<8x32xf32>
    %56 = arith.subf %50, %55 : vector<8x32xf32>
    %57 = arith.mulf %56, %56 : vector<8x32xf32>
    %cst_31 = arith.constant dense<0.000000e+00> : vector<8xf32>
    %58 = vector.multi_reduction <add>, %57, %cst_31 [1] : vector<8x32xf32> to vector<8xf32>
    %59 = vector.shape_cast %58 : vector<8xf32> to vector<8x1xf32>
    %cst_32 = arith.constant 3.200000e+01 : f32
    %60 = vector.broadcast %cst_32 : f32 to vector<8x1xf32>
    %61 = arith.divf %59, %60 : vector<8x1xf32>
    %cst_33 = arith.constant 9.99999974E-6 : f32
    %62 = vector.broadcast %cst_33 : f32 to vector<8x1xf32>
    %63 = arith.addf %61, %62 : vector<8x1xf32>
    %64 = math.rsqrt %63 : vector<8x1xf32>
    %65 = vector.broadcast %64 : vector<8x1xf32> to vector<8x32xf32>
    %66 = arith.mulf %56, %65 : vector<8x32xf32>
    %67 = vector.broadcast %4 : vector<1x32xf32> to vector<8x32xf32>
    %68 = arith.mulf %66, %67 : vector<8x32xf32>
    %69 = vector.broadcast %5 : vector<1x32xf32> to vector<8x32xf32>
    %70 = arith.addf %68, %69 : vector<8x32xf32>
    %c1_34 = arith.constant 1 : index
    %c0_35 = arith.constant 0 : index
    %c0_36 = arith.constant 0 : index
    %71 = vector.load %arg8[%c1_34, %c0_35, %c0_36] : memref<2x8x32xf32, #tpu.memory_space<vmem>>, vector<1x8x32xf32>
    %72 = vector.shape_cast %71 : vector<1x8x32xf32> to vector<8x32xf32>
    %73 = vector.shape_cast %70 : vector<8x32xf32> to vector<1x8x32xf32>
    tpu.vector_store %arg8[%c1_34, %c0_35, %c0_36], %73 {strides = array<i32>} : memref<2x8x32xf32, #tpu.memory_space<vmem>>, vector<1x8x32xf32>,
    return
  }
  func.func @transform_0(%arg0: i32) -> (i32, i32, i32) {
    %c0_i32 = arith.constant 0 : i32
    %c0_i32_0 = arith.constant 0 : i32
    %c0_i32_1 = arith.constant 0 : i32
    return %arg0, %c0_i32, %c0_i32_0 : i32, i32, i32
  }
  func.func @transform_1(%arg0: i32) -> (i32, i32) {
    %c0_i32 = arith.constant 0 : i32
    %c0_i32_0 = arith.constant 0 : i32
    %c0_i32_1 = arith.constant 0 : i32
    return %c0_i32, %c0_i32_0 : i32, i32
  }
  func.func @transform_2(%arg0: i32) -> (i32, i32) {
    %c0_i32 = arith.constant 0 : i32
    %c0_i32_0 = arith.constant 0 : i32
    %c0_i32_1 = arith.constant 0 : i32
    return %c0_i32, %c0_i32_0 : i32, i32
  }
  func.func @transform_3(%arg0: i32) -> (i32, i32) {
    %c0_i32 = arith.constant 0 : i32
    %c0_i32_0 = arith.constant 0 : i32
    %c0_i32_1 = arith.constant 0 : i32
    return %c0_i32, %c0_i32_0 : i32, i32
  }
  func.func @transform_4(%arg0: i32) -> (i32, i32) {
    %c0_i32 = arith.constant 0 : i32
    %c0_i32_0 = arith.constant 0 : i32
    %c0_i32_1 = arith.constant 0 : i32
    return %c0_i32, %c0_i32_0 : i32, i32
  }
  func.func @transform_5(%arg0: i32) -> (i32, i32) {
    %c0_i32 = arith.constant 0 : i32
    %c0_i32_0 = arith.constant 0 : i32
    %c0_i32_1 = arith.constant 0 : i32
    return %c0_i32, %c0_i32_0 : i32, i32
  }
  func.func @transform_6(%arg0: i32) -> (i32, i32) {
    %c0_i32 = arith.constant 0 : i32
    %c0_i32_0 = arith.constant 0 : i32
    %c0_i32_1 = arith.constant 0 : i32
    return %c0_i32, %c0_i32_0 : i32, i32
  }
  func.func @transform_7(%arg0: i32) -> (i32, i32, i32) {
    %c0_i32 = arith.constant 0 : i32
    %c0_i32_0 = arith.constant 0 : i32
    %c0_i32_1 = arith.constant 0 : i32
    return %arg0, %c0_i32, %c0_i32_0 : i32, i32, i32
  }
}

module attributes {stable_mosaic.version = 11 : i64} {
  func.func @kernel(%arg0: i32, %arg1: memref<2x8x32xf32, #tpu.memory_space<vmem>>, %arg2: memref<2x8x32xf32, #tpu.memory_space<vmem>>, %arg3: memref<2x8x32xf32, #tpu.memory_space<vmem>>, %arg4: memref<2x8x8xf32, #tpu.memory_space<vmem>>, %arg5: memref<3x32x32xf32, #tpu.memory_space<vmem>>, %arg6: memref<32x32xf32, #tpu.memory_space<vmem>>, %arg7: memref<1x32xf32, #tpu.memory_space<vmem>>, %arg8: memref<1x32xf32, #tpu.memory_space<vmem>>, %arg9: memref<1x32xf32, #tpu.memory_space<vmem>>, %arg10: memref<2x8x32xf32, #tpu.memory_space<vmem>>, %arg11: memref<2x4x8x8xf32, #tpu.memory_space<vmem>>) attributes {dimension_semantics = [#tpu.dimension_semantics<parallel>], iteration_bounds = array<i64: 1>, scalar_prefetch = 0 : i64, scratch_operands = 0 : i64, tpu.core_type = #tpu.core_type<tc>, window_params = [{transform_indices = @transform_0, window_bounds = array<i64: 2, 8, 32>}, {transform_indices = @transform_1, window_bounds = array<i64: 2, 8, 32>}, {transform_indices = @transform_2, window_bounds = array<i64: 2, 8, 32>}, {transform_indices = @transform_3, window_bounds = array<i64: 2, 8, 8>}, {pipeline_mode = #tpu.pipeline_mode<synchronous>, transform_indices = @transform_4, window_bounds = array<i64: 3, 32, 32>}, {pipeline_mode = #tpu.pipeline_mode<synchronous>, transform_indices = @transform_5, window_bounds = array<i64: 32, 32>}, {pipeline_mode = #tpu.pipeline_mode<synchronous>, transform_indices = @transform_6, window_bounds = array<i64: 1, 32>}, {pipeline_mode = #tpu.pipeline_mode<synchronous>, transform_indices = @transform_7, window_bounds = array<i64: 1, 32>}, {pipeline_mode = #tpu.pipeline_mode<synchronous>, transform_indices = @transform_8, window_bounds = array<i64: 1, 32>}, {transform_indices = @transform_9, window_bounds = array<i64: 2, 8, 32>}, {transform_indices = @transform_10, window_bounds = array<i64: 2, 4, 8, 8>}]} {
    %c0 = arith.constant 0 : index
    %c0_0 = arith.constant 0 : index
    %c0_1 = arith.constant 0 : index
    %0 = vector.load %arg5[%c0, %c0_0, %c0_1] : memref<3x32x32xf32, #tpu.memory_space<vmem>>, vector<1x32x32xf32>
    %1 = vector.shape_cast %0 : vector<1x32x32xf32> to vector<32x32xf32>
    %c1 = arith.constant 1 : index
    %c0_2 = arith.constant 0 : index
    %c0_3 = arith.constant 0 : index
    %2 = vector.load %arg5[%c1, %c0_2, %c0_3] : memref<3x32x32xf32, #tpu.memory_space<vmem>>, vector<1x32x32xf32>
    %3 = vector.shape_cast %2 : vector<1x32x32xf32> to vector<32x32xf32>
    %c2 = arith.constant 2 : index
    %c0_4 = arith.constant 0 : index
    %c0_5 = arith.constant 0 : index
    %4 = vector.load %arg5[%c2, %c0_4, %c0_5] : memref<3x32x32xf32, #tpu.memory_space<vmem>>, vector<1x32x32xf32>
    %5 = vector.shape_cast %4 : vector<1x32x32xf32> to vector<32x32xf32>
    %c0_6 = arith.constant 0 : index
    %c0_7 = arith.constant 0 : index
    %6 = vector.load %arg6[%c0_6, %c0_7] : memref<32x32xf32, #tpu.memory_space<vmem>>, vector<32x32xf32>
    %c0_8 = arith.constant 0 : index
    %c0_9 = arith.constant 0 : index
    %7 = vector.load %arg7[%c0_8, %c0_9] : memref<1x32xf32, #tpu.memory_space<vmem>>, vector<1x32xf32>
    %c0_10 = arith.constant 0 : index
    %c0_11 = arith.constant 0 : index
    %8 = vector.load %arg8[%c0_10, %c0_11] : memref<1x32xf32, #tpu.memory_space<vmem>>, vector<1x32xf32>
    %c0_12 = arith.constant 0 : index
    %c0_13 = arith.constant 0 : index
    %9 = vector.load %arg9[%c0_12, %c0_13] : memref<1x32xf32, #tpu.memory_space<vmem>>, vector<1x32xf32>
    %c0_14 = arith.constant 0 : index
    %c0_15 = arith.constant 0 : index
    %c0_16 = arith.constant 0 : index
    %10 = vector.load %arg1[%c0_14, %c0_15, %c0_16] : memref<2x8x32xf32, #tpu.memory_space<vmem>>, vector<1x8x32xf32>
    %11 = vector.shape_cast %10 : vector<1x8x32xf32> to vector<8x32xf32>
    %c0_17 = arith.constant 0 : index
    %c0_18 = arith.constant 0 : index
    %c0_19 = arith.constant 0 : index
    %12 = vector.load %arg2[%c0_17, %c0_18, %c0_19] : memref<2x8x32xf32, #tpu.memory_space<vmem>>, vector<1x8x32xf32>
    %13 = vector.shape_cast %12 : vector<1x8x32xf32> to vector<8x32xf32>
    %c0_20 = arith.constant 0 : index
    %c0_21 = arith.constant 0 : index
    %c0_22 = arith.constant 0 : index
    %14 = vector.load %arg3[%c0_20, %c0_21, %c0_22] : memref<2x8x32xf32, #tpu.memory_space<vmem>>, vector<1x8x32xf32>
    %15 = vector.shape_cast %14 : vector<1x8x32xf32> to vector<8x32xf32>
    %cst = arith.constant dense<0.000000e+00> : vector<8x32xf32>
    %16 = tpu.matmul %11, %1, %cst {dimension_numbers = #tpu.dot_dimension_numbers<[1], [0], [0], [1], [0, 0, 1, 1], [], []>} : vector<8x32xf32>, vector<32x32xf32>, vector<8x32xf32> -> vector<8x32xf32>
    %cst_23 = arith.constant dense<0.000000e+00> : vector<8x32xf32>
    %17 = tpu.matmul %13, %3, %cst_23 {dimension_numbers = #tpu.dot_dimension_numbers<[1], [0], [0], [1], [0, 0, 1, 1], [], []>} : vector<8x32xf32>, vector<32x32xf32>, vector<8x32xf32> -> vector<8x32xf32>
    %cst_24 = arith.constant dense<0.000000e+00> : vector<8x32xf32>
    %18 = tpu.matmul %15, %5, %cst_24 {dimension_numbers = #tpu.dot_dimension_numbers<[1], [0], [0], [1], [0, 0, 1, 1], [], []>} : vector<8x32xf32>, vector<32x32xf32>, vector<8x32xf32> -> vector<8x32xf32>
    %19 = vector.shape_cast %16 : vector<8x32xf32> to vector<8x4x8xf32>
    %20 = tpu.transpose %19, [1, 0, 2] : vector<8x4x8xf32> -> vector<4x8x8xf32>
    %21 = vector.shape_cast %17 : vector<8x32xf32> to vector<8x4x8xf32>
    %22 = tpu.transpose %21, [1, 0, 2] : vector<8x4x8xf32> -> vector<4x8x8xf32>
    %23 = vector.shape_cast %18 : vector<8x32xf32> to vector<8x4x8xf32>
    %24 = tpu.transpose %23, [1, 0, 2] : vector<8x4x8xf32> -> vector<4x8x8xf32>
    "tpu.trace_start"() <{level = 10 : i32, message = "hqd,hkd->hqk"}> : () -> ()
    %cst_25 = arith.constant dense<0.000000e+00> : vector<4x8x8xf32>
    %25 = tpu.matmul %20, %22, %cst_25 {dimension_numbers = #tpu.dot_dimension_numbers<[2], [2], [1], [1], [0, 0, 0, 1, 1, 1], [0], [0]>} : vector<4x8x8xf32>, vector<4x8x8xf32>, vector<4x8x8xf32> -> vector<4x8x8xf32>
    "tpu.trace_stop"() : () -> ()
    %cst_26 = arith.constant 0.176776692 : f32
    %26 = vector.broadcast %cst_26 : f32 to vector<4x8x8xf32>
    %27 = arith.mulf %25, %26 : vector<4x8x8xf32>
    %c0_27 = arith.constant 0 : index
    %c0_28 = arith.constant 0 : index
    %c0_29 = arith.constant 0 : index
    %28 = vector.load %arg4[%c0_27, %c0_28, %c0_29] : memref<2x8x8xf32, #tpu.memory_space<vmem>>, vector<1x8x8xf32>
    %29 = vector.shape_cast %28 : vector<1x8x8xf32> to vector<8x8xf32>
    %30 = vector.shape_cast %29 : vector<8x8xf32> to vector<1x8x8xf32>
    %cst_30 = arith.constant 0.000000e+00 : f32
    %31 = vector.broadcast %cst_30 : f32 to vector<1x8x8xf32>
    %32 = arith.cmpf ogt, %30, %31 : vector<1x8x8xf32>
    %33 = vector.shape_cast %32 : vector<1x8x8xi1> to vector<1x8x8xi1>
    %34 = vector.broadcast %33 : vector<1x8x8xi1> to vector<4x8x8xi1>
    %cst_31 = arith.constant -1.000000e+10 : f32
    %35 = vector.broadcast %cst_31 : f32 to vector<4x8x8xf32>
    %36 = arith.select %34, %27, %35 : vector<4x8x8xi1>, vector<4x8x8xf32>
    %cst_32 = arith.constant dense<0xFF800000> : vector<4x8xf32>
    %37 = vector.multi_reduction <maximumf>, %36, %cst_32 [2] : vector<4x8x8xf32> to vector<4x8xf32>
    %38 = vector.shape_cast %37 : vector<4x8xf32> to vector<4x8x1xf32>
    %39 = vector.broadcast %38 : vector<4x8x1xf32> to vector<4x8x8xf32>
    %40 = arith.subf %36, %39 : vector<4x8x8xf32>
    %41 = math.exp %40 : vector<4x8x8xf32>
    %cst_33 = arith.constant dense<0.000000e+00> : vector<4x8xf32>
    %42 = vector.multi_reduction <add>, %41, %cst_33 [2] : vector<4x8x8xf32> to vector<4x8xf32>
    %43 = vector.shape_cast %42 : vector<4x8xf32> to vector<4x8x1xf32>
    %44 = tpu.reciprocal %43 : vector<4x8x1xf32> -> vector<4x8x1xf32>
    %45 = vector.broadcast %44 : vector<4x8x1xf32> to vector<4x8x8xf32>
    %46 = arith.mulf %41, %45 : vector<4x8x8xf32>
    %c0_34 = arith.constant 0 : index
    %c0_35 = arith.constant 0 : index
    %c0_36 = arith.constant 0 : index
    %c0_37 = arith.constant 0 : index
    %47 = vector.load %arg11[%c0_34, %c0_35, %c0_36, %c0_37] : memref<2x4x8x8xf32, #tpu.memory_space<vmem>>, vector<1x4x8x8xf32>
    %48 = vector.shape_cast %47 : vector<1x4x8x8xf32> to vector<4x8x8xf32>
    %49 = vector.shape_cast %46 : vector<4x8x8xf32> to vector<1x4x8x8xf32>
    tpu.vector_store %arg11[%c0_34, %c0_35, %c0_36, %c0_37], %49 {strides = array<i32>} : memref<2x4x8x8xf32, #tpu.memory_space<vmem>>, vector<1x4x8x8xf32>,
    "tpu.trace_start"() <{level = 10 : i32, message = "hqk,hkd->hqd"}> : () -> ()
    %cst_38 = arith.constant dense<0.000000e+00> : vector<4x8x8xf32>
    %50 = tpu.matmul %46, %24, %cst_38 {dimension_numbers = #tpu.dot_dimension_numbers<[2], [1], [1], [2], [0, 0, 0, 1, 1, 2], [0], [0]>} : vector<4x8x8xf32>, vector<4x8x8xf32>, vector<4x8x8xf32> -> vector<4x8x8xf32>
    "tpu.trace_stop"() : () -> ()
    %51 = tpu.transpose %50, [1, 0, 2] : vector<4x8x8xf32> -> vector<8x4x8xf32>
    %52 = vector.shape_cast %51 : vector<8x4x8xf32> to vector<8x32xf32>
    %cst_39 = arith.constant dense<0.000000e+00> : vector<8x32xf32>
    %53 = tpu.matmul %52, %6, %cst_39 {dimension_numbers = #tpu.dot_dimension_numbers<[1], [0], [0], [1], [0, 0, 1, 1], [], []>} : vector<8x32xf32>, vector<32x32xf32>, vector<8x32xf32> -> vector<8x32xf32>
    %54 = vector.broadcast %7 : vector<1x32xf32> to vector<8x32xf32>
    %55 = arith.addf %53, %54 : vector<8x32xf32>
    %56 = arith.addf %11, %55 : vector<8x32xf32>
    %cst_40 = arith.constant dense<0.000000e+00> : vector<8xf32>
    %57 = vector.multi_reduction <add>, %56, %cst_40 [1] : vector<8x32xf32> to vector<8xf32>
    %58 = vector.shape_cast %57 : vector<8xf32> to vector<8x1xf32>
    %cst_41 = arith.constant 3.200000e+01 : f32
    %59 = vector.broadcast %cst_41 : f32 to vector<8x1xf32>
    %60 = arith.divf %58, %59 : vector<8x1xf32>
    %61 = vector.broadcast %60 : vector<8x1xf32> to vector<8x32xf32>
    %62 = arith.subf %56, %61 : vector<8x32xf32>
    %63 = arith.mulf %62, %62 : vector<8x32xf32>
    %cst_42 = arith.constant dense<0.000000e+00> : vector<8xf32>
    %64 = vector.multi_reduction <add>, %63, %cst_42 [1] : vector<8x32xf32> to vector<8xf32>
    %65 = vector.shape_cast %64 : vector<8xf32> to vector<8x1xf32>
    %cst_43 = arith.constant 3.200000e+01 : f32
    %66 = vector.broadcast %cst_43 : f32 to vector<8x1xf32>
    %67 = arith.divf %65, %66 : vector<8x1xf32>
    %cst_44 = arith.constant 9.99999974E-6 : f32
    %68 = vector.broadcast %cst_44 : f32 to vector<8x1xf32>
    %69 = arith.addf %67, %68 : vector<8x1xf32>
    %70 = math.rsqrt %69 : vector<8x1xf32>
    %71 = vector.broadcast %70 : vector<8x1xf32> to vector<8x32xf32>
    %72 = arith.mulf %62, %71 : vector<8x32xf32>
    %73 = vector.broadcast %8 : vector<1x32xf32> to vector<8x32xf32>
    %74 = arith.mulf %72, %73 : vector<8x32xf32>
    %75 = vector.broadcast %9 : vector<1x32xf32> to vector<8x32xf32>
    %76 = arith.addf %74, %75 : vector<8x32xf32>
    %c0_45 = arith.constant 0 : index
    %c0_46 = arith.constant 0 : index
    %c0_47 = arith.constant 0 : index
    %77 = vector.load %arg10[%c0_45, %c0_46, %c0_47] : memref<2x8x32xf32, #tpu.memory_space<vmem>>, vector<1x8x32xf32>
    %78 = vector.shape_cast %77 : vector<1x8x32xf32> to vector<8x32xf32>
    %79 = vector.shape_cast %76 : vector<8x32xf32> to vector<1x8x32xf32>
    tpu.vector_store %arg10[%c0_45, %c0_46, %c0_47], %79 {strides = array<i32>} : memref<2x8x32xf32, #tpu.memory_space<vmem>>, vector<1x8x32xf32>,
    %c1_48 = arith.constant 1 : index
    %c0_49 = arith.constant 0 : index
    %c0_50 = arith.constant 0 : index
    %80 = vector.load %arg1[%c1_48, %c0_49, %c0_50] : memref<2x8x32xf32, #tpu.memory_space<vmem>>, vector<1x8x32xf32>
    %81 = vector.shape_cast %80 : vector<1x8x32xf32> to vector<8x32xf32>
    %c1_51 = arith.constant 1 : index
    %c0_52 = arith.constant 0 : index
    %c0_53 = arith.constant 0 : index
    %82 = vector.load %arg2[%c1_51, %c0_52, %c0_53] : memref<2x8x32xf32, #tpu.memory_space<vmem>>, vector<1x8x32xf32>
    %83 = vector.shape_cast %82 : vector<1x8x32xf32> to vector<8x32xf32>
    %c1_54 = arith.constant 1 : index
    %c0_55 = arith.constant 0 : index
    %c0_56 = arith.constant 0 : index
    %84 = vector.load %arg3[%c1_54, %c0_55, %c0_56] : memref<2x8x32xf32, #tpu.memory_space<vmem>>, vector<1x8x32xf32>
    %85 = vector.shape_cast %84 : vector<1x8x32xf32> to vector<8x32xf32>
    %cst_57 = arith.constant dense<0.000000e+00> : vector<8x32xf32>
    %86 = tpu.matmul %81, %1, %cst_57 {dimension_numbers = #tpu.dot_dimension_numbers<[1], [0], [0], [1], [0, 0, 1, 1], [], []>} : vector<8x32xf32>, vector<32x32xf32>, vector<8x32xf32> -> vector<8x32xf32>
    %cst_58 = arith.constant dense<0.000000e+00> : vector<8x32xf32>
    %87 = tpu.matmul %83, %3, %cst_58 {dimension_numbers = #tpu.dot_dimension_numbers<[1], [0], [0], [1], [0, 0, 1, 1], [], []>} : vector<8x32xf32>, vector<32x32xf32>, vector<8x32xf32> -> vector<8x32xf32>
    %cst_59 = arith.constant dense<0.000000e+00> : vector<8x32xf32>
    %88 = tpu.matmul %85, %5, %cst_59 {dimension_numbers = #tpu.dot_dimension_numbers<[1], [0], [0], [1], [0, 0, 1, 1], [], []>} : vector<8x32xf32>, vector<32x32xf32>, vector<8x32xf32> -> vector<8x32xf32>
    %89 = vector.shape_cast %86 : vector<8x32xf32> to vector<8x4x8xf32>
    %90 = tpu.transpose %89, [1, 0, 2] : vector<8x4x8xf32> -> vector<4x8x8xf32>
    %91 = vector.shape_cast %87 : vector<8x32xf32> to vector<8x4x8xf32>
    %92 = tpu.transpose %91, [1, 0, 2] : vector<8x4x8xf32> -> vector<4x8x8xf32>
    %93 = vector.shape_cast %88 : vector<8x32xf32> to vector<8x4x8xf32>
    %94 = tpu.transpose %93, [1, 0, 2] : vector<8x4x8xf32> -> vector<4x8x8xf32>
    "tpu.trace_start"() <{level = 10 : i32, message = "hqd,hkd->hqk"}> : () -> ()
    %cst_60 = arith.constant dense<0.000000e+00> : vector<4x8x8xf32>
    %95 = tpu.matmul %90, %92, %cst_60 {dimension_numbers = #tpu.dot_dimension_numbers<[2], [2], [1], [1], [0, 0, 0, 1, 1, 1], [0], [0]>} : vector<4x8x8xf32>, vector<4x8x8xf32>, vector<4x8x8xf32> -> vector<4x8x8xf32>
    "tpu.trace_stop"() : () -> ()
    %cst_61 = arith.constant 0.176776692 : f32
    %96 = vector.broadcast %cst_61 : f32 to vector<4x8x8xf32>
    %97 = arith.mulf %95, %96 : vector<4x8x8xf32>
    %c1_62 = arith.constant 1 : index
    %c0_63 = arith.constant 0 : index
    %c0_64 = arith.constant 0 : index
    %98 = vector.load %arg4[%c1_62, %c0_63, %c0_64] : memref<2x8x8xf32, #tpu.memory_space<vmem>>, vector<1x8x8xf32>
    %99 = vector.shape_cast %98 : vector<1x8x8xf32> to vector<8x8xf32>
    %100 = vector.shape_cast %99 : vector<8x8xf32> to vector<1x8x8xf32>
    %cst_65 = arith.constant 0.000000e+00 : f32
    %101 = vector.broadcast %cst_65 : f32 to vector<1x8x8xf32>
    %102 = arith.cmpf ogt, %100, %101 : vector<1x8x8xf32>
    %103 = vector.shape_cast %102 : vector<1x8x8xi1> to vector<1x8x8xi1>
    %104 = vector.broadcast %103 : vector<1x8x8xi1> to vector<4x8x8xi1>
    %cst_66 = arith.constant -1.000000e+10 : f32
    %105 = vector.broadcast %cst_66 : f32 to vector<4x8x8xf32>
    %106 = arith.select %104, %97, %105 : vector<4x8x8xi1>, vector<4x8x8xf32>
    %cst_67 = arith.constant dense<0xFF800000> : vector<4x8xf32>
    %107 = vector.multi_reduction <maximumf>, %106, %cst_67 [2] : vector<4x8x8xf32> to vector<4x8xf32>
    %108 = vector.shape_cast %107 : vector<4x8xf32> to vector<4x8x1xf32>
    %109 = vector.broadcast %108 : vector<4x8x1xf32> to vector<4x8x8xf32>
    %110 = arith.subf %106, %109 : vector<4x8x8xf32>
    %111 = math.exp %110 : vector<4x8x8xf32>
    %cst_68 = arith.constant dense<0.000000e+00> : vector<4x8xf32>
    %112 = vector.multi_reduction <add>, %111, %cst_68 [2] : vector<4x8x8xf32> to vector<4x8xf32>
    %113 = vector.shape_cast %112 : vector<4x8xf32> to vector<4x8x1xf32>
    %114 = tpu.reciprocal %113 : vector<4x8x1xf32> -> vector<4x8x1xf32>
    %115 = vector.broadcast %114 : vector<4x8x1xf32> to vector<4x8x8xf32>
    %116 = arith.mulf %111, %115 : vector<4x8x8xf32>
    %c1_69 = arith.constant 1 : index
    %c0_70 = arith.constant 0 : index
    %c0_71 = arith.constant 0 : index
    %c0_72 = arith.constant 0 : index
    %117 = vector.load %arg11[%c1_69, %c0_70, %c0_71, %c0_72] : memref<2x4x8x8xf32, #tpu.memory_space<vmem>>, vector<1x4x8x8xf32>
    %118 = vector.shape_cast %117 : vector<1x4x8x8xf32> to vector<4x8x8xf32>
    %119 = vector.shape_cast %116 : vector<4x8x8xf32> to vector<1x4x8x8xf32>
    tpu.vector_store %arg11[%c1_69, %c0_70, %c0_71, %c0_72], %119 {strides = array<i32>} : memref<2x4x8x8xf32, #tpu.memory_space<vmem>>, vector<1x4x8x8xf32>,
    "tpu.trace_start"() <{level = 10 : i32, message = "hqk,hkd->hqd"}> : () -> ()
    %cst_73 = arith.constant dense<0.000000e+00> : vector<4x8x8xf32>
    %120 = tpu.matmul %116, %94, %cst_73 {dimension_numbers = #tpu.dot_dimension_numbers<[2], [1], [1], [2], [0, 0, 0, 1, 1, 2], [0], [0]>} : vector<4x8x8xf32>, vector<4x8x8xf32>, vector<4x8x8xf32> -> vector<4x8x8xf32>
    "tpu.trace_stop"() : () -> ()
    %121 = tpu.transpose %120, [1, 0, 2] : vector<4x8x8xf32> -> vector<8x4x8xf32>
    %122 = vector.shape_cast %121 : vector<8x4x8xf32> to vector<8x32xf32>
    %cst_74 = arith.constant dense<0.000000e+00> : vector<8x32xf32>
    %123 = tpu.matmul %122, %6, %cst_74 {dimension_numbers = #tpu.dot_dimension_numbers<[1], [0], [0], [1], [0, 0, 1, 1], [], []>} : vector<8x32xf32>, vector<32x32xf32>, vector<8x32xf32> -> vector<8x32xf32>
    %124 = vector.broadcast %7 : vector<1x32xf32> to vector<8x32xf32>
    %125 = arith.addf %123, %124 : vector<8x32xf32>
    %126 = arith.addf %81, %125 : vector<8x32xf32>
    %cst_75 = arith.constant dense<0.000000e+00> : vector<8xf32>
    %127 = vector.multi_reduction <add>, %126, %cst_75 [1] : vector<8x32xf32> to vector<8xf32>
    %128 = vector.shape_cast %127 : vector<8xf32> to vector<8x1xf32>
    %cst_76 = arith.constant 3.200000e+01 : f32
    %129 = vector.broadcast %cst_76 : f32 to vector<8x1xf32>
    %130 = arith.divf %128, %129 : vector<8x1xf32>
    %131 = vector.broadcast %130 : vector<8x1xf32> to vector<8x32xf32>
    %132 = arith.subf %126, %131 : vector<8x32xf32>
    %133 = arith.mulf %132, %132 : vector<8x32xf32>
    %cst_77 = arith.constant dense<0.000000e+00> : vector<8xf32>
    %134 = vector.multi_reduction <add>, %133, %cst_77 [1] : vector<8x32xf32> to vector<8xf32>
    %135 = vector.shape_cast %134 : vector<8xf32> to vector<8x1xf32>
    %cst_78 = arith.constant 3.200000e+01 : f32
    %136 = vector.broadcast %cst_78 : f32 to vector<8x1xf32>
    %137 = arith.divf %135, %136 : vector<8x1xf32>
    %cst_79 = arith.constant 9.99999974E-6 : f32
    %138 = vector.broadcast %cst_79 : f32 to vector<8x1xf32>
    %139 = arith.addf %137, %138 : vector<8x1xf32>
    %140 = math.rsqrt %139 : vector<8x1xf32>
    %141 = vector.broadcast %140 : vector<8x1xf32> to vector<8x32xf32>
    %142 = arith.mulf %132, %141 : vector<8x32xf32>
    %143 = vector.broadcast %8 : vector<1x32xf32> to vector<8x32xf32>
    %144 = arith.mulf %142, %143 : vector<8x32xf32>
    %145 = vector.broadcast %9 : vector<1x32xf32> to vector<8x32xf32>
    %146 = arith.addf %144, %145 : vector<8x32xf32>
    %c1_80 = arith.constant 1 : index
    %c0_81 = arith.constant 0 : index
    %c0_82 = arith.constant 0 : index
    %147 = vector.load %arg10[%c1_80, %c0_81, %c0_82] : memref<2x8x32xf32, #tpu.memory_space<vmem>>, vector<1x8x32xf32>
    %148 = vector.shape_cast %147 : vector<1x8x32xf32> to vector<8x32xf32>
    %149 = vector.shape_cast %146 : vector<8x32xf32> to vector<1x8x32xf32>
    tpu.vector_store %arg10[%c1_80, %c0_81, %c0_82], %149 {strides = array<i32>} : memref<2x8x32xf32, #tpu.memory_space<vmem>>, vector<1x8x32xf32>,
    return
  }
  func.func @transform_0(%arg0: i32) -> (i32, i32, i32) {
    %c0_i32 = arith.constant 0 : i32
    %c0_i32_0 = arith.constant 0 : i32
    %c0_i32_1 = arith.constant 0 : i32
    return %arg0, %c0_i32, %c0_i32_0 : i32, i32, i32
  }
  func.func @transform_1(%arg0: i32) -> (i32, i32, i32) {
    %c0_i32 = arith.constant 0 : i32
    %c0_i32_0 = arith.constant 0 : i32
    %c0_i32_1 = arith.constant 0 : i32
    return %arg0, %c0_i32, %c0_i32_0 : i32, i32, i32
  }
  func.func @transform_2(%arg0: i32) -> (i32, i32, i32) {
    %c0_i32 = arith.constant 0 : i32
    %c0_i32_0 = arith.constant 0 : i32
    %c0_i32_1 = arith.constant 0 : i32
    return %arg0, %c0_i32, %c0_i32_0 : i32, i32, i32
  }
  func.func @transform_3(%arg0: i32) -> (i32, i32, i32) {
    %c0_i32 = arith.constant 0 : i32
    %c0_i32_0 = arith.constant 0 : i32
    %c0_i32_1 = arith.constant 0 : i32
    return %arg0, %c0_i32, %c0_i32_0 : i32, i32, i32
  }
  func.func @transform_4(%arg0: i32) -> (i32, i32, i32) {
    %c0_i32 = arith.constant 0 : i32
    %c0_i32_0 = arith.constant 0 : i32
    %c0_i32_1 = arith.constant 0 : i32
    %c0_i32_2 = arith.constant 0 : i32
    return %c0_i32, %c0_i32_0, %c0_i32_1 : i32, i32, i32
  }
  func.func @transform_5(%arg0: i32) -> (i32, i32) {
    %c0_i32 = arith.constant 0 : i32
    %c0_i32_0 = arith.constant 0 : i32
    %c0_i32_1 = arith.constant 0 : i32
    return %c0_i32, %c0_i32_0 : i32, i32
  }
  func.func @transform_6(%arg0: i32) -> (i32, i32) {
    %c0_i32 = arith.constant 0 : i32
    %c0_i32_0 = arith.constant 0 : i32
    %c0_i32_1 = arith.constant 0 : i32
    return %c0_i32, %c0_i32_0 : i32, i32
  }
  func.func @transform_7(%arg0: i32) -> (i32, i32) {
    %c0_i32 = arith.constant 0 : i32
    %c0_i32_0 = arith.constant 0 : i32
    %c0_i32_1 = arith.constant 0 : i32
    return %c0_i32, %c0_i32_0 : i32, i32
  }
  func.func @transform_8(%arg0: i32) -> (i32, i32) {
    %c0_i32 = arith.constant 0 : i32
    %c0_i32_0 = arith.constant 0 : i32
    %c0_i32_1 = arith.constant 0 : i32
    return %c0_i32, %c0_i32_0 : i32, i32
  }
  func.func @transform_9(%arg0: i32) -> (i32, i32, i32) {
    %c0_i32 = arith.constant 0 : i32
    %c0_i32_0 = arith.constant 0 : i32
    %c0_i32_1 = arith.constant 0 : i32
    return %arg0, %c0_i32, %c0_i32_0 : i32, i32, i32
  }
  func.func @transform_10(%arg0: i32) -> (i32, i32, i32, i32) {
    %c0_i32 = arith.constant 0 : i32
    %c0_i32_0 = arith.constant 0 : i32
    %c0_i32_1 = arith.constant 0 : i32
    %c0_i32_2 = arith.constant 0 : i32
    return %arg0, %c0_i32, %c0_i32_0, %c0_i32_1 : i32, i32, i32, i32
  }
}

module attributes {stable_mosaic.version = 11 : i64} {
  func.func @kernel(%arg0: i32, %arg1: memref<2x8x32xf32, #tpu.memory_space<vmem>>, %arg2: memref<32x64xf32, #tpu.memory_space<vmem>>, %arg3: memref<1x64xf32, #tpu.memory_space<vmem>>, %arg4: memref<2x8x64xf32, #tpu.memory_space<vmem>>) attributes {dimension_semantics = [#tpu.dimension_semantics<parallel>], iteration_bounds = array<i64: 1>, scalar_prefetch = 0 : i64, scratch_operands = 0 : i64, tpu.core_type = #tpu.core_type<tc>, window_params = [{transform_indices = @transform_0, window_bounds = array<i64: 2, 8, 32>}, {pipeline_mode = #tpu.pipeline_mode<synchronous>, transform_indices = @transform_1, window_bounds = array<i64: 32, 64>}, {pipeline_mode = #tpu.pipeline_mode<synchronous>, transform_indices = @transform_2, window_bounds = array<i64: 1, 64>}, {transform_indices = @transform_3, window_bounds = array<i64: 2, 8, 64>}]} {
    %c0 = arith.constant 0 : index
    %c0_0 = arith.constant 0 : index
    %0 = vector.load %arg2[%c0, %c0_0] : memref<32x64xf32, #tpu.memory_space<vmem>>, vector<32x64xf32>
    %c0_1 = arith.constant 0 : index
    %c0_2 = arith.constant 0 : index
    %1 = vector.load %arg3[%c0_1, %c0_2] : memref<1x64xf32, #tpu.memory_space<vmem>>, vector<1x64xf32>
    %c0_3 = arith.constant 0 : index
    %c0_4 = arith.constant 0 : index
    %c0_5 = arith.constant 0 : index
    %2 = vector.load %arg1[%c0_3, %c0_4, %c0_5] : memref<2x8x32xf32, #tpu.memory_space<vmem>>, vector<1x8x32xf32>
    %3 = vector.shape_cast %2 : vector<1x8x32xf32> to vector<8x32xf32>
    %cst = arith.constant dense<0.000000e+00> : vector<8x64xf32>
    %4 = tpu.matmul %3, %0, %cst {dimension_numbers = #tpu.dot_dimension_numbers<[1], [0], [0], [1], [0, 0, 1, 1], [], []>} : vector<8x32xf32>, vector<32x64xf32>, vector<8x64xf32> -> vector<8x64xf32>
    %5 = vector.broadcast %1 : vector<1x64xf32> to vector<8x64xf32>
    %6 = arith.addf %4, %5 : vector<8x64xf32>
    %c0_6 = arith.constant 0 : index
    %c0_7 = arith.constant 0 : index
    %c0_8 = arith.constant 0 : index
    %7 = vector.load %arg4[%c0_6, %c0_7, %c0_8] : memref<2x8x64xf32, #tpu.memory_space<vmem>>, vector<1x8x64xf32>
    %8 = vector.shape_cast %7 : vector<1x8x64xf32> to vector<8x64xf32>
    %9 = vector.shape_cast %6 : vector<8x64xf32> to vector<1x8x64xf32>
    tpu.vector_store %arg4[%c0_6, %c0_7, %c0_8], %9 {strides = array<i32>} : memref<2x8x64xf32, #tpu.memory_space<vmem>>, vector<1x8x64xf32>,
    %c1 = arith.constant 1 : index
    %c0_9 = arith.constant 0 : index
    %c0_10 = arith.constant 0 : index
    %10 = vector.load %arg1[%c1, %c0_9, %c0_10] : memref<2x8x32xf32, #tpu.memory_space<vmem>>, vector<1x8x32xf32>
    %11 = vector.shape_cast %10 : vector<1x8x32xf32> to vector<8x32xf32>
    %cst_11 = arith.constant dense<0.000000e+00> : vector<8x64xf32>
    %12 = tpu.matmul %11, %0, %cst_11 {dimension_numbers = #tpu.dot_dimension_numbers<[1], [0], [0], [1], [0, 0, 1, 1], [], []>} : vector<8x32xf32>, vector<32x64xf32>, vector<8x64xf32> -> vector<8x64xf32>
    %13 = vector.broadcast %1 : vector<1x64xf32> to vector<8x64xf32>
    %14 = arith.addf %12, %13 : vector<8x64xf32>
    %c1_12 = arith.constant 1 : index
    %c0_13 = arith.constant 0 : index
    %c0_14 = arith.constant 0 : index
    %15 = vector.load %arg4[%c1_12, %c0_13, %c0_14] : memref<2x8x64xf32, #tpu.memory_space<vmem>>, vector<1x8x64xf32>
    %16 = vector.shape_cast %15 : vector<1x8x64xf32> to vector<8x64xf32>
    %17 = vector.shape_cast %14 : vector<8x64xf32> to vector<1x8x64xf32>
    tpu.vector_store %arg4[%c1_12, %c0_13, %c0_14], %17 {strides = array<i32>} : memref<2x8x64xf32, #tpu.memory_space<vmem>>, vector<1x8x64xf32>,
    return
  }
  func.func @transform_0(%arg0: i32) -> (i32, i32, i32) {
    %c0_i32 = arith.constant 0 : i32
    %c0_i32_0 = arith.constant 0 : i32
    %c0_i32_1 = arith.constant 0 : i32
    return %arg0, %c0_i32, %c0_i32_0 : i32, i32, i32
  }
  func.func @transform_1(%arg0: i32) -> (i32, i32) {
    %c0_i32 = arith.constant 0 : i32
    %c0_i32_0 = arith.constant 0 : i32
    %c0_i32_1 = arith.constant 0 : i32
    return %c0_i32, %c0_i32_0 : i32, i32
  }
  func.func @transform_2(%arg0: i32) -> (i32, i32) {
    %c0_i32 = arith.constant 0 : i32
    %c0_i32_0 = arith.constant 0 : i32
    %c0_i32_1 = arith.constant 0 : i32
    return %c0_i32, %c0_i32_0 : i32, i32
  }
  func.func @transform_3(%arg0: i32) -> (i32, i32, i32) {
    %c0_i32 = arith.constant 0 : i32
    %c0_i32_0 = arith.constant 0 : i32
    %c0_i32_1 = arith.constant 0 : i32
    return %arg0, %c0_i32, %c0_i32_0 : i32, i32, i32
  }
}

module attributes {stable_mosaic.version = 11 : i64} {
  func.func @kernel(%arg0: i32, %arg1: memref<2x8x32xf32, #tpu.memory_space<vmem>>, %arg2: memref<2x8x32xf32, #tpu.memory_space<vmem>>, %arg3: memref<2x8x32xf32, #tpu.memory_space<vmem>>, %arg4: memref<3x32x32xf32, #tpu.memory_space<vmem>>, %arg5: memref<32x32xf32, #tpu.memory_space<vmem>>, %arg6: memref<1x32xf32, #tpu.memory_space<vmem>>, %arg7: memref<1x32xf32, #tpu.memory_space<vmem>>, %arg8: memref<1x32xf32, #tpu.memory_space<vmem>>, %arg9: memref<2x8x32xf32, #tpu.memory_space<vmem>>, %arg10: memref<2x4x8x8xf32, #tpu.memory_space<vmem>>) attributes {dimension_semantics = [#tpu.dimension_semantics<parallel>], iteration_bounds = array<i64: 1>, scalar_prefetch = 0 : i64, scratch_operands = 0 : i64, tpu.core_type = #tpu.core_type<tc>, window_params = [{transform_indices = @transform_0, window_bounds = array<i64: 2, 8, 32>}, {transform_indices = @transform_1, window_bounds = array<i64: 2, 8, 32>}, {transform_indices = @transform_2, window_bounds = array<i64: 2, 8, 32>}, {pipeline_mode = #tpu.pipeline_mode<synchronous>, transform_indices = @transform_3, window_bounds = array<i64: 3, 32, 32>}, {pipeline_mode = #tpu.pipeline_mode<synchronous>, transform_indices = @transform_4, window_bounds = array<i64: 32, 32>}, {pipeline_mode = #tpu.pipeline_mode<synchronous>, transform_indices = @transform_5, window_bounds = array<i64: 1, 32>}, {pipeline_mode = #tpu.pipeline_mode<synchronous>, transform_indices = @transform_6, window_bounds = array<i64: 1, 32>}, {pipeline_mode = #tpu.pipeline_mode<synchronous>, transform_indices = @transform_7, window_bounds = array<i64: 1, 32>}, {transform_indices = @transform_8, window_bounds = array<i64: 2, 8, 32>}, {transform_indices = @transform_9, window_bounds = array<i64: 2, 4, 8, 8>}]} {
    %c0 = arith.constant 0 : index
    %c0_0 = arith.constant 0 : index
    %c0_1 = arith.constant 0 : index
    %0 = vector.load %arg4[%c0, %c0_0, %c0_1] : memref<3x32x32xf32, #tpu.memory_space<vmem>>, vector<1x32x32xf32>
    %1 = vector.shape_cast %0 : vector<1x32x32xf32> to vector<32x32xf32>
    %c1 = arith.constant 1 : index
    %c0_2 = arith.constant 0 : index
    %c0_3 = arith.constant 0 : index
    %2 = vector.load %arg4[%c1, %c0_2, %c0_3] : memref<3x32x32xf32, #tpu.memory_space<vmem>>, vector<1x32x32xf32>
    %3 = vector.shape_cast %2 : vector<1x32x32xf32> to vector<32x32xf32>
    %c2 = arith.constant 2 : index
    %c0_4 = arith.constant 0 : index
    %c0_5 = arith.constant 0 : index
    %4 = vector.load %arg4[%c2, %c0_4, %c0_5] : memref<3x32x32xf32, #tpu.memory_space<vmem>>, vector<1x32x32xf32>
    %5 = vector.shape_cast %4 : vector<1x32x32xf32> to vector<32x32xf32>
    %c0_6 = arith.constant 0 : index
    %c0_7 = arith.constant 0 : index
    %6 = vector.load %arg5[%c0_6, %c0_7] : memref<32x32xf32, #tpu.memory_space<vmem>>, vector<32x32xf32>
    %c0_8 = arith.constant 0 : index
    %c0_9 = arith.constant 0 : index
    %7 = vector.load %arg6[%c0_8, %c0_9] : memref<1x32xf32, #tpu.memory_space<vmem>>, vector<1x32xf32>
    %c0_10 = arith.constant 0 : index
    %c0_11 = arith.constant 0 : index
    %8 = vector.load %arg7[%c0_10, %c0_11] : memref<1x32xf32, #tpu.memory_space<vmem>>, vector<1x32xf32>
    %c0_12 = arith.constant 0 : index
    %c0_13 = arith.constant 0 : index
    %9 = vector.load %arg8[%c0_12, %c0_13] : memref<1x32xf32, #tpu.memory_space<vmem>>, vector<1x32xf32>
    %c0_14 = arith.constant 0 : index
    %c0_15 = arith.constant 0 : index
    %c0_16 = arith.constant 0 : index
    %10 = vector.load %arg1[%c0_14, %c0_15, %c0_16] : memref<2x8x32xf32, #tpu.memory_space<vmem>>, vector<1x8x32xf32>
    %11 = vector.shape_cast %10 : vector<1x8x32xf32> to vector<8x32xf32>
    %c0_17 = arith.constant 0 : index
    %c0_18 = arith.constant 0 : index
    %c0_19 = arith.constant 0 : index
    %12 = vector.load %arg2[%c0_17, %c0_18, %c0_19] : memref<2x8x32xf32, #tpu.memory_space<vmem>>, vector<1x8x32xf32>
    %13 = vector.shape_cast %12 : vector<1x8x32xf32> to vector<8x32xf32>
    %c0_20 = arith.constant 0 : index
    %c0_21 = arith.constant 0 : index
    %c0_22 = arith.constant 0 : index
    %14 = vector.load %arg3[%c0_20, %c0_21, %c0_22] : memref<2x8x32xf32, #tpu.memory_space<vmem>>, vector<1x8x32xf32>
    %15 = vector.shape_cast %14 : vector<1x8x32xf32> to vector<8x32xf32>
    %cst = arith.constant dense<0.000000e+00> : vector<8x32xf32>
    %16 = tpu.matmul %11, %1, %cst {dimension_numbers = #tpu.dot_dimension_numbers<[1], [0], [0], [1], [0, 0, 1, 1], [], []>} : vector<8x32xf32>, vector<32x32xf32>, vector<8x32xf32> -> vector<8x32xf32>
    %cst_23 = arith.constant dense<0.000000e+00> : vector<8x32xf32>
    %17 = tpu.matmul %13, %3, %cst_23 {dimension_numbers = #tpu.dot_dimension_numbers<[1], [0], [0], [1], [0, 0, 1, 1], [], []>} : vector<8x32xf32>, vector<32x32xf32>, vector<8x32xf32> -> vector<8x32xf32>
    %cst_24 = arith.constant dense<0.000000e+00> : vector<8x32xf32>
    %18 = tpu.matmul %15, %5, %cst_24 {dimension_numbers = #tpu.dot_dimension_numbers<[1], [0], [0], [1], [0, 0, 1, 1], [], []>} : vector<8x32xf32>, vector<32x32xf32>, vector<8x32xf32> -> vector<8x32xf32>
    %19 = vector.shape_cast %16 : vector<8x32xf32> to vector<8x4x8xf32>
    %20 = tpu.transpose %19, [1, 0, 2] : vector<8x4x8xf32> -> vector<4x8x8xf32>
    %21 = vector.shape_cast %17 : vector<8x32xf32> to vector<8x4x8xf32>
    %22 = tpu.transpose %21, [1, 0, 2] : vector<8x4x8xf32> -> vector<4x8x8xf32>
    %23 = vector.shape_cast %18 : vector<8x32xf32> to vector<8x4x8xf32>
    %24 = tpu.transpose %23, [1, 0, 2] : vector<8x4x8xf32> -> vector<4x8x8xf32>
    "tpu.trace_start"() <{level = 10 : i32, message = "hqd,hkd->hqk"}> : () -> ()
    %cst_25 = arith.constant dense<0.000000e+00> : vector<4x8x8xf32>
    %25 = tpu.matmul %20, %22, %cst_25 {dimension_numbers = #tpu.dot_dimension_numbers<[2], [2], [1], [1], [0, 0, 0, 1, 1, 1], [0], [0]>} : vector<4x8x8xf32>, vector<4x8x8xf32>, vector<4x8x8xf32> -> vector<4x8x8xf32>
    "tpu.trace_stop"() : () -> ()
    %cst_26 = arith.constant 0.176776692 : f32
    %26 = vector.broadcast %cst_26 : f32 to vector<4x8x8xf32>
    %27 = arith.mulf %25, %26 : vector<4x8x8xf32>
    %cst_27 = arith.constant dense<0xFF800000> : vector<4x8xf32>
    %28 = vector.multi_reduction <maximumf>, %27, %cst_27 [2] : vector<4x8x8xf32> to vector<4x8xf32>
    %29 = vector.shape_cast %28 : vector<4x8xf32> to vector<4x8x1xf32>
    %30 = vector.broadcast %29 : vector<4x8x1xf32> to vector<4x8x8xf32>
    %31 = arith.subf %27, %30 : vector<4x8x8xf32>
    %32 = math.exp %31 : vector<4x8x8xf32>
    %cst_28 = arith.constant dense<0.000000e+00> : vector<4x8xf32>
    %33 = vector.multi_reduction <add>, %32, %cst_28 [2] : vector<4x8x8xf32> to vector<4x8xf32>
    %34 = vector.shape_cast %33 : vector<4x8xf32> to vector<4x8x1xf32>
    %35 = tpu.reciprocal %34 : vector<4x8x1xf32> -> vector<4x8x1xf32>
    %36 = vector.broadcast %35 : vector<4x8x1xf32> to vector<4x8x8xf32>
    %37 = arith.mulf %32, %36 : vector<4x8x8xf32>
    %c0_29 = arith.constant 0 : index
    %c0_30 = arith.constant 0 : index
    %c0_31 = arith.constant 0 : index
    %c0_32 = arith.constant 0 : index
    %38 = vector.load %arg10[%c0_29, %c0_30, %c0_31, %c0_32] : memref<2x4x8x8xf32, #tpu.memory_space<vmem>>, vector<1x4x8x8xf32>
    %39 = vector.shape_cast %38 : vector<1x4x8x8xf32> to vector<4x8x8xf32>
    %40 = vector.shape_cast %37 : vector<4x8x8xf32> to vector<1x4x8x8xf32>
    tpu.vector_store %arg10[%c0_29, %c0_30, %c0_31, %c0_32], %40 {strides = array<i32>} : memref<2x4x8x8xf32, #tpu.memory_space<vmem>>, vector<1x4x8x8xf32>,
    "tpu.trace_start"() <{level = 10 : i32, message = "hqk,hkd->hqd"}> : () -> ()
    %cst_33 = arith.constant dense<0.000000e+00> : vector<4x8x8xf32>
    %41 = tpu.matmul %37, %24, %cst_33 {dimension_numbers = #tpu.dot_dimension_numbers<[2], [1], [1], [2], [0, 0, 0, 1, 1, 2], [0], [0]>} : vector<4x8x8xf32>, vector<4x8x8xf32>, vector<4x8x8xf32> -> vector<4x8x8xf32>
    "tpu.trace_stop"() : () -> ()
    %42 = tpu.transpose %41, [1, 0, 2] : vector<4x8x8xf32> -> vector<8x4x8xf32>
    %43 = vector.shape_cast %42 : vector<8x4x8xf32> to vector<8x32xf32>
    %cst_34 = arith.constant dense<0.000000e+00> : vector<8x32xf32>
    %44 = tpu.matmul %43, %6, %cst_34 {dimension_numbers = #tpu.dot_dimension_numbers<[1], [0], [0], [1], [0, 0, 1, 1], [], []>} : vector<8x32xf32>, vector<32x32xf32>, vector<8x32xf32> -> vector<8x32xf32>
    %45 = vector.broadcast %7 : vector<1x32xf32> to vector<8x32xf32>
    %46 = arith.addf %44, %45 : vector<8x32xf32>
    %47 = arith.addf %11, %46 : vector<8x32xf32>
    %cst_35 = arith.constant dense<0.000000e+00> : vector<8xf32>
    %48 = vector.multi_reduction <add>, %47, %cst_35 [1] : vector<8x32xf32> to vector<8xf32>
    %49 = vector.shape_cast %48 : vector<8xf32> to vector<8x1xf32>
    %cst_36 = arith.constant 3.200000e+01 : f32
    %50 = vector.broadcast %cst_36 : f32 to vector<8x1xf32>
    %51 = arith.divf %49, %50 : vector<8x1xf32>
    %52 = vector.broadcast %51 : vector<8x1xf32> to vector<8x32xf32>
    %53 = arith.subf %47, %52 : vector<8x32xf32>
    %54 = arith.mulf %53, %53 : vector<8x32xf32>
    %cst_37 = arith.constant dense<0.000000e+00> : vector<8xf32>
    %55 = vector.multi_reduction <add>, %54, %cst_37 [1] : vector<8x32xf32> to vector<8xf32>
    %56 = vector.shape_cast %55 : vector<8xf32> to vector<8x1xf32>
    %cst_38 = arith.constant 3.200000e+01 : f32
    %57 = vector.broadcast %cst_38 : f32 to vector<8x1xf32>
    %58 = arith.divf %56, %57 : vector<8x1xf32>
    %cst_39 = arith.constant 9.99999974E-6 : f32
    %59 = vector.broadcast %cst_39 : f32 to vector<8x1xf32>
    %60 = arith.addf %58, %59 : vector<8x1xf32>
    %61 = math.rsqrt %60 : vector<8x1xf32>
    %62 = vector.broadcast %61 : vector<8x1xf32> to vector<8x32xf32>
    %63 = arith.mulf %53, %62 : vector<8x32xf32>
    %64 = vector.broadcast %8 : vector<1x32xf32> to vector<8x32xf32>
    %65 = arith.mulf %63, %64 : vector<8x32xf32>
    %66 = vector.broadcast %9 : vector<1x32xf32> to vector<8x32xf32>
    %67 = arith.addf %65, %66 : vector<8x32xf32>
    %c0_40 = arith.constant 0 : index
    %c0_41 = arith.constant 0 : index
    %c0_42 = arith.constant 0 : index
    %68 = vector.load %arg9[%c0_40, %c0_41, %c0_42] : memref<2x8x32xf32, #tpu.memory_space<vmem>>, vector<1x8x32xf32>
    %69 = vector.shape_cast %68 : vector<1x8x32xf32> to vector<8x32xf32>
    %70 = vector.shape_cast %67 : vector<8x32xf32> to vector<1x8x32xf32>
    tpu.vector_store %arg9[%c0_40, %c0_41, %c0_42], %70 {strides = array<i32>} : memref<2x8x32xf32, #tpu.memory_space<vmem>>, vector<1x8x32xf32>,
    %c1_43 = arith.constant 1 : index
    %c0_44 = arith.constant 0 : index
    %c0_45 = arith.constant 0 : index
    %71 = vector.load %arg1[%c1_43, %c0_44, %c0_45] : memref<2x8x32xf32, #tpu.memory_space<vmem>>, vector<1x8x32xf32>
    %72 = vector.shape_cast %71 : vector<1x8x32xf32> to vector<8x32xf32>
    %c1_46 = arith.constant 1 : index
    %c0_47 = arith.constant 0 : index
    %c0_48 = arith.constant 0 : index
    %73 = vector.load %arg2[%c1_46, %c0_47, %c0_48] : memref<2x8x32xf32, #tpu.memory_space<vmem>>, vector<1x8x32xf32>
    %74 = vector.shape_cast %73 : vector<1x8x32xf32> to vector<8x32xf32>
    %c1_49 = arith.constant 1 : index
    %c0_50 = arith.constant 0 : index
    %c0_51 = arith.constant 0 : index
    %75 = vector.load %arg3[%c1_49, %c0_50, %c0_51] : memref<2x8x32xf32, #tpu.memory_space<vmem>>, vector<1x8x32xf32>
    %76 = vector.shape_cast %75 : vector<1x8x32xf32> to vector<8x32xf32>
    %cst_52 = arith.constant dense<0.000000e+00> : vector<8x32xf32>
    %77 = tpu.matmul %72, %1, %cst_52 {dimension_numbers = #tpu.dot_dimension_numbers<[1], [0], [0], [1], [0, 0, 1, 1], [], []>} : vector<8x32xf32>, vector<32x32xf32>, vector<8x32xf32> -> vector<8x32xf32>
    %cst_53 = arith.constant dense<0.000000e+00> : vector<8x32xf32>
    %78 = tpu.matmul %74, %3, %cst_53 {dimension_numbers = #tpu.dot_dimension_numbers<[1], [0], [0], [1], [0, 0, 1, 1], [], []>} : vector<8x32xf32>, vector<32x32xf32>, vector<8x32xf32> -> vector<8x32xf32>
    %cst_54 = arith.constant dense<0.000000e+00> : vector<8x32xf32>
    %79 = tpu.matmul %76, %5, %cst_54 {dimension_numbers = #tpu.dot_dimension_numbers<[1], [0], [0], [1], [0, 0, 1, 1], [], []>} : vector<8x32xf32>, vector<32x32xf32>, vector<8x32xf32> -> vector<8x32xf32>
    %80 = vector.shape_cast %77 : vector<8x32xf32> to vector<8x4x8xf32>
    %81 = tpu.transpose %80, [1, 0, 2] : vector<8x4x8xf32> -> vector<4x8x8xf32>
    %82 = vector.shape_cast %78 : vector<8x32xf32> to vector<8x4x8xf32>
    %83 = tpu.transpose %82, [1, 0, 2] : vector<8x4x8xf32> -> vector<4x8x8xf32>
    %84 = vector.shape_cast %79 : vector<8x32xf32> to vector<8x4x8xf32>
    %85 = tpu.transpose %84, [1, 0, 2] : vector<8x4x8xf32> -> vector<4x8x8xf32>
    "tpu.trace_start"() <{level = 10 : i32, message = "hqd,hkd->hqk"}> : () -> ()
    %cst_55 = arith.constant dense<0.000000e+00> : vector<4x8x8xf32>
    %86 = tpu.matmul %81, %83, %cst_55 {dimension_numbers = #tpu.dot_dimension_numbers<[2], [2], [1], [1], [0, 0, 0, 1, 1, 1], [0], [0]>} : vector<4x8x8xf32>, vector<4x8x8xf32>, vector<4x8x8xf32> -> vector<4x8x8xf32>
    "tpu.trace_stop"() : () -> ()
    %cst_56 = arith.constant 0.176776692 : f32
    %87 = vector.broadcast %cst_56 : f32 to vector<4x8x8xf32>
    %88 = arith.mulf %86, %87 : vector<4x8x8xf32>
    %cst_57 = arith.constant dense<0xFF800000> : vector<4x8xf32>
    %89 = vector.multi_reduction <maximumf>, %88, %cst_57 [2] : vector<4x8x8xf32> to vector<4x8xf32>
    %90 = vector.shape_cast %89 : vector<4x8xf32> to vector<4x8x1xf32>
    %91 = vector.broadcast %90 : vector<4x8x1xf32> to vector<4x8x8xf32>
    %92 = arith.subf %88, %91 : vector<4x8x8xf32>
    %93 = math.exp %92 : vector<4x8x8xf32>
    %cst_58 = arith.constant dense<0.000000e+00> : vector<4x8xf32>
    %94 = vector.multi_reduction <add>, %93, %cst_58 [2] : vector<4x8x8xf32> to vector<4x8xf32>
    %95 = vector.shape_cast %94 : vector<4x8xf32> to vector<4x8x1xf32>
    %96 = tpu.reciprocal %95 : vector<4x8x1xf32> -> vector<4x8x1xf32>
    %97 = vector.broadcast %96 : vector<4x8x1xf32> to vector<4x8x8xf32>
    %98 = arith.mulf %93, %97 : vector<4x8x8xf32>
    %c1_59 = arith.constant 1 : index
    %c0_60 = arith.constant 0 : index
    %c0_61 = arith.constant 0 : index
    %c0_62 = arith.constant 0 : index
    %99 = vector.load %arg10[%c1_59, %c0_60, %c0_61, %c0_62] : memref<2x4x8x8xf32, #tpu.memory_space<vmem>>, vector<1x4x8x8xf32>
    %100 = vector.shape_cast %99 : vector<1x4x8x8xf32> to vector<4x8x8xf32>
    %101 = vector.shape_cast %98 : vector<4x8x8xf32> to vector<1x4x8x8xf32>
    tpu.vector_store %arg10[%c1_59, %c0_60, %c0_61, %c0_62], %101 {strides = array<i32>} : memref<2x4x8x8xf32, #tpu.memory_space<vmem>>, vector<1x4x8x8xf32>,
    "tpu.trace_start"() <{level = 10 : i32, message = "hqk,hkd->hqd"}> : () -> ()
    %cst_63 = arith.constant dense<0.000000e+00> : vector<4x8x8xf32>
    %102 = tpu.matmul %98, %85, %cst_63 {dimension_numbers = #tpu.dot_dimension_numbers<[2], [1], [1], [2], [0, 0, 0, 1, 1, 2], [0], [0]>} : vector<4x8x8xf32>, vector<4x8x8xf32>, vector<4x8x8xf32> -> vector<4x8x8xf32>
    "tpu.trace_stop"() : () -> ()
    %103 = tpu.transpose %102, [1, 0, 2] : vector<4x8x8xf32> -> vector<8x4x8xf32>
    %104 = vector.shape_cast %103 : vector<8x4x8xf32> to vector<8x32xf32>
    %cst_64 = arith.constant dense<0.000000e+00> : vector<8x32xf32>
    %105 = tpu.matmul %104, %6, %cst_64 {dimension_numbers = #tpu.dot_dimension_numbers<[1], [0], [0], [1], [0, 0, 1, 1], [], []>} : vector<8x32xf32>, vector<32x32xf32>, vector<8x32xf32> -> vector<8x32xf32>
    %106 = vector.broadcast %7 : vector<1x32xf32> to vector<8x32xf32>
    %107 = arith.addf %105, %106 : vector<8x32xf32>
    %108 = arith.addf %72, %107 : vector<8x32xf32>
    %cst_65 = arith.constant dense<0.000000e+00> : vector<8xf32>
    %109 = vector.multi_reduction <add>, %108, %cst_65 [1] : vector<8x32xf32> to vector<8xf32>
    %110 = vector.shape_cast %109 : vector<8xf32> to vector<8x1xf32>
    %cst_66 = arith.constant 3.200000e+01 : f32
    %111 = vector.broadcast %cst_66 : f32 to vector<8x1xf32>
    %112 = arith.divf %110, %111 : vector<8x1xf32>
    %113 = vector.broadcast %112 : vector<8x1xf32> to vector<8x32xf32>
    %114 = arith.subf %108, %113 : vector<8x32xf32>
    %115 = arith.mulf %114, %114 : vector<8x32xf32>
    %cst_67 = arith.constant dense<0.000000e+00> : vector<8xf32>
    %116 = vector.multi_reduction <add>, %115, %cst_67 [1] : vector<8x32xf32> to vector<8xf32>
    %117 = vector.shape_cast %116 : vector<8xf32> to vector<8x1xf32>
    %cst_68 = arith.constant 3.200000e+01 : f32
    %118 = vector.broadcast %cst_68 : f32 to vector<8x1xf32>
    %119 = arith.divf %117, %118 : vector<8x1xf32>
    %cst_69 = arith.constant 9.99999974E-6 : f32
    %120 = vector.broadcast %cst_69 : f32 to vector<8x1xf32>
    %121 = arith.addf %119, %120 : vector<8x1xf32>
    %122 = math.rsqrt %121 : vector<8x1xf32>
    %123 = vector.broadcast %122 : vector<8x1xf32> to vector<8x32xf32>
    %124 = arith.mulf %114, %123 : vector<8x32xf32>
    %125 = vector.broadcast %8 : vector<1x32xf32> to vector<8x32xf32>
    %126 = arith.mulf %124, %125 : vector<8x32xf32>
    %127 = vector.broadcast %9 : vector<1x32xf32> to vector<8x32xf32>
    %128 = arith.addf %126, %127 : vector<8x32xf32>
    %c1_70 = arith.constant 1 : index
    %c0_71 = arith.constant 0 : index
    %c0_72 = arith.constant 0 : index
    %129 = vector.load %arg9[%c1_70, %c0_71, %c0_72] : memref<2x8x32xf32, #tpu.memory_space<vmem>>, vector<1x8x32xf32>
    %130 = vector.shape_cast %129 : vector<1x8x32xf32> to vector<8x32xf32>
    %131 = vector.shape_cast %128 : vector<8x32xf32> to vector<1x8x32xf32>
    tpu.vector_store %arg9[%c1_70, %c0_71, %c0_72], %131 {strides = array<i32>} : memref<2x8x32xf32, #tpu.memory_space<vmem>>, vector<1x8x32xf32>,
    return
  }
  func.func @transform_0(%arg0: i32) -> (i32, i32, i32) {
    %c0_i32 = arith.constant 0 : i32
    %c0_i32_0 = arith.constant 0 : i32
    %c0_i32_1 = arith.constant 0 : i32
    return %arg0, %c0_i32, %c0_i32_0 : i32, i32, i32
  }
  func.func @transform_1(%arg0: i32) -> (i32, i32, i32) {
    %c0_i32 = arith.constant 0 : i32
    %c0_i32_0 = arith.constant 0 : i32
    %c0_i32_1 = arith.constant 0 : i32
    return %arg0, %c0_i32, %c0_i32_0 : i32, i32, i32
  }
  func.func @transform_2(%arg0: i32) -> (i32, i32, i32) {
    %c0_i32 = arith.constant 0 : i32
    %c0_i32_0 = arith.constant 0 : i32
    %c0_i32_1 = arith.constant 0 : i32
    return %arg0, %c0_i32, %c0_i32_0 : i32, i32, i32
  }
  func.func @transform_3(%arg0: i32) -> (i32, i32, i32) {
    %c0_i32 = arith.constant 0 : i32
    %c0_i32_0 = arith.constant 0 : i32
    %c0_i32_1 = arith.constant 0 : i32
    %c0_i32_2 = arith.constant 0 : i32
    return %c0_i32, %c0_i32_0, %c0_i32_1 : i32, i32, i32
  }
  func.func @transform_4(%arg0: i32) -> (i32, i32) {
    %c0_i32 = arith.constant 0 : i32
    %c0_i32_0 = arith.constant 0 : i32
    %c0_i32_1 = arith.constant 0 : i32
    return %c0_i32, %c0_i32_0 : i32, i32
  }
  func.func @transform_5(%arg0: i32) -> (i32, i32) {
    %c0_i32 = arith.constant 0 : i32
    %c0_i32_0 = arith.constant 0 : i32
    %c0_i32_1 = arith.constant 0 : i32
    return %c0_i32, %c0_i32_0 : i32, i32
  }
  func.func @transform_6(%arg0: i32) -> (i32, i32) {
    %c0_i32 = arith.constant 0 : i32
    %c0_i32_0 = arith.constant 0 : i32
    %c0_i32_1 = arith.constant 0 : i32
    return %c0_i32, %c0_i32_0 : i32, i32
  }
  func.func @transform_7(%arg0: i32) -> (i32, i32) {
    %c0_i32 = arith.constant 0 : i32
    %c0_i32_0 = arith.constant 0 : i32
    %c0_i32_1 = arith.constant 0 : i32
    return %c0_i32, %c0_i32_0 : i32, i32
  }
  func.func @transform_8(%arg0: i32) -> (i32, i32, i32) {
    %c0_i32 = arith.constant 0 : i32
    %c0_i32_0 = arith.constant 0 : i32
    %c0_i32_1 = arith.constant 0 : i32
    return %arg0, %c0_i32, %c0_i32_0 : i32, i32, i32
  }
  func.func @transform_9(%arg0: i32) -> (i32, i32, i32, i32) {
    %c0_i32 = arith.constant 0 : i32
    %c0_i32_0 = arith.constant 0 : i32
    %c0_i32_1 = arith.constant 0 : i32
    %c0_i32_2 = arith.constant 0 : i32
    return %arg0, %c0_i32, %c0_i32_0, %c0_i32_1 : i32, i32, i32, i32
  }
}

</mosaic_0001>

<bundles_post_ra>
// kernel: transformer_forward_pallas.21
= control target key start
LH: loop header
LB: loop body
LE: loop exit
PB: predicated region body
PF: predicated region fallthrough
CT: control target
= control target key end

     0   :  { %v259_v1 = vmov 0.0   ;;  %s308_s0 = inlined_call_operand.vmem [shape: f32[2,8,32], index: 0, kind: input, shape index: {}]   ;;  %s309_s1 = inlined_call_operand.vmem [shape: f32[32,64], index: 1, kind: input, shape index: {}]   ;;  %s310_s2 = inlined_call_operand.vmem [shape: f32[1,64], index: 2, kind: input, shape index: {}]   ;;  %s311_s3 = inlined_call_operand.hbm [shape: f32[2,8,64], index: 3, kind: output, shape index: {}]  }
   0x1   :  { %v18_v0 = vld [vmem:[%s309_s1 + $0x18] sm:$0xff]  ;;  %210 = vmatprep.subr.mxu0 %v259_v1  ;;  %221 = vmatprep.subr.mxu1 %v259_v1  ;;  %v17_v2 = vld [vmem:[%s309_s1 + $0x10] sm:$0xff] }
   0x2   :  { %211 = vmatpush3.msra.mxu0 %v18_v0  ;;  %222 = vmatpush3.msra.mxu1 %v18_v0 }
   0x3   :  { %8 = vsyncpa [#allocation3], 0  ;;  %212 = vmatprep.subr.mxu0 %v259_v1  ;;  %223 = vmatprep.subr.mxu1 %v259_v1  ;;  %v16_v3 = vld [vmem:[%s309_s1 + $0x8] sm:$0xff]  ;;  %v15_v4 = vld [vmem:[%s309_s1] sm:$0xff]  ;;  %vm27_vm0 = vcmask 261120   ;;  %vm260_vm1 = vmmov 0  }
   0x4   :  { %213 = vmatpush3.msra.mxu0 %v17_v2  ;;  %224 = vmatpush3.msra.mxu1 %v17_v2  ;;  %v20_v5 = vld [vmem:[%s308_s0] sm:$0xff]  ;;  %v198_v6 = vld [vmem:[%s308_s0 + $0x8] sm:$0xff]  ;;  %s261_s1 = smov [#allocation2]   ;;  %vm101_vm2 = vcmask 523264  }
   0x5   :  { %214 = vmatprep.subr.mxu0 %v259_v1  ;;  %225 = vmatprep.subr.mxu1 %v259_v1  ;;  %s185_s24 = sshll.u32 %s261_s1, 4  ;;  %v196_v7 = vld [vmem:[%s310_s2] ss:$0 sm:$0xff]  ;;  %s186_s24 = int_to_ptr.vmem [resolvable:$true] %s185_s24 }
   0x6   :  { %215 = vmatpush3.msra.mxu0 %v16_v3  ;;  %226 = vmatpush3.msra.mxu1 %v16_v3  ;;  %s237_s0 = scalar_lea.vmem %s186_s24, 256  ;;  %p242_p1 = scmp.lt.s32.totalorder %s186_s24, %s186_s24 }
   0x7   :  { %216 = vmatprep.subr.mxu0 %v259_v1  ;;  %227 = vmatprep.subr.mxu1 %v259_v1  ;;  %p238_p0 = scmp.ne.s32.totalorder %s186_s24, %s237_s0  ;;  %p243_p2 = scmp.lt.s32.totalorder %s237_s0, %s237_s0 }
   0x8   :  { %217 = vmatpush3.msra.mxu0 %v15_v4  ;;  %218 = vmatprep.mubr.msk.f32.mxu0 %vm260_vm1, %v259_v1 }
   0x9   :  { %228 = vmatpush3.msra.mxu1 %v15_v4  ;;  %229 = vmatprep.mubr.msk.f32.mxu1 %vm260_vm1, %v259_v1  ;;  %p244_p3 = por %p243_p2, %p242_p1 }
   0xa   :  { %219 = vmatmul.mubr.msk.f32.vlgmr.msra.gmra.mxu0 %vm27_vm0, %v20_v5  ;;  %230 = vmatmul.mubr.msk.f32.vlgmr.msra.gmra.mxu1 %vm27_vm0, %v198_v6 }
   0xb   :  { %p245_p4 = pnand %p244_p3, %p238_p0 }
  0xca   :  { %v97_v8 = vpop.f32.mrf.mxu0  ;;  %v174_v9 = vpop.f32.mrf.mxu1 }
  0xcb   :  { %v98_v10 = vadd.f32 %v196_v7, %v97_v8  ;;  %v175_v11 = vadd.f32 %v196_v7, %v174_v9 }
  0xcc   :  { %v220_v12 = vpop.f32.mrf.mxu0  ;;  %v231_v13 = vpop.f32.mrf.mxu1 }
  0xcd   :  { %102 = vst.msk [vmem:[#allocation2] sm:$0xff] %vm101_vm2, %v98_v10  ;;  %179 = vst.msk [vmem:[#allocation2 + $0x8] sm:$0xff] %vm101_vm2, %v175_v11 }
  0xce   :  { %248 = shalt.err (!%p245_p4)
}
  0xcf   :  { %s262_s27 = smov 128   ;;  %s263_s28 = smov 8  }
  0xd0   :  { %191 = dma.vmem_to_hbm [thread:$0]  %s186_s24, 256, %s311_s3, [#allocation3], %s262_s27, %s262_s27, %s263_s28  }
  0xd1   :  { %257 = dma.done.wait [#allocation3], 256  }
  0xd2   :  { %258 = vsyncadd [#allocation3], 4294967040 }
  0xd3   :  { %195 = vsyncpa [#allocation3], 1 }

// kernel: transformer_forward_pallas.12
= control target key start
LH: loop header
LB: loop body
LE: loop exit
PB: predicated region body
PF: predicated region fallthrough
CT: control target
= control target key end

     0   :  { %v509_v0 = vmov 0.0   ;;  %vm510_vm0 = vmmov 0   ;;  %vm49_vm1 = vcmask 261120   ;;  %vm130_vm2 = vcmask 523264   ;;  %s659_s1 = inlined_call_operand.vmem [shape: f32[32,64], index: 1, kind: input, shape index: {}]   ;;  %s660_s0 = inlined_call_operand.vmem [shape: f32[2,8,32], index: 0, kind: input, shape index: {}]   ;;  %s661_s3 = inlined_call_operand.vmem [shape: f32[64,32], index: 3, kind: input, shape index: {}]   ;;  %s662_s2 = inlined_call_operand.vmem [shape: f32[1,64], index: 2, kind: input, shape index: {}]   ;;  %s663_s4 = inlined_call_operand.vmem [shape: f32[1,32], index: 4, kind: input, shape index: {}]   ;;  %s664_s5 = inlined_call_operand.vmem [shape: f32[1,32], index: 5, kind: input, shape index: {}]   ;;  %s665_s6 = inlined_call_operand.vmem [shape: f32[1,32], index: 6, kind: input, shape index: {}]   ;;  %s666_s7 = inlined_call_operand.vmem [shape: f32[2,8,32], index: 7, kind: output, shape index: {}]  }
   0x1   :  { %443 = vmatprep.subr.mxu1 %v509_v0  ;;  %v29_v1 = vld [vmem:[%s659_s1 + $0x18] sm:$0xff]  ;;  %473 = vmatprep.subr.mxu0 %v509_v0  ;;  %v28_v2 = vld [vmem:[%s659_s1 + $0x10] sm:$0xff]  ;;  %v27_v3 = vld [vmem:[%s659_s1 + $0x8] sm:$0xff] }
   0x2   :  { %444 = vmatpush3.msra.mxu1 %v29_v1  ;;  %474 = vmatpush3.msra.mxu0 %v29_v1  ;;  %v26_v4 = vld [vmem:[%s659_s1] sm:$0xff]  ;;  %v581_v6 = vld [vmem:[%s660_s0 + $0x8] sm:$0xff]  ;;  %v37_v7 = vld [vmem:[%s661_s3 + $0x38] sm:$0xff] }
   0x3   :  { %445 = vmatprep.subr.mxu1 %v509_v0  ;;  %475 = vmatprep.subr.mxu0 %v509_v0  ;;  %v574_v5 = vld [vmem:[%s660_s0] sm:$0xff]  ;;  %v36_v8 = vld [vmem:[%s661_s3 + $0x30] sm:$0xff]  ;;  %v35_v9 = vld [vmem:[%s661_s3 + $0x28] sm:$0xff] }
   0x4   :  { %446 = vmatpush3.msra.mxu1 %v28_v2  ;;  %476 = vmatpush3.msra.mxu0 %v28_v2  ;;  %v34_v10 = vld [vmem:[%s661_s3 + $0x20] sm:$0xff]  ;;  %v33_v11 = vld [vmem:[%s661_s3 + $0x18] sm:$0xff]  ;;  %v32_v12 = vld [vmem:[%s661_s3 + $0x10] sm:$0xff] }
   0x5   :  { %447 = vmatprep.subr.mxu1 %v509_v0  ;;  %477 = vmatprep.subr.mxu0 %v509_v0  ;;  %v31_v13 = vld [vmem:[%s661_s3 + $0x8] sm:$0xff]  ;;  %v30_v14 = vld [vmem:[%s661_s3] sm:$0xff] }
   0x6   :  { %448 = vmatpush3.msra.mxu1 %v27_v3  ;;  %451 = vmatprep.mubr.msk.f32.mxu1 %vm510_vm0, %v509_v0  ;;  %v405_v15 = vld [vmem:[%s662_s2] ss:$0 sm:$0xff] }
   0x7   :  { %449 = vmatprep.subr.mxu1 %v509_v0  ;;  %478 = vmatpush3.msra.mxu0 %v27_v3  ;;  %v407_v24 = vld [vmem:[%s663_s4] ss:$0 sm:$0xff] }
   0x8   :  { %450 = vmatpush3.msra.mxu1 %v26_v4  ;;  %479 = vmatprep.subr.mxu0 %v509_v0  ;;  %v409_v52 = vld [vmem:[%s664_s5] ss:$0 sm:$0xff] }
   0x9   :  { %452 = vmatmul.mubr.msk.f32.vlgmr.msra.gmra.mxu1 %vm49_vm1, %v574_v5  ;;  %480 = vmatpush3.msra.mxu0 %v26_v4  ;;  %v410_v54 = vld [vmem:[%s665_s6] ss:$0 sm:$0xff] }
   0xa   :  { %481 = vmatprep.mubr.msk.f32.mxu0 %vm510_vm0, %v509_v0  ;;  %454 = vmatprep.subr.mxu1 %v509_v0 }
   0xb   :  { %482 = vmatmul.mubr.msk.f32.vlgmr.msra.gmra.mxu0 %vm49_vm1, %v581_v6  ;;  %455 = vmatpush3.msra.mxu1 %v37_v7 }
   0xc   :  { %456 = vmatprep.subr.mxu1 %v509_v0  ;;  %484 = vmatprep.subr.mxu0 %v509_v0 }
   0xd   :  { %457 = vmatpush3.msra.mxu1 %v36_v8  ;;  %485 = vmatpush3.msra.mxu0 %v37_v7 }
   0xe   :  { %458 = vmatprep.subr.mxu1 %v509_v0  ;;  %486 = vmatprep.subr.mxu0 %v509_v0 }
   0xf   :  { %459 = vmatpush3.msra.mxu1 %v35_v9  ;;  %487 = vmatpush3.msra.mxu0 %v36_v8 }
  0x10   :  { %460 = vmatprep.subr.mxu1 %v509_v0  ;;  %488 = vmatprep.subr.mxu0 %v509_v0 }
  0x11   :  { %461 = vmatpush3.msra.mxu1 %v34_v10  ;;  %489 = vmatpush3.msra.mxu0 %v35_v9 }
  0x12   :  { %462 = vmatprep.subr.mxu1 %v509_v0  ;;  %490 = vmatprep.subr.mxu0 %v509_v0 }
  0x13   :  { %463 = vmatpush3.msra.mxu1 %v33_v11  ;;  %491 = vmatpush3.msra.mxu0 %v34_v10 }
  0x14   :  { %464 = vmatprep.subr.mxu1 %v509_v0  ;;  %492 = vmatprep.subr.mxu0 %v509_v0 }
  0x15   :  { %493 = vmatpush3.msra.mxu0 %v33_v11  ;;  %470 = vmatprep.mubr.msk.f32.mxu1 %vm510_vm0, %v509_v0 }
  0x16   :  { %494 = vmatprep.subr.mxu0 %v509_v0  ;;  %500 = vmatprep.mubr.msk.f32.mxu0 %vm510_vm0, %v509_v0 }
  0x17   :  { %465 = vmatpush3.msra.mxu1 %v32_v12  ;;  %495 = vmatpush3.msra.mxu0 %v32_v12 }
  0x18   :  { %466 = vmatprep.subr.mxu1 %v509_v0  ;;  %496 = vmatprep.subr.mxu0 %v509_v0 }
  0x19   :  { %467 = vmatpush3.msra.mxu1 %v31_v13  ;;  %497 = vmatpush3.msra.mxu0 %v31_v13 }
  0x1a   :  { %468 = vmatprep.subr.mxu1 %v509_v0  ;;  %498 = vmatprep.subr.mxu0 %v509_v0 }
  0x1b   :  { %469 = vmatpush3.msra.mxu1 %v30_v14  ;;  %499 = vmatpush3.msra.mxu0 %v30_v14 }
  0xc9   :  { %v119_v16 = vpop.f32.mrf.mxu1 }
  0xca   :  { %v120_v17 = vadd.f32 %v405_v15, %v119_v16 }
  0xcb   :  { %v453_v18 = vpop.f32.mrf.mxu1  ;;  %v305_v19 = vpop.f32.mrf.mxu0 }
  0xcc   :  { %v123_v20 = vmax.f32 %v120_v17, 0.0  ;;  %v306_v21 = vadd.f32 %v405_v15, %v305_v19 }
  0xcd   :  { %v483_v22 = vpop.f32.mrf.mxu0 }
  0xce   :  { %v309_v23 = vmax.f32 %v306_v21, 0.0  ;;  %471 = vmatmul.mubr.msk.f32.vlgmr.msra.gmra.mxu1 %vm130_vm2, %v123_v20 }
  0xd0   :  { %501 = vmatmul.mubr.msk.f32.vlgmr.msra.gmra.mxu0 %vm130_vm2, %v309_v23 }
 0x18e   :  { %v200_v25 = vpop.f32.mrf.mxu1 }
 0x18f   :  { %v201_v26 = vadd.f32 %v407_v24, %v200_v25 }
 0x190   :  { %v472_v27 = vpop.f32.mrf.mxu1  ;;  %v379_v28 = vpop.f32.mrf.mxu0 }
 0x191   :  { %v380_v29 = vadd.f32 %v407_v24, %v379_v28  ;;  %v204_v30 = vadd.f32 %v201_v26, %v574_v5 }
 0x192   :  { %v502_v31 = vpop.f32.mrf.mxu0 }
 0x193   :  { %v205_v32 = vsel %vm49_vm1, %v204_v30, 0.0  ;;  %v383_v33 = vadd.f32 %v581_v6, %v380_v29 }
 0x194   :  { %206 = vadd.xlane.f32.xlu0 %v205_v32 }
 0x195   :  { %v384_v34 = vsel %vm49_vm1, %v383_v33, 0.0 }
 0x198   :  { %385 = vadd.xlane.f32.xlu0 %v384_v34 }
 0x21d   :  { %v207_v35 = vpop.xlane.xlu0 %206 }
 0x21e   :  { %v209_v36 = vmul.f32 0.03125, %v207_v35 }
 0x220   :  { %v210_v37 = vsub.f32 %v204_v30, %v209_v36 }
 0x221   :  { %v386_v38 = vpop.xlane.xlu0 %385 }
 0x222   :  { %v387_v39 = vmul.f32 0.03125, %v386_v38  ;;  %v211_v40 = vmul.f32 %v210_v37, %v210_v37 }
 0x224   :  { %v388_v41 = vsub.f32 %v383_v33, %v387_v39  ;;  %v212_v42 = vsel %vm49_vm1, %v211_v40, 0.0 }
 0x225   :  { %213 = vadd.xlane.f32.xlu1 %v212_v42 }
 0x226   :  { %v389_v43 = vmul.f32 %v388_v41, %v388_v41 }
 0x228   :  { %v390_v44 = vsel %vm49_vm1, %v389_v43, 0.0 }
 0x229   :  { %391 = vadd.xlane.f32.xlu1 %v390_v44 }
 0x2ae   :  { %v214_v45 = vpop.xlane.xlu1 %213 }
 0x2af   :  { %v215_v46 = vmul.f32 0.03125, %v214_v45 }
 0x2b1   :  { %v216_v47 = vadd.f32 1e-05, %v215_v46 }
 0x2b2   :  { %v392_v48 = vpop.xlane.xlu1 %391 }
 0x2b3   :  { %505 = vrsqrt.f32 %v216_v47  ;;  %v393_v49 = vmul.f32 0.03125, %v392_v48 }
 0x2b5   :  { %v394_v50 = vadd.f32 1e-05, %v393_v49 }
 0x2b7   :  { %507 = vrsqrt.f32 %v394_v50 }
 0x2c0   :  { %v506_v51 = vpop.eup %505 }
 0x2c1   :  { %v218_v53 = vmul.f32 %v506_v51, %v210_v37 }
 0x2c3   :  { %v225_v55 = vmul.f32 %v409_v52, %v218_v53 }
 0x2c4   :  { %v508_v56 = vpop.eup %507 }
 0x2c5   :  { %v232_v57 = vadd.f32 %v410_v54, %v225_v55  ;;  %v396_v58 = vmul.f32 %v508_v56, %v388_v41 }
 0x2c7   :  { %233 = vst.msk [vmem:[%s666_s7] sm:$0xff] %vm49_vm1, %v232_v57  ;;  %v397_v59 = vmul.f32 %v409_v52, %v396_v58 }
 0x2c9   :  { %v398_v60 = vadd.f32 %v410_v54, %v397_v59 }
 0x2cb   :  { %414 = vst.msk [vmem:[%s666_s7 + $0x8] sm:$0xff] %vm49_vm1, %v398_v60 }

// kernel: transformer_forward_pallas.16
= control target key start
LH: loop header
LB: loop body
LE: loop exit
PB: predicated region body
PF: predicated region fallthrough
CT: control target
= control target key end

     0   :  { %v3573_v2 = vmov 0.0   ;;  %s4128_s0 = inlined_call_operand.vmem [shape: f32[2,8,32], index: 0, kind: input, shape index: {}]   ;;  %s4129_s1 = inlined_call_operand.vmem [shape: f32[2,8,32], index: 1, kind: input, shape index: {}, may-alias: {1,2}]   ;;  %s4130_s2 = inlined_call_operand.vmem [shape: f32[2,8,32], index: 2, kind: input, shape index: {}, may-alias: {1,2}]   ;;  %s4131_s3 = inlined_call_operand.vmem [shape: f32[3,32,32], index: 3, kind: input, shape index: {}]   ;;  %s4132_s4 = inlined_call_operand.vmem [shape: f32[32,32], index: 4, kind: input, shape index: {}]   ;;  %s4133_s5 = inlined_call_operand.vmem [shape: f32[1,32], index: 5, kind: input, shape index: {}]   ;;  %s4134_s6 = inlined_call_operand.vmem [shape: f32[1,32], index: 6, kind: input, shape index: {}]   ;;  %s4135_s7 = inlined_call_operand.vmem [shape: f32[1,32], index: 7, kind: input, shape index: {}]   ;;  %s4136_s8 = inlined_call_operand.vmem [shape: f32[2,8,32], index: 8, kind: output, shape index: {0}]   ;;  %s4137_s9 = inlined_call_operand.hbm [shape: f32[2,4,8,8], index: 9, kind: output, shape index: {1}]  }
   0x1   :  { %v3638_v0 = vld [vmem:[%s4131_s3 + $0x38] sm:$0xff]  ;;  %3345 = vmatprep.subr.mxu1 %v3573_v2  ;;  %3334 = vmatprep.subr.mxu0 %v3573_v2  ;;  %v3650_v3 = vld [vmem:[%s4131_s3 + $0x30] sm:$0xff]  ;;  %v3664_v5 = vld [vmem:[%s4131_s3 + $0x28] sm:$0xff] }
   0x2   :  { %v3643_v1 = vld [vmem:[%s4131_s3 + $0x18] sm:$0xff]  ;;  %v3655_v4 = vld [vmem:[%s4131_s3 + $0x10] sm:$0xff]  ;;  %3346 = vmatpush3.msra.mxu1 %v3638_v0  ;;  %v3669_v6 = vld [vmem:[%s4131_s3 + $0x8] sm:$0xff] }
   0x3   :  { %3335 = vmatpush3.msra.mxu0 %v3643_v1  ;;  %3347 = vmatprep.subr.mxu1 %v3573_v2 }
   0x4   :  { %3336 = vmatprep.subr.mxu0 %v3573_v2 }
   0x5   :  { %15 = vsyncpa [#allocation3], 0  ;;  %3348 = vmatpush3.msra.mxu1 %v3650_v3  ;;  %3337 = vmatpush3.msra.mxu0 %v3655_v4  ;;  %v3678_v7 = vld [vmem:[%s4131_s3 + $0x20] sm:$0xff]  ;;  %vm56_vm0 = vcmask 261120   ;;  %vm3574_vm1 = vmmov 0   ;;  %s3575_s29 = smov 104   ;;  %v291_v22 = vlaneseq }
   0x6   :  { %3349 = vmatprep.subr.mxu1 %v3573_v2  ;;  %3338 = vmatprep.subr.mxu0 %v3573_v2  ;;  %v54_v8 = vld [vmem:[%s4129_s1] sm:$0xff]  ;;  %s3576_s30 = smov 120   ;;  %s3577_s10 = smov 112   ;;  %v3718_v15 = vld [vmem:[%s4131_s3 + $0x58] sm:$0xff]  ;;  %v3723_v16 = vld [vmem:[%s4131_s3 + $0x50] sm:$0xff]  ;;  %vm714_vm2 = vcmask 64512  }
   0x7   :  { %3350 = vmatpush3.msra.mxu1 %v3664_v5  ;;  %3339 = vmatpush3.msra.mxu0 %v3669_v6  ;;  %v3688_v9 = vld [vmem:[%s4131_s3] sm:$0xff]  ;;  %v3730_v17 = vld [vmem:[%s4131_s3 + $0x48] sm:$0xff]  ;;  %v3578_v20 = vmov 1983009808   ;;  %v3579_v23 = vmov 1934713408  }
   0x8   :  { %3351 = vmatprep.subr.mxu1 %v3573_v2  ;;  %3353 = vmatprep.mubr.msk.f32.mxu1 %vm3574_vm1, %v3573_v2  ;;  %v53_v10 = vld [vmem:[%s4128_s0] sm:$0xff]  ;;  %v289_v21 = vunpack.c.l.s4 %v3578_v20  ;;  %v321_v24 = vunpack.c.l.s4 %v3579_v23  ;;  %v292_v26 = vshrl.u32 %v291_v22, 7  ;;  %s3580_s11 = smov 16   ;;  %s3581_s12 = smov 8   ;;  %vm1512_vm3 = vcmask 130048  }
   0x9   :  { %3352 = vmatpush3.msra.mxu1 %v3678_v7  ;;  %3340 = vmatprep.subr.mxu0 %v3573_v2  ;;  %v3737_v18 = vld [vmem:[%s4131_s3 + $0x40] sm:$0xff]  ;;  %s3582_s13 = smov 24   ;;  %vm1514_vm4 = vcmask 195584  }
   0xa   :  { %3354 = vmatmul.mubr.msk.f32.vlgmr.msra.gmra.mxu1 %vm56_vm0, %v54_v8  ;;  %3341 = vmatpush3.msra.mxu0 %v3688_v9  ;;  %v55_v19 = vld [vmem:[%s4130_s2] sm:$0xff]  ;;  %v290_v25 = vunpack.c.0.s8 %v289_v21  ;;  %v322_v29 = vunpack.c.0.s8 %v321_v24 }
   0xb   :  { %3342 = vmatprep.mubr.msk.f32.mxu0 %vm3574_vm1, %v3573_v2  ;;  %3367 = vmatprep.subr.mxu1 %v3573_v2 }
   0xc   :  { %3343 = vmatmul.mubr.msk.f32.vlgmr.msra.gmra.mxu0 %vm56_vm0, %v53_v10  ;;  %3369 = vmatprep.mubr.msk.f32.mxu1 %vm3574_vm1, %v3573_v2  ;;  %v3749_v30 = vsub.s32 %v290_v25, %v292_v26  ;;  %v3751_v37 = vsub.s32 %v322_v29, %v292_v26 }
   0xd   :  { %3356 = vmatprep.subr.mxu0 %v3573_v2  ;;  %3364 = vmatprep.mubr.msk.f32.mxu0 %vm3574_vm1, %v3573_v2 }
   0xe   :  { %3357 = vmatpush3.msra.mxu0 %v3718_v15 }
   0xf   :  { %3358 = vmatprep.subr.mxu0 %v3573_v2 }
  0x10   :  { %3359 = vmatpush3.msra.mxu0 %v3723_v16 }
  0x11   :  { %3360 = vmatprep.subr.mxu0 %v3573_v2 }
  0x12   :  { %3361 = vmatpush3.msra.mxu0 %v3730_v17 }
  0x13   :  { %3362 = vmatprep.subr.mxu0 %v3573_v2 }
  0x14   :  { %3363 = vmatpush3.msra.mxu0 %v3737_v18 }
  0x15   :  { %3365 = vmatmul.mubr.msk.f32.vlgmr.msra.gmra.mxu0 %vm56_vm0, %v55_v19  ;;  %3387 = vmatprep.subr.mxu0 %v3573_v2 }
  0x16   :  { %3389 = vmatprep.mubr.msk.f32.mxu0 %vm3574_vm1, %v3573_v2 }
  0xca   :  { %v199_v11 = vpop.f32.mrf.mxu1 }
  0xcb   :  { %429 = vrot.lane.b32.xlu1 %v199_v11, %s3575_s29  ;;  %423 = vrot.lane.b32.xlu0 %v199_v11, %s3576_s30 }
  0xcc   :  { %v126_v12 = vpop.f32.mrf.mxu0  ;;  %v3355_v13 = vpop.f32.mrf.mxu1 }
  0xce   :  { %v3344_v14 = vpop.f32.mrf.mxu0 }
  0xcf   :  { %426 = vrot.lane.b32.xlu0 %v199_v11, %s3577_s10  ;;  %277 = vrot.lane.b32.xlu1 %v126_v12, %s3576_s30 }
  0xd3   :  { %280 = vrot.lane.b32.xlu0 %v126_v12, %s3577_s10  ;;  %283 = vrot.lane.b32.xlu1 %v126_v12, %s3575_s29 }
 0x13d   :  { %v430_v27 = vpop.permute.xlu1 %429  ;;  %v424_v28 = vpop.permute.xlu0 %423 }
 0x13e   :  { %v448_v31 = vcombine.low %v424_v28, %v430_v27  ;;  %v449_v32 = vcombine.high %v424_v28, %v430_v27 }
 0x140   :  { %v456_v38 = vrot.slane %v448_v31, %v3749_v30  ;;  %v463_v39 = vrot.slane %v449_v32, %v3749_v30 }
 0x141   :  { %v427_v33 = vpop.permute.xlu0 %426  ;;  %v278_v34 = vpop.permute.xlu1 %277 }
 0x142   :  { %v432_v35 = vcombine.low %v199_v11, %v427_v33  ;;  %v433_v36 = vcombine.high %v199_v11, %v427_v33 }
 0x144   :  { %v440_v40 = vrot.slane %v432_v35, %v3749_v30  ;;  %v447_v41 = vrot.slane %v433_v36, %v3749_v30 }
 0x145   :  { %v281_v42 = vpop.permute.xlu0 %280  ;;  %v284_v43 = vpop.permute.xlu1 %283 }
 0x146   :  { %v464_v44 = vcombine.low %v440_v40, %v456_v38  ;;  %v465_v45 = vcombine.high %v440_v40, %v456_v38  ;;  %v480_v46 = vcombine.low %v447_v41, %v463_v39  ;;  %v481_v47 = vcombine.high %v447_v41, %v463_v39 }
 0x147   :  { %v286_v48 = vcombine.low %v126_v12, %v281_v42  ;;  %v287_v49 = vcombine.high %v126_v12, %v281_v42  ;;  %v302_v50 = vcombine.low %v278_v34, %v284_v43  ;;  %v303_v51 = vcombine.high %v278_v34, %v284_v43 }
 0x148   :  { %v472_v52 = vrot.slane %v464_v44, %v3751_v37  ;;  %v479_v53 = vrot.slane %v465_v45, %v3751_v37  ;;  %v488_v54 = vrot.slane %v480_v46, %v3751_v37  ;;  %v495_v55 = vrot.slane %v481_v47, %v3751_v37 }
 0x149   :  { %v294_v56 = vrot.slane %v286_v48, %v3749_v30  ;;  %v301_v57 = vrot.slane %v287_v49, %v3749_v30  ;;  %v310_v58 = vrot.slane %v302_v50, %v3749_v30  ;;  %v317_v59 = vrot.slane %v303_v51, %v3749_v30 }
 0x14a   :  { %v500_v60 = vcombine.low %v472_v52, %v479_v53  ;;  %v3212_v61 = vcombine.high %v472_v52, %v479_v53  ;;  %v516_v62 = vcombine.low %v488_v54, %v495_v55  ;;  %v3213_v63 = vcombine.high %v488_v54, %v495_v55 }
 0x14b   :  { %v318_v8 = vcombine.low %v294_v56, %v310_v58  ;;  %v319_v10 = vcombine.high %v294_v56, %v310_v58  ;;  %v334_v11 = vcombine.low %v301_v57, %v317_v59  ;;  %v335_v12 = vcombine.high %v301_v57, %v317_v59  ;;  %v3805_v59 = vpop.f32.mrf.mxu0 }
 0x14c   :  { %v507_v13 = vrot.slane %v500_v60, %v3749_v30  ;;  %v515_v14 = vrot.slane %v3212_v61, %v3749_v30  ;;  %v523_v19 = vrot.slane %v516_v62, %v3749_v30  ;;  %v531_v20 = vrot.slane %v3213_v63, %v3749_v30 }
 0x14d   :  { %v326_v21 = vrot.slane %v318_v8, %v3751_v37  ;;  %v333_v22 = vrot.slane %v319_v10, %v3751_v37  ;;  %v342_v23 = vrot.slane %v334_v11, %v3751_v37  ;;  %v349_v24 = vrot.slane %v335_v12, %v3751_v37  ;;  %v3366_v60 = vpop.f32.mrf.mxu0 }
 0x14e   :  { %v532_v25 = vcombine.low %v507_v13, %v515_v14  ;;  %v548_v26 = vcombine.low %v523_v19, %v531_v20  ;;  %v533_v42 = vcombine.high %v507_v13, %v515_v14  ;;  %v549_v43 = vcombine.high %v523_v19, %v531_v20 }
 0x14f   :  { %v354_v27 = vcombine.low %v326_v21, %v333_v22  ;;  %v3210_v28 = vcombine.high %v326_v21, %v333_v22  ;;  %v370_v29 = vcombine.low %v342_v23, %v349_v24  ;;  %v3211_v31 = vcombine.high %v342_v23, %v349_v24 }
 0x150   :  { %v540_v32 = vrot.slane %v532_v25, %v3751_v37  ;;  %v556_v33 = vrot.slane %v548_v26, %v3751_v37  ;;  %v547_v50 = vrot.slane %v533_v42, %v3751_v37  ;;  %v563_v51 = vrot.slane %v549_v43, %v3751_v37 }
 0x151   :  { %v361_v34 = vrot.slane %v354_v27, %v3749_v30  ;;  %v369_v35 = vrot.slane %v3210_v28, %v3749_v30  ;;  %v377_v36 = vrot.slane %v370_v29, %v3749_v30  ;;  %v385_v38 = vrot.slane %v3211_v31, %v3749_v30 }
 0x152   :  { %v564_v39 = vcombine.low %v540_v32, %v556_v33  ;;  %v565_v49 = vcombine.high %v540_v32, %v556_v33  ;;  %v566_v55 = vcombine.low %v547_v50, %v563_v51  ;;  %v567_v57 = vcombine.high %v547_v50, %v563_v51 }
 0x153   :  { %v386_v40 = vcombine.low %v361_v34, %v369_v35  ;;  %v402_v41 = vcombine.low %v377_v36, %v385_v38  ;;  %v387_v46 = vcombine.high %v361_v34, %v369_v35  ;;  %v403_v47 = vcombine.high %v377_v36, %v385_v38 }
 0x154   :  { %3368 = vmatpush3.xpose.msk.msra.mxu1 %vm714_vm2, %v564_v39 }
 0x155   :  { %3372 = vmatprep.subr.mxu1 %v3573_v2  ;;  %v394_v44 = vrot.slane %v386_v40, %v3751_v37  ;;  %v410_v45 = vrot.slane %v402_v41, %v3751_v37  ;;  %v401_v53 = vrot.slane %v387_v46, %v3751_v37  ;;  %v417_v54 = vrot.slane %v403_v47, %v3751_v37 }
 0x157   :  { %v418_v48 = vcombine.low %v394_v44, %v410_v45  ;;  %v419_v52 = vcombine.high %v394_v44, %v410_v45  ;;  %v420_v56 = vcombine.low %v401_v53, %v417_v54  ;;  %v421_v58 = vcombine.high %v401_v53, %v417_v54 }
 0x159   :  { %3370 = vmatmul.mubr.msk.f32.vlgmr.msra.gmra.mxu1 %vm714_vm2, %v418_v48 }
 0x15a   :  { %3373 = vmatpush3.xpose.msk.msra.mxu1 %vm714_vm2, %v565_v49  ;;  %3374 = vmatprep.mubr.msk.f32.mxu1 %vm3574_vm1, %v3573_v2 }
 0x15b   :  { %3377 = vmatprep.subr.mxu1 %v3573_v2 }
 0x15d   :  { %3375 = vmatmul.mubr.msk.f32.vlgmr.msra.gmra.mxu1 %vm714_vm2, %v419_v52 }
 0x15e   :  { %3378 = vmatpush3.xpose.msk.msra.mxu1 %vm714_vm2, %v566_v55  ;;  %3379 = vmatprep.mubr.msk.f32.mxu1 %vm3574_vm1, %v3573_v2 }
 0x15f   :  { %3382 = vmatprep.subr.mxu1 %v3573_v2 }
 0x161   :  { %3380 = vmatmul.mubr.msk.f32.vlgmr.msra.gmra.mxu1 %vm714_vm2, %v420_v56 }
 0x162   :  { %3383 = vmatpush3.xpose.msk.msra.mxu1 %vm714_vm2, %v567_v57  ;;  %3384 = vmatprep.mubr.msk.f32.mxu1 %vm3574_vm1, %v3573_v2 }
 0x163   :  { %3392 = vmatprep.subr.mxu1 %v3573_v2 }
 0x165   :  { %3385 = vmatmul.mubr.msk.f32.vlgmr.msra.gmra.mxu1 %vm714_vm2, %v421_v58 }
 0x166   :  { %3394 = vmatprep.mubr.msk.f32.mxu1 %vm3574_vm1, %v3573_v2 }
 0x219   :  { %v787_v61 = vpop.f32.mrf.mxu1 }
 0x21a   :  { %v1019_v62 = vmul.f32 0.17677669, %v787_v61 }
 0x21b   :  { %v3371_v63 = vpop.f32.mrf.mxu1 }
 0x21c   :  { %v1023_v8 = vsel %vm714_vm2, %v1019_v62, -inf }
 0x21d   :  { %1024 = vmax.xlane.f32.xlu0 %v1023_v8  ;;  %v863_v10 = vpop.f32.mrf.mxu1 }
 0x21e   :  { %v1020_v11 = vmul.f32 0.17677669, %v863_v10 }
 0x21f   :  { %v3376_v12 = vpop.f32.mrf.mxu1 }
 0x220   :  { %v1026_v13 = vsel %vm714_vm2, %v1020_v11, -inf }
 0x221   :  { %1027 = vmax.xlane.f32.xlu1 %v1026_v13  ;;  %v939_v14 = vpop.f32.mrf.mxu1 }
 0x222   :  { %v1021_v19 = vmul.f32 0.17677669, %v939_v14 }
 0x223   :  { %v3381_v20 = vpop.f32.mrf.mxu1 }
 0x224   :  { %v1029_v21 = vsel %vm714_vm2, %v1021_v19, -inf }
 0x225   :  { %1030 = vmax.xlane.f32.xlu0 %v1029_v21  ;;  %v1015_v22 = vpop.f32.mrf.mxu1 }
 0x226   :  { %v1022_v23 = vmul.f32 0.17677669, %v1015_v22 }
 0x227   :  { %v3386_v24 = vpop.f32.mrf.mxu1 }
 0x228   :  { %v1032_v25 = vsel %vm714_vm2, %v1022_v23, -inf }
 0x229   :  { %1033 = vmax.xlane.f32.xlu0 %v1032_v25 }
 0x232   :  { %569 = vrot.lane.b32.xlu1 %v3805_v59, %s3576_s30 }
 0x2a6   :  { %v1025_v26 = vpop.xlane.xlu0 %1024 }
 0x2a7   :  { %v1035_v27 = vsub.f32 %v1019_v62, %v1025_v26 }
 0x2a9   :  { %v1039_v28 = vmul.f32 1.442695, %v1035_v27 }
 0x2aa   :  { %v1028_v29 = vpop.xlane.xlu1 %1027 }
 0x2ab   :  { %3514 = vpow2.f32 %v1039_v28  ;;  %v1036_v31 = vsub.f32 %v1020_v11, %v1028_v29 }
 0x2ad   :  { %v1041_v32 = vmul.f32 1.442695, %v1036_v31 }
 0x2ae   :  { %v1031_v33 = vpop.xlane.xlu0 %1030  ;;  %v570_v48 = vpop.permute.xlu1 %569 }
 0x2af   :  { %3516 = vpow2.f32 %v1041_v32  ;;  %v1037_v34 = vsub.f32 %v1021_v19, %v1031_v33 }
 0x2b1   :  { %v1043_v35 = vmul.f32 1.442695, %v1037_v34 }
 0x2b2   :  { %v1034_v36 = vpop.xlane.xlu0 %1033 }
 0x2b3   :  { %3518 = vpow2.f32 %v1043_v35  ;;  %v1038_v38 = vsub.f32 %v1022_v23, %v1034_v36 }
 0x2b5   :  { %v1045_v39 = vmul.f32 1.442695, %v1038_v38 }
 0x2b7   :  { %3520 = vpow2.f32 %v1045_v39 }
 0x2b8   :  { %v3515_v40 = vpop.eup %3514 }
 0x2b9   :  { %v1047_v41 = vsel %vm714_vm2, %v3515_v40, 0.0 }
 0x2ba   :  { %1048 = vadd.xlane.f32.xlu1 %v1047_v41 }
 0x2bc   :  { %v3517_v42 = vpop.eup %3516 }
 0x2bd   :  { %v1050_v43 = vsel %vm714_vm2, %v3517_v42, 0.0 }
 0x2be   :  { %1051 = vadd.xlane.f32.xlu0 %v1050_v43 }
 0x2c0   :  { %v3519_v44 = vpop.eup %3518 }
 0x2c1   :  { %v1053_v45 = vsel %vm714_vm2, %v3519_v44, 0.0 }
 0x2c2   :  { %1054 = vadd.xlane.f32.xlu1 %v1053_v45 }
 0x2c4   :  { %v3521_v46 = vpop.eup %3520 }
 0x2c5   :  { %v1056_v47 = vsel %vm714_vm2, %v3521_v46, 0.0 }
 0x2c6   :  { %1057 = vadd.xlane.f32.xlu0 %v1056_v47 }
 0x2d3   :  { %575 = vrot.lane.b32.xlu1 %v3805_v59, %s3575_s29 }
 0x2dc   :  { %572 = vrot.lane.b32.xlu0 %v3805_v59, %s3577_s10 }
 0x343   :  { %v1049_v49 = vpop.xlane.xlu1 %1048 }
 0x344   :  { %3522 = vrcp.f32 %v1049_v49 }
 0x347   :  { %v1052_v50 = vpop.xlane.xlu0 %1051 }
 0x348   :  { %3524 = vrcp.f32 %v1052_v50  ;;  %v3875_v50 = vld [vmem:[%s4132_s4 + $0x10] sm:$0xff] }
 0x34b   :  { %v1055_v51 = vpop.xlane.xlu1 %1054 }
 0x34c   :  { %3526 = vrcp.f32 %v1055_v51 }
 0x34f   :  { %v1058_v52 = vpop.xlane.xlu0 %1057  ;;  %v576_v53 = vpop.permute.xlu1 %575 }
 0x350   :  { %3528 = vrcp.f32 %v1058_v52  ;;  %v594_v55 = vcombine.low %v570_v48, %v576_v53  ;;  %v595_v56 = vcombine.high %v570_v48, %v576_v53 }
 0x351   :  { %v3523_v54 = vpop.eup %3522 }
 0x352   :  { %v1063_v57 = vmul.f32 %v3523_v54, %v3515_v40  ;;  %v602_v63 = vrot.slane %v594_v55, %v3749_v30  ;;  %v609_v8 = vrot.slane %v595_v56, %v3749_v30 }
 0x353   :  { %v573_v58 = vpop.permute.xlu0 %572 }
 0x354   :  { %v578_v60 = vcombine.low %v3805_v59, %v573_v58  ;;  %v579_v61 = vcombine.high %v3805_v59, %v573_v58  ;;  %1067 = vst.msk [vmem:[#allocation2] sm:$0xff] %vm714_vm2, %v1063_v57 }
 0x355   :  { %v3525_v62 = vpop.eup %3524 }
 0x356   :  { %v586_v10 = vrot.slane %v578_v60, %v3749_v30  ;;  %v593_v11 = vrot.slane %v579_v61, %v3749_v30  ;;  %v1064_v12 = vmul.f32 %v3525_v62, %v3517_v42 }
 0x358   :  { %v610_v13 = vcombine.low %v586_v10, %v602_v63  ;;  %v611_v14 = vcombine.high %v586_v10, %v602_v63  ;;  %v626_v19 = vcombine.low %v593_v11, %v609_v8  ;;  %v627_v20 = vcombine.high %v593_v11, %v609_v8  ;;  %1068 = vst.msk [vmem:[#allocation2 + $0x8] sm:$0xff] %vm714_vm2, %v1064_v12 }
 0x359   :  { %v3527_v21 = vpop.eup %3526 }
 0x35a   :  { %v618_v59 = vrot.slane %v610_v13, %v3751_v37  ;;  %v625_v22 = vrot.slane %v611_v14, %v3751_v37  ;;  %v634_v23 = vrot.slane %v626_v19, %v3751_v37  ;;  %v641_v24 = vrot.slane %v627_v20, %v3751_v37  ;;  %v3888_v14 = vld [vmem:[%s4132_s4 + $0x8] sm:$0xff]  ;;  %v3893_v19 = vld [vmem:[%s4132_s4] sm:$0xff] }
 0x35b   :  { %v1065_v25 = vmul.f32 %v3527_v21, %v3519_v44 }
 0x35c   :  { %v646_v26 = vcombine.low %v618_v59, %v625_v22  ;;  %v3214_v27 = vcombine.high %v618_v59, %v625_v22  ;;  %v662_v28 = vcombine.low %v634_v23, %v641_v24  ;;  %v3215_v29 = vcombine.high %v634_v23, %v641_v24 }
 0x35d   :  { %v3529_v31 = vpop.eup %3528  ;;  %1069 = vst.msk [vmem:[#allocation2 + $0x10] sm:$0xff] %vm714_vm2, %v1065_v25 }
 0x35e   :  { %v653_v32 = vrot.slane %v646_v26, %v3749_v30  ;;  %v661_v33 = vrot.slane %v3214_v27, %v3749_v30  ;;  %v669_v34 = vrot.slane %v662_v28, %v3749_v30  ;;  %v677_v35 = vrot.slane %v3215_v29, %v3749_v30 }
 0x35f   :  { %v1066_v36 = vmul.f32 %v3529_v31, %v3521_v46 }
 0x360   :  { %v678_v38 = vcombine.low %v653_v32, %v661_v33  ;;  %v694_v39 = vcombine.low %v669_v34, %v677_v35  ;;  %v679_v40 = vcombine.high %v653_v32, %v661_v33  ;;  %v695_v41 = vcombine.high %v669_v34, %v677_v35 }
 0x361   :  { %1070 = vst.msk [vmem:[#allocation2 + $0x18] sm:$0xff] %vm714_vm2, %v1066_v36 }
 0x362   :  { %v686_v42 = vrot.slane %v678_v38, %v3751_v37  ;;  %v702_v43 = vrot.slane %v694_v39, %v3751_v37  ;;  %v693_v44 = vrot.slane %v679_v40, %v3751_v37  ;;  %v709_v45 = vrot.slane %v695_v41, %v3751_v37 }
 0x364   :  { %v710_v47 = vcombine.low %v686_v42, %v702_v43  ;;  %v711_v48 = vcombine.high %v686_v42, %v702_v43  ;;  %v712_v46 = vcombine.low %v693_v44, %v709_v45  ;;  %v713_v49 = vcombine.high %v693_v44, %v709_v45 }
 0x366   :  { %3388 = vmatpush3.msra.mxu0 %v710_v47  ;;  %3393 = vmatpush3.msra.mxu1 %v711_v48 }
 0x367   :  { %3390 = vmatmul.mubr.msk.f32.vlgmr.msra.gmra.mxu0 %vm714_vm2, %v1063_v57  ;;  %3395 = vmatmul.mubr.msk.f32.vlgmr.msra.gmra.mxu1 %vm714_vm2, %v1064_v12 }
 0x368   :  { %3397 = vmatprep.subr.mxu0 %v3573_v2  ;;  %3402 = vmatprep.subr.mxu1 %v3573_v2 }
 0x369   :  { %3398 = vmatpush3.msra.mxu0 %v712_v46  ;;  %3403 = vmatpush3.msra.mxu1 %v713_v49 }
 0x36a   :  { %3399 = vmatprep.mubr.msk.f32.mxu0 %vm3574_vm1, %v3573_v2  ;;  %3404 = vmatprep.mubr.msk.f32.mxu1 %vm3574_vm1, %v3573_v2 }
 0x36b   :  { %3400 = vmatmul.mubr.msk.f32.vlgmr.msra.gmra.mxu0 %vm714_vm2, %v1065_v25  ;;  %3405 = vmatmul.mubr.msk.f32.vlgmr.msra.gmra.mxu1 %vm714_vm2, %v1066_v36  ;;  %v3910_v36 = vld [vmem:[%s4128_s0 + $0x8] sm:$0xff] }
 0x36c   :  { %3407 = vmatprep.subr.mxu0 %v3573_v2  ;;  %3418 = vmatprep.subr.mxu1 %v3573_v2 }
 0x36d   :  { %3419 = vmatpush3.msra.mxu1 %v3643_v1  ;;  %3415 = vmatprep.mubr.msk.f32.mxu0 %vm3574_vm1, %v3573_v2  ;;  %v3870_v1 = vld [vmem:[%s4132_s4 + $0x18] sm:$0xff] }
 0x36e   :  { %3420 = vmatprep.subr.mxu1 %v3573_v2  ;;  %3426 = vmatprep.mubr.msk.f32.mxu1 %vm3574_vm1, %v3573_v2 }
 0x36f   :  { %3421 = vmatpush3.msra.mxu1 %v3655_v4  ;;  %3408 = vmatpush3.msra.mxu0 %v3870_v1 }
 0x370   :  { %3422 = vmatprep.subr.mxu1 %v3573_v2  ;;  %3409 = vmatprep.subr.mxu0 %v3573_v2 }
 0x371   :  { %3423 = vmatpush3.msra.mxu1 %v3669_v6  ;;  %3410 = vmatpush3.msra.mxu0 %v3875_v50 }
 0x372   :  { %3424 = vmatprep.subr.mxu1 %v3573_v2  ;;  %3411 = vmatprep.subr.mxu0 %v3573_v2 }
 0x373   :  { %3425 = vmatpush3.msra.mxu1 %v3688_v9  ;;  %3412 = vmatpush3.msra.mxu0 %v3888_v14 }
 0x374   :  { %3440 = vmatprep.subr.mxu1 %v3573_v2  ;;  %3413 = vmatprep.subr.mxu0 %v3573_v2 }
 0x375   :  { %3414 = vmatpush3.msra.mxu0 %v3893_v19  ;;  %3427 = vmatmul.mubr.msk.f32.vlgmr.msra.gmra.mxu1 %vm56_vm0, %v3910_v36 }
 0x376   :  { %3429 = vmatprep.subr.mxu0 %v3573_v2  ;;  %3441 = vmatpush3.msra.mxu1 %v3718_v15 }
 0x377   :  { %3448 = vmatprep.mubr.msk.f32.mxu1 %vm3574_vm1, %v3573_v2  ;;  %3442 = vmatprep.subr.mxu1 %v3573_v2 }
 0x378   :  { %3443 = vmatpush3.msra.mxu1 %v3723_v16 }
 0x379   :  { %3444 = vmatprep.subr.mxu1 %v3573_v2 }
 0x37a   :  { %3445 = vmatpush3.msra.mxu1 %v3730_v17 }
 0x37b   :  { %3446 = vmatprep.subr.mxu1 %v3573_v2 }
 0x37c   :  { %3447 = vmatpush3.msra.mxu1 %v3737_v18  ;;  %v3235_v18 = vld [vmem:[%s4129_s1 + $0x8] sm:$0xff] }
 0x37d   :  { %3456 = vmatprep.subr.mxu1 %v3573_v2 }
 0x427   :  { %v1140_v4 = vpop.f32.mrf.mxu0  ;;  %v1213_v6 = vpop.f32.mrf.mxu1 }
 0x429   :  { %v3391_v9 = vpop.f32.mrf.mxu0  ;;  %v3396_v51 = vpop.f32.mrf.mxu1 }
 0x42b   :  { %v1286_v52 = vpop.f32.mrf.mxu0  ;;  %v1359_v53 = vpop.f32.mrf.mxu1 }
 0x42c   :  { %v1363_v54 = vcombine.low %v1140_v4, %v1286_v52  ;;  %v1364_v55 = vcombine.high %v1140_v4, %v1286_v52  ;;  %v1379_v56 = vcombine.low %v1213_v6, %v1359_v53  ;;  %v1380_v57 = vcombine.high %v1213_v6, %v1359_v53  ;;  %v3236_v6 = vld [vmem:[%s4130_s2 + $0x8] sm:$0xff] }
 0x42d   :  { %v3401_v58 = vpop.f32.mrf.mxu0  ;;  %v3406_v60 = vpop.f32.mrf.mxu1  ;;  %3449 = vmatmul.mubr.msk.f32.vlgmr.msra.gmra.mxu1 %vm56_vm0, %v3236_v6 }
 0x42e   :  { %v1371_v61 = vrot.slane %v1363_v54, %v3749_v30  ;;  %v1378_v62 = vrot.slane %v1364_v55, %v3749_v30  ;;  %v1387_v63 = vrot.slane %v1379_v56, %v3749_v30  ;;  %v1394_v8 = vrot.slane %v1380_v57, %v3749_v30  ;;  %3458 = vmatprep.mubr.msk.f32.mxu1 %vm3574_vm1, %v3573_v2 }
 0x430   :  { %v1395_v10 = vcombine.low %v1371_v61, %v1387_v63  ;;  %v1396_v11 = vcombine.high %v1371_v61, %v1387_v63  ;;  %v1411_v12 = vcombine.low %v1378_v62, %v1394_v8  ;;  %v1412_v13 = vcombine.high %v1378_v62, %v1394_v8 }
 0x432   :  { %v1403_v20 = vrot.slane %v1395_v10, %v3751_v37  ;;  %v1410_v21 = vrot.slane %v1396_v11, %v3751_v37  ;;  %v1419_v59 = vrot.slane %v1411_v12, %v3751_v37  ;;  %v1426_v22 = vrot.slane %v1412_v13, %v3751_v37 }
 0x434   :  { %v1431_v23 = vcombine.low %v1403_v20, %v1410_v21  ;;  %v3228_v24 = vcombine.high %v1403_v20, %v1410_v21  ;;  %v1447_v25 = vcombine.low %v1419_v59, %v1426_v22  ;;  %v3229_v26 = vcombine.high %v1419_v59, %v1426_v22 }
 0x436   :  { %v1438_v27 = vrot.slane %v1431_v23, %v3749_v30  ;;  %v1446_v28 = vrot.slane %v3228_v24, %v3749_v30  ;;  %v1454_v29 = vrot.slane %v1447_v25, %v3749_v30  ;;  %v1462_v31 = vrot.slane %v3229_v26, %v3749_v30 }
 0x438   :  { %v1464_v32 = vcombine.high %v1438_v27, %v1446_v28  ;;  %v1480_v33 = vcombine.high %v1454_v29, %v1462_v31  ;;  %v1463_v34 = vcombine.low %v1438_v27, %v1446_v28  ;;  %v1479_v35 = vcombine.low %v1454_v29, %v1462_v31 }
 0x43a   :  { %v1478_v38 = vrot.slane %v1464_v32, %v3751_v37  ;;  %v1494_v39 = vrot.slane %v1480_v33, %v3751_v37  ;;  %v1471_v40 = vrot.slane %v1463_v34, %v3751_v37  ;;  %v1487_v41 = vrot.slane %v1479_v35, %v3751_v37 }
 0x43c   :  { %v1497_v42 = vcombine.low %v1478_v38, %v1494_v39  ;;  %v1496_v43 = vcombine.high %v1471_v40, %v1487_v41  ;;  %v1495_v44 = vcombine.low %v1471_v40, %v1487_v41  ;;  %v1498_v45 = vcombine.high %v1478_v38, %v1494_v39 }
 0x43e   :  { %1504 = vrot.lane.b32.xlu0 %v1497_v42, %s3580_s11  ;;  %1500 = vrot.lane.b32.xlu1 %v1496_v43, %s3581_s12 }
 0x442   :  { %1508 = vrot.lane.b32.xlu1 %v1498_v45, %s3582_s13 }
 0x4b0   :  { %v1501_v15 = vpop.permute.xlu1 %1500  ;;  %v1505_v16 = vpop.permute.xlu0 %1504 }
 0x4b1   :  { %v1511_v47 = vsel %vm714_vm2, %v1495_v44, %v1501_v15 }
 0x4b2   :  { %v1513_v46 = vsel %vm1512_vm3, %v1511_v47, %v1505_v16 }
 0x4b4   :  { %v1509_v48 = vpop.permute.xlu1 %1508 }
 0x4b5   :  { %v1515_v17 = vsel %vm1514_vm4, %v1513_v46, %v1509_v48 }
 0x4b6   :  { %3416 = vmatmul.mubr.msk.f32.vlgmr.msra.gmra.mxu0 %vm56_vm0, %v1515_v17 }
 0x4b7   :  { %3430 = vmatpush3.msra.mxu0 %v3638_v0  ;;  %3437 = vmatprep.mubr.msk.f32.mxu0 %vm3574_vm1, %v3573_v2  ;;  %v1700_v0 = vpop.f32.mrf.mxu1 }
 0x4b8   :  { %3431 = vmatprep.subr.mxu0 %v3573_v2  ;;  %1851 = vrot.lane.b32.xlu1 %v1700_v0, %s3576_s30 }
 0x4b9   :  { %3432 = vmatpush3.msra.mxu0 %v3650_v3  ;;  %v3428_v3 = vpop.f32.mrf.mxu1 }
 0x4ba   :  { %3433 = vmatprep.subr.mxu0 %v3573_v2 }
 0x4bb   :  { %3434 = vmatpush3.msra.mxu0 %v3664_v5 }
 0x4bc   :  { %3435 = vmatprep.subr.mxu0 %v3573_v2 }
 0x4bd   :  { %3436 = vmatpush3.msra.mxu0 %v3678_v7 }
 0x4be   :  { %3438 = vmatmul.mubr.msk.f32.vlgmr.msra.gmra.mxu0 %vm56_vm0, %v3235_v18  ;;  %3451 = vmatprep.subr.mxu0 %v3573_v2 }
 0x4bf   :  { %3453 = vmatprep.mubr.msk.f32.mxu0 %vm3574_vm1, %v3573_v2 }
 0x52a   :  { %v1852_v9 = vpop.permute.xlu1 %1851 }
 0x576   :  { %v3952_v5 = vpop.f32.mrf.mxu0 }
 0x578   :  { %v3417_v49 = vpop.f32.mrf.mxu0 }
 0x57e   :  { %v1773_v4 = vpop.f32.mrf.mxu0 }
 0x57f   :  { %2000 = vrot.lane.b32.xlu1 %v1773_v4, %s3577_s10  ;;  %1997 = vrot.lane.b32.xlu0 %v1773_v4, %s3576_s30 }
 0x580   :  { %v3439_v7 = vpop.f32.mrf.mxu0 }
 0x583   :  { %1857 = vrot.lane.b32.xlu1 %v1700_v0, %s3575_s29  ;;  %2003 = vrot.lane.b32.xlu0 %v1773_v4, %s3575_s29 }
 0x587   :  { %1854 = vrot.lane.b32.xlu0 %v1700_v0, %s3577_s10 }
 0x5f1   :  { %v2001_v51 = vpop.permute.xlu1 %2000  ;;  %v1998_v52 = vpop.permute.xlu0 %1997 }
 0x5f2   :  { %v2006_v53 = vcombine.low %v1773_v4, %v2001_v51  ;;  %v2007_v54 = vcombine.high %v1773_v4, %v2001_v51 }
 0x5f4   :  { %v2014_v60 = vrot.slane %v2006_v53, %v3749_v30  ;;  %v2021_v61 = vrot.slane %v2007_v54, %v3749_v30 }
 0x5f5   :  { %v2004_v55 = vpop.permute.xlu0 %2003  ;;  %v1858_v56 = vpop.permute.xlu1 %1857 }
 0x5f6   :  { %v2022_v57 = vcombine.low %v1998_v52, %v2004_v55  ;;  %v2023_v58 = vcombine.high %v1998_v52, %v2004_v55  ;;  %v1876_v8 = vcombine.low %v1852_v9, %v1858_v56  ;;  %v1877_v10 = vcombine.high %v1852_v9, %v1858_v56 }
 0x5f8   :  { %v2030_v62 = vrot.slane %v2022_v57, %v3749_v30  ;;  %v2037_v63 = vrot.slane %v2023_v58, %v3749_v30  ;;  %v1884_v27 = vrot.slane %v1876_v8, %v3749_v30  ;;  %v1891_v28 = vrot.slane %v1877_v10, %v3749_v30 }
 0x5f9   :  { %v1855_v11 = vpop.permute.xlu0 %1854 }
 0x5fa   :  { %v2038_v12 = vcombine.low %v2014_v60, %v2030_v62  ;;  %v2039_v13 = vcombine.high %v2014_v60, %v2030_v62  ;;  %v2054_v20 = vcombine.low %v2021_v61, %v2037_v63  ;;  %v2055_v21 = vcombine.high %v2021_v61, %v2037_v63 }
 0x5fb   :  { %v1860_v59 = vcombine.low %v1700_v0, %v1855_v11  ;;  %v1861_v22 = vcombine.high %v1700_v0, %v1855_v11 }
 0x5fc   :  { %v2046_v23 = vrot.slane %v2038_v12, %v3751_v37  ;;  %v2053_v24 = vrot.slane %v2039_v13, %v3751_v37  ;;  %v2062_v25 = vrot.slane %v2054_v20, %v3751_v37  ;;  %v2069_v26 = vrot.slane %v2055_v21, %v3751_v37 }
 0x5fd   :  { %v1868_v29 = vrot.slane %v1860_v59, %v3749_v30  ;;  %v1875_v31 = vrot.slane %v1861_v22, %v3749_v30 }
 0x5fe   :  { %v2074_v32 = vcombine.low %v2046_v23, %v2053_v24  ;;  %v3242_v33 = vcombine.high %v2046_v23, %v2053_v24  ;;  %v2090_v34 = vcombine.low %v2062_v25, %v2069_v26  ;;  %v3243_v35 = vcombine.high %v2062_v25, %v2069_v26  ;;  %v4017_v24 = vpop.f32.mrf.mxu1 }
 0x5ff   :  { %v1892_v38 = vcombine.low %v1868_v29, %v1884_v27  ;;  %v1893_v39 = vcombine.high %v1868_v29, %v1884_v27  ;;  %v1908_v40 = vcombine.low %v1875_v31, %v1891_v28  ;;  %v1909_v41 = vcombine.high %v1875_v31, %v1891_v28 }
 0x600   :  { %v2081_v42 = vrot.slane %v2074_v32, %v3749_v30  ;;  %v2089_v43 = vrot.slane %v3242_v33, %v3749_v30  ;;  %v2097_v44 = vrot.slane %v2090_v34, %v3749_v30  ;;  %v2105_v45 = vrot.slane %v3243_v35, %v3749_v30  ;;  %v3450_v25 = vpop.f32.mrf.mxu1 }
 0x601   :  { %v1900_v15 = vrot.slane %v1892_v38, %v3751_v37  ;;  %v1907_v16 = vrot.slane %v1893_v39, %v3751_v37  ;;  %v1916_v47 = vrot.slane %v1908_v40, %v3751_v37  ;;  %v1923_v48 = vrot.slane %v1909_v41, %v3751_v37 }
 0x602   :  { %v2106_v46 = vcombine.low %v2081_v42, %v2089_v43  ;;  %v2122_v17 = vcombine.low %v2097_v44, %v2105_v45  ;;  %v2107_v4 = vcombine.high %v2081_v42, %v2089_v43  ;;  %v2123_v7 = vcombine.high %v2097_v44, %v2105_v45 }
 0x603   :  { %v1928_v18 = vcombine.low %v1900_v15, %v1907_v16  ;;  %v3240_v0 = vcombine.high %v1900_v15, %v1907_v16  ;;  %v1944_v3 = vcombine.low %v1916_v47, %v1923_v48  ;;  %v3241_v49 = vcombine.high %v1916_v47, %v1923_v48 }
 0x604   :  { %v2114_v6 = vrot.slane %v2106_v46, %v3751_v37  ;;  %v2130_v9 = vrot.slane %v2122_v17, %v3751_v37  ;;  %v2121_v62 = vrot.slane %v2107_v4, %v3751_v37  ;;  %v2137_v63 = vrot.slane %v2123_v7, %v3751_v37 }
 0x605   :  { %v1935_v51 = vrot.slane %v1928_v18, %v3749_v30  ;;  %v1943_v52 = vrot.slane %v3240_v0, %v3749_v30  ;;  %v1951_v53 = vrot.slane %v1944_v3, %v3749_v30  ;;  %v1959_v54 = vrot.slane %v3241_v49, %v3749_v30 }
 0x606   :  { %v2138_v55 = vcombine.low %v2114_v6, %v2130_v9  ;;  %v2139_v56 = vcombine.high %v2114_v6, %v2130_v9  ;;  %v2140_v21 = vcombine.low %v2121_v62, %v2137_v63  ;;  %v2141_v59 = vcombine.high %v2121_v62, %v2137_v63 }
 0x607   :  { %v1960_v57 = vcombine.low %v1935_v51, %v1943_v52  ;;  %v1961_v58 = vcombine.high %v1935_v51, %v1943_v52  ;;  %v1976_v60 = vcombine.low %v1951_v53, %v1959_v54  ;;  %v1977_v61 = vcombine.high %v1951_v53, %v1959_v54 }
 0x608   :  { %3452 = vmatpush3.xpose.msk.msra.mxu0 %vm714_vm2, %v2138_v55  ;;  %3457 = vmatpush3.xpose.msk.msra.mxu1 %vm714_vm2, %v2139_v56 }
 0x609   :  { %3461 = vmatprep.subr.mxu0 %v3573_v2  ;;  %3466 = vmatprep.subr.mxu1 %v3573_v2  ;;  %v1968_v8 = vrot.slane %v1960_v57, %v3751_v37  ;;  %v1984_v10 = vrot.slane %v1976_v60, %v3751_v37  ;;  %v1975_v13 = vrot.slane %v1961_v58, %v3751_v37 }
 0x60a   :  { %v1991_v20 = vrot.slane %v1977_v61, %v3751_v37 }
 0x60b   :  { %v1992_v11 = vcombine.low %v1968_v8, %v1984_v10  ;;  %v1993_v12 = vcombine.high %v1968_v8, %v1984_v10 }
 0x60c   :  { %v1994_v22 = vcombine.low %v1975_v13, %v1991_v20  ;;  %v1995_v23 = vcombine.high %v1975_v13, %v1991_v20 }
 0x60d   :  { %3454 = vmatmul.mubr.msk.f32.vlgmr.msra.gmra.mxu0 %vm714_vm2, %v1992_v11  ;;  %3459 = vmatmul.mubr.msk.f32.vlgmr.msra.gmra.mxu1 %vm714_vm2, %v1993_v12 }
 0x60e   :  { %3462 = vmatpush3.xpose.msk.msra.mxu0 %vm714_vm2, %v2140_v21  ;;  %3467 = vmatpush3.xpose.msk.msra.mxu1 %vm714_vm2, %v2141_v59 }
 0x60f   :  { %3463 = vmatprep.mubr.msk.f32.mxu0 %vm3574_vm1, %v3573_v2  ;;  %3468 = vmatprep.mubr.msk.f32.mxu1 %vm3574_vm1, %v3573_v2 }
 0x610   :  { %3471 = vmatprep.subr.mxu0 %v3573_v2  ;;  %3476 = vmatprep.subr.mxu1 %v3573_v2 }
 0x611   :  { %3464 = vmatmul.mubr.msk.f32.vlgmr.msra.gmra.mxu0 %vm714_vm2, %v1994_v22  ;;  %3469 = vmatmul.mubr.msk.f32.vlgmr.msra.gmra.mxu1 %vm714_vm2, %v1995_v23 }
 0x612   :  { %3473 = vmatprep.mubr.msk.f32.mxu0 %vm3574_vm1, %v3573_v2  ;;  %3478 = vmatprep.mubr.msk.f32.mxu1 %vm3574_vm1, %v3573_v2 }
 0x6cd   :  { %v2360_v26 = vpop.f32.mrf.mxu0  ;;  %v2436_v27 = vpop.f32.mrf.mxu1 }
 0x6ce   :  { %v2592_v28 = vmul.f32 0.17677669, %v2360_v26  ;;  %v2593_v29 = vmul.f32 0.17677669, %v2436_v27 }
 0x6cf   :  { %v3455_v31 = vpop.f32.mrf.mxu0  ;;  %v3460_v32 = vpop.f32.mrf.mxu1 }
 0x6d0   :  { %v2599_v33 = vsel %vm714_vm2, %v2593_v29, -inf  ;;  %v2596_v34 = vsel %vm714_vm2, %v2592_v28, -inf }
 0x6d1   :  { %2600 = vmax.xlane.f32.xlu1 %v2599_v33  ;;  %v2588_v35 = vpop.f32.mrf.mxu1  ;;  %2597 = vmax.xlane.f32.xlu0 %v2596_v34  ;;  %v2512_v38 = vpop.f32.mrf.mxu0 }
 0x6d2   :  { %v2594_v39 = vmul.f32 0.17677669, %v2512_v38  ;;  %v2595_v42 = vmul.f32 0.17677669, %v2588_v35 }
 0x6d3   :  { %v3465_v40 = vpop.f32.mrf.mxu0  ;;  %v3470_v41 = vpop.f32.mrf.mxu1 }
 0x6d4   :  { %v2602_v43 = vsel %vm714_vm2, %v2594_v39, -inf  ;;  %v2605_v44 = vsel %vm714_vm2, %v2595_v42, -inf }
 0x6d5   :  { %2603 = vmax.xlane.f32.xlu0 %v2602_v43 }
 0x6d9   :  { %2606 = vmax.xlane.f32.xlu0 %v2605_v44 }
 0x6e2   :  { %2143 = vrot.lane.b32.xlu1 %v4017_v24, %s3576_s30 }
 0x75a   :  { %v2601_v45 = vpop.xlane.xlu1 %2600  ;;  %v2598_v15 = vpop.xlane.xlu0 %2597 }
 0x75b   :  { %v2609_v16 = vsub.f32 %v2593_v29, %v2601_v45  ;;  %v2608_v47 = vsub.f32 %v2592_v28, %v2598_v15 }
 0x75d   :  { %v2614_v48 = vmul.f32 1.442695, %v2609_v16  ;;  %v2612_v46 = vmul.f32 1.442695, %v2608_v47 }
 0x75e   :  { %v2604_v17 = vpop.xlane.xlu0 %2603  ;;  %v2144_v56 = vpop.permute.xlu1 %2143 }
 0x75f   :  { %3530 = vpow2.f32 %v2614_v48  ;;  %v2610_v18 = vsub.f32 %v2594_v39, %v2604_v17 }
 0x760   :  { %3532 = vpow2.f32 %v2612_v46 }
 0x761   :  { %v2616_v0 = vmul.f32 1.442695, %v2610_v18 }
 0x762   :  { %v2607_v3 = vpop.xlane.xlu0 %2606 }
 0x763   :  { %3534 = vpow2.f32 %v2616_v0  ;;  %v2611_v49 = vsub.f32 %v2595_v42, %v2607_v3 }
 0x765   :  { %v2618_v4 = vmul.f32 1.442695, %v2611_v49 }
 0x767   :  { %3536 = vpow2.f32 %v2618_v4 }
 0x76c   :  { %v3531_v7 = vpop.eup %3530 }
 0x76d   :  { %v3533_v6 = vpop.eup %3532  ;;  %v2623_v9 = vsel %vm714_vm2, %v3531_v7, 0.0 }
 0x76e   :  { %v2620_v51 = vsel %vm714_vm2, %v3533_v6, 0.0  ;;  %2624 = vadd.xlane.f32.xlu0 %v2623_v9 }
 0x76f   :  { %2621 = vadd.xlane.f32.xlu1 %v2620_v51 }
 0x770   :  { %v3535_v52 = vpop.eup %3534 }
 0x771   :  { %v2626_v53 = vsel %vm714_vm2, %v3535_v52, 0.0 }
 0x773   :  { %2627 = vadd.xlane.f32.xlu1 %v2626_v53 }
 0x774   :  { %v3537_v54 = vpop.eup %3536 }
 0x775   :  { %v2629_v55 = vsel %vm714_vm2, %v3537_v54, 0.0 }
 0x776   :  { %2630 = vadd.xlane.f32.xlu0 %v2629_v55 }
 0x784   :  { %2149 = vrot.lane.b32.xlu1 %v4017_v24, %s3575_s29 }
 0x78c   :  { %2146 = vrot.lane.b32.xlu0 %v4017_v24, %s3577_s10 }
 0x7f7   :  { %v2625_v57 = vpop.xlane.xlu0 %2624 }
 0x7f8   :  { %v2622_v58 = vpop.xlane.xlu1 %2621  ;;  %3538 = vrcp.f32 %v2625_v57 }
 0x7f9   :  { %3540 = vrcp.f32 %v2622_v58 }
 0x7fc   :  { %v2628_v60 = vpop.xlane.xlu1 %2627 }
 0x7fd   :  { %3542 = vrcp.f32 %v2628_v60 }
 0x7ff   :  { %v2631_v61 = vpop.xlane.xlu0 %2630 }
 0x800   :  { %v2150_v62 = vpop.permute.xlu1 %2149  ;;  %3544 = vrcp.f32 %v2631_v61 }
 0x801   :  { %v2168_v63 = vcombine.low %v2144_v56, %v2150_v62  ;;  %v2169_v8 = vcombine.high %v2144_v56, %v2150_v62 }
 0x803   :  { %v2147_v10 = vpop.permute.xlu0 %2146  ;;  %v2176_v20 = vrot.slane %v2168_v63, %v3749_v30  ;;  %v2183_v59 = vrot.slane %v2169_v8, %v3749_v30 }
 0x804   :  { %v2152_v11 = vcombine.low %v4017_v24, %v2147_v10  ;;  %v2153_v12 = vcombine.high %v4017_v24, %v2147_v10 }
 0x805   :  { %v3539_v13 = vpop.eup %3538 }
 0x806   :  { %v3541_v21 = vpop.eup %3540  ;;  %v2160_v22 = vrot.slane %v2152_v11, %v3749_v30  ;;  %v2167_v23 = vrot.slane %v2153_v12, %v3749_v30  ;;  %v2637_v25 = vmul.f32 %v3539_v13, %v3531_v7 }
 0x807   :  { %v2636_v26 = vmul.f32 %v3541_v21, %v3533_v6 }
 0x808   :  { %v2184_v27 = vcombine.low %v2160_v22, %v2176_v20  ;;  %v2185_v28 = vcombine.high %v2160_v22, %v2176_v20  ;;  %v2200_v29 = vcombine.low %v2167_v23, %v2183_v59  ;;  %v2201_v31 = vcombine.high %v2167_v23, %v2183_v59  ;;  %2642 = vst.msk [vmem:[#allocation2 + $0x28] sm:$0xff] %vm714_vm2, %v2637_v25 }
 0x809   :  { %2641 = vst.msk [vmem:[#allocation2 + $0x20] sm:$0xff] %vm714_vm2, %v2636_v26 }
 0x80a   :  { %v3543_v24 = vpop.eup %3542  ;;  %v2192_v32 = vrot.slane %v2184_v27, %v3751_v37  ;;  %v2199_v33 = vrot.slane %v2185_v28, %v3751_v37  ;;  %v2208_v34 = vrot.slane %v2200_v29, %v3751_v37  ;;  %v2215_v35 = vrot.slane %v2201_v31, %v3751_v37 }
 0x80b   :  { %v2638_v38 = vmul.f32 %v3543_v24, %v3535_v52 }
 0x80c   :  { %v2220_v39 = vcombine.low %v2192_v32, %v2199_v33  ;;  %v3244_v40 = vcombine.high %v2192_v32, %v2199_v33  ;;  %v2236_v41 = vcombine.low %v2208_v34, %v2215_v35  ;;  %v3245_v42 = vcombine.high %v2208_v34, %v2215_v35 }
 0x80d   :  { %v3545_v43 = vpop.eup %3544  ;;  %2643 = vst.msk [vmem:[#allocation2 + $0x30] sm:$0xff] %vm714_vm2, %v2638_v38 }
 0x80e   :  { %v2227_v44 = vrot.slane %v2220_v39, %v3749_v30  ;;  %v2235_v45 = vrot.slane %v3244_v40, %v3749_v30  ;;  %v2243_v15 = vrot.slane %v2236_v41, %v3749_v30  ;;  %v2251_v16 = vrot.slane %v3245_v42, %v3749_v30 }
 0x80f   :  { %v2639_v47 = vmul.f32 %v3545_v43, %v3537_v54 }
 0x810   :  { %v2252_v48 = vcombine.low %v2227_v44, %v2235_v45  ;;  %v2268_v46 = vcombine.low %v2243_v15, %v2251_v16  ;;  %v2253_v17 = vcombine.high %v2227_v44, %v2235_v45  ;;  %v2269_v18 = vcombine.high %v2243_v15, %v2251_v16  ;;  %v3230_v44 = vld [vmem:[%s4133_s5] ss:$0 sm:$0xff] }
 0x811   :  { %2644 = vst.msk [vmem:[#allocation2 + $0x38] sm:$0xff] %vm714_vm2, %v2639_v47  ;;  %v1592_v45 = vadd.f32 %v3230_v44, %v3952_v5 }
 0x812   :  { %v2260_v0 = vrot.slane %v2252_v48, %v3751_v37  ;;  %v2276_v3 = vrot.slane %v2268_v46, %v3751_v37  ;;  %v2267_v49 = vrot.slane %v2253_v17, %v3751_v37  ;;  %v2283_v4 = vrot.slane %v2269_v18, %v3751_v37 }
 0x814   :  { %v2284_v7 = vcombine.low %v2260_v0, %v2276_v3  ;;  %v2285_v6 = vcombine.high %v2260_v0, %v2276_v3  ;;  %v2286_v9 = vcombine.low %v2267_v49, %v2283_v4  ;;  %v2287_v51 = vcombine.high %v2267_v49, %v2283_v4 }
 0x816   :  { %3472 = vmatpush3.msra.mxu0 %v2284_v7  ;;  %3477 = vmatpush3.msra.mxu1 %v2285_v6 }
 0x817   :  { %3474 = vmatmul.mubr.msk.f32.vlgmr.msra.gmra.mxu0 %vm714_vm2, %v2636_v26  ;;  %3479 = vmatmul.mubr.msk.f32.vlgmr.msra.gmra.mxu1 %vm714_vm2, %v2637_v25 }
 0x818   :  { %3481 = vmatprep.subr.mxu0 %v3573_v2  ;;  %3486 = vmatprep.subr.mxu1 %v3573_v2 }
 0x819   :  { %3482 = vmatpush3.msra.mxu0 %v2286_v9  ;;  %3487 = vmatpush3.msra.mxu1 %v2287_v51 }
 0x81a   :  { %3483 = vmatprep.mubr.msk.f32.mxu0 %vm3574_vm1, %v3573_v2  ;;  %3488 = vmatprep.mubr.msk.f32.mxu1 %vm3574_vm1, %v3573_v2 }
 0x81b   :  { %3484 = vmatmul.mubr.msk.f32.vlgmr.msra.gmra.mxu0 %vm714_vm2, %v2638_v38  ;;  %3489 = vmatmul.mubr.msk.f32.vlgmr.msra.gmra.mxu1 %vm714_vm2, %v2639_v47 }
 0x81c   :  { %3491 = vmatprep.subr.mxu0 %v3573_v2  ;;  %3499 = vmatprep.mubr.msk.f32.mxu0 %vm3574_vm1, %v3573_v2 }
 0x81d   :  { %3492 = vmatpush3.msra.mxu0 %v3870_v1 }
 0x81e   :  { %3493 = vmatprep.subr.mxu0 %v3573_v2 }
 0x81f   :  { %3494 = vmatpush3.msra.mxu0 %v3875_v50 }
 0x820   :  { %3495 = vmatprep.subr.mxu0 %v3573_v2 }
 0x821   :  { %3496 = vmatpush3.msra.mxu0 %v3888_v14 }
 0x822   :  { %3497 = vmatprep.subr.mxu0 %v3573_v2 }
 0x823   :  { %3498 = vmatpush3.msra.mxu0 %v3893_v19 }
 0x8d7   :  { %v2714_v52 = vpop.f32.mrf.mxu0  ;;  %v2787_v53 = vpop.f32.mrf.mxu1 }
 0x8d9   :  { %v3475_v54 = vpop.f32.mrf.mxu0  ;;  %v3480_v55 = vpop.f32.mrf.mxu1 }
 0x8db   :  { %v2860_v56 = vpop.f32.mrf.mxu0  ;;  %v2933_v57 = vpop.f32.mrf.mxu1 }
 0x8dc   :  { %v2937_v58 = vcombine.low %v2714_v52, %v2860_v56  ;;  %v2938_v1 = vcombine.high %v2714_v52, %v2860_v56  ;;  %v2953_v60 = vcombine.low %v2787_v53, %v2933_v57  ;;  %v2954_v61 = vcombine.high %v2787_v53, %v2933_v57 }
 0x8dd   :  { %v3485_v62 = vpop.f32.mrf.mxu0  ;;  %v3490_v50 = vpop.f32.mrf.mxu1 }
 0x8de   :  { %v2945_v63 = vrot.slane %v2937_v58, %v3749_v30  ;;  %v2952_v14 = vrot.slane %v2938_v1, %v3749_v30  ;;  %v2961_v2 = vrot.slane %v2953_v60, %v3749_v30  ;;  %v2968_v19 = vrot.slane %v2954_v61, %v3749_v30  ;;  %v3232_v58 = vld [vmem:[%s4134_s6] ss:$0 sm:$0xff]  ;;  %s3583_s6 = smov [#allocation2]  }
 0x8df   :  { %v3233_v60 = vld [vmem:[%s4135_s7] ss:$0 sm:$0xff]  ;;  %s3186_s3 = sshll.u32 %s3583_s6, 4  ;;  %s3187_s3 = int_to_ptr.vmem [resolvable:$true] %s3186_s3 }
 0x8e0   :  { %v2969_v8 = vcombine.low %v2945_v63, %v2961_v2  ;;  %v2970_v10 = vcombine.high %v2945_v63, %v2961_v2  ;;  %v2985_v11 = vcombine.low %v2952_v14, %v2968_v19  ;;  %v2986_v12 = vcombine.high %v2952_v14, %v2968_v19  ;;  %s3551_s21 = scalar_lea.vmem %s3187_s3, 1024  ;;  %p3556_p1 = scmp.lt.s32.totalorder %s3187_s3, %s3187_s3 }
 0x8e1   :  { %p3552_p0 = scmp.ne.s32.totalorder %s3187_s3, %s3551_s21  ;;  %p3557_p2 = scmp.lt.s32.totalorder %s3551_s21, %s3551_s21 }
 0x8e2   :  { %v2977_v13 = vrot.slane %v2969_v8, %v3751_v37  ;;  %v2984_v20 = vrot.slane %v2970_v10, %v3751_v37  ;;  %v2993_v21 = vrot.slane %v2985_v11, %v3751_v37  ;;  %v3000_v59 = vrot.slane %v2986_v12, %v3751_v37 }
 0x8e3   :  { %p3558_p3 = por %p3557_p2, %p3556_p1 }
 0x8e4   :  { %v3005_v22 = vcombine.low %v2977_v13, %v2984_v20  ;;  %v3258_v23 = vcombine.high %v2977_v13, %v2984_v20  ;;  %v3021_v25 = vcombine.low %v2993_v21, %v3000_v59  ;;  %v3259_v26 = vcombine.high %v2993_v21, %v3000_v59 }
 0x8e5   :  { %p3559_p4 = pnand %p3558_p3, %p3552_p0 }
 0x8e6   :  { %v3012_v27 = vrot.slane %v3005_v22, %v3749_v30  ;;  %v3020_v28 = vrot.slane %v3258_v23, %v3749_v30  ;;  %v3028_v29 = vrot.slane %v3021_v25, %v3749_v30  ;;  %v3036_v31 = vrot.slane %v3259_v26, %v3749_v30 }
 0x8e8   :  { %v3038_v24 = vcombine.high %v3012_v27, %v3020_v28  ;;  %v3054_v32 = vcombine.high %v3028_v29, %v3036_v31  ;;  %v3037_v33 = vcombine.low %v3012_v27, %v3020_v28  ;;  %v3053_v34 = vcombine.low %v3028_v29, %v3036_v31 }
 0x8ea   :  { %v3052_v35 = vrot.slane %v3038_v24, %v3751_v37  ;;  %v3068_v38 = vrot.slane %v3054_v32, %v3751_v37  ;;  %v3045_v39 = vrot.slane %v3037_v33, %v3751_v37  ;;  %v3061_v40 = vrot.slane %v3053_v34, %v3751_v37  ;;  %v3550_v37 = vld [vmem:[%s4128_s0] sm:$0xff] }
 0x8eb   :  { %v1595_v15 = vadd.f32 %v3550_v37, %v1592_v45 }
 0x8ec   :  { %v3071_v41 = vcombine.low %v3052_v35, %v3068_v38  ;;  %v3070_v42 = vcombine.high %v3045_v39, %v3061_v40  ;;  %v3069_v43 = vcombine.low %v3045_v39, %v3061_v40  ;;  %v3072_v30 = vcombine.high %v3052_v35, %v3068_v38 }
 0x8ed   :  { %v1596_v16 = vsel %vm56_vm0, %v1595_v15, 0.0 }
 0x8ee   :  { %3078 = vrot.lane.b32.xlu0 %v3071_v41, %s3580_s11  ;;  %3074 = vrot.lane.b32.xlu1 %v3070_v42, %s3581_s12 }
 0x8f2   :  { %3082 = vrot.lane.b32.xlu1 %v3072_v30, %s3582_s13 }
 0x90d   :  { %1597 = vadd.xlane.f32.xlu0 %v1596_v16 }
 0x960   :  { %v3075_v47 = vpop.permute.xlu1 %3074  ;;  %v3079_v48 = vpop.permute.xlu0 %3078 }
 0x961   :  { %v3085_v46 = vsel %vm714_vm2, %v3069_v43, %v3075_v47 }
 0x962   :  { %v3086_v18 = vsel %vm1512_vm3, %v3085_v46, %v3079_v48 }
 0x964   :  { %v3083_v17 = vpop.permute.xlu1 %3082 }
 0x965   :  { %v3087_v0 = vsel %vm1514_vm4, %v3086_v18, %v3083_v17 }
 0x966   :  { %3500 = vmatmul.mubr.msk.f32.vlgmr.msra.gmra.mxu0 %vm56_vm0, %v3087_v0 }
 0x996   :  { %v1598_v5 = vpop.xlane.xlu0 %1597 }
 0x997   :  { %v1600_v3 = vmul.f32 0.03125, %v1598_v5 }
 0x999   :  { %v1601_v49 = vsub.f32 %v1595_v15, %v1600_v3 }
 0x99b   :  { %v1602_v4 = vmul.f32 %v1601_v49, %v1601_v49 }
 0x99d   :  { %v1603_v7 = vsel %vm56_vm0, %v1602_v4, 0.0 }
 0x99e   :  { %1604 = vadd.xlane.f32.xlu0 %v1603_v7 }
 0xa26   :  { %v3157_v6 = vpop.f32.mrf.mxu0 }
 0xa27   :  { %v3158_v9 = vadd.f32 %v3230_v44, %v3157_v6  ;;  %v1605_v51 = vpop.xlane.xlu0 %1604 }
 0xa28   :  { %v1606_v52 = vmul.f32 0.03125, %v1605_v51  ;;  %v3501_v53 = vpop.f32.mrf.mxu0 }
 0xa29   :  { %v3161_v54 = vadd.f32 %v3910_v36, %v3158_v9 }
 0xa2a   :  { %v1607_v55 = vadd.f32 1e-05, %v1606_v52 }
 0xa2b   :  { %v3162_v56 = vsel %vm56_vm0, %v3161_v54, 0.0 }
 0xa2c   :  { %3546 = vrsqrt.f32 %v1607_v55  ;;  %3163 = vadd.xlane.f32.xlu1 %v3162_v56 }
 0xa39   :  { %v3547_v57 = vpop.eup %3546 }
 0xa3a   :  { %v1609_v1 = vmul.f32 %v3547_v57, %v1601_v49 }
 0xa3c   :  { %v1616_v61 = vmul.f32 %v3232_v58, %v1609_v1 }
 0xa3e   :  { %v1623_v62 = vadd.f32 %v3233_v60, %v1616_v61 }
 0xa40   :  { %1624 = vst.msk [vmem:[%s4136_s8] sm:$0xff] %vm56_vm0, %v1623_v62 }
 0xab5   :  { %v3164_v36 = vpop.xlane.xlu1 %3163 }
 0xab6   :  { %v3165_v50 = vmul.f32 0.03125, %v3164_v36 }
 0xab8   :  { %v3166_v63 = vsub.f32 %v3161_v54, %v3165_v50 }
 0xaba   :  { %v3167_v14 = vmul.f32 %v3166_v63, %v3166_v63 }
 0xabc   :  { %v3168_v2 = vsel %vm56_vm0, %v3167_v14, 0.0 }
 0xabd   :  { %3169 = vadd.xlane.f32.xlu0 %v3168_v2 }
 0xabe   :  { %3562 = shalt.err (!%p3559_p4)
}
 0xabf   :  { %s3584_s7 = smov 128  }
 0xac0   :  { %3192 = dma.vmem_to_hbm [thread:$0]  %s3187_s3, 1024, %s4137_s9, [#allocation3], %s3584_s7, %s3584_s7, %s3581_s12  }
 0xb46   :  { %v3170_v19 = vpop.xlane.xlu0 %3169 }
 0xb47   :  { %v3171_v8 = vmul.f32 0.03125, %v3170_v19 }
 0xb49   :  { %v3172_v10 = vadd.f32 1e-05, %v3171_v8 }
 0xb4b   :  { %3548 = vrsqrt.f32 %v3172_v10 }
 0xb58   :  { %v3549_v11 = vpop.eup %3548 }
 0xb59   :  { %v3174_v12 = vmul.f32 %v3549_v11, %v3166_v63 }
 0xb5b   :  { %v3175_v13 = vmul.f32 %v3232_v58, %v3174_v12 }
 0xb5d   :  { %v3176_v20 = vadd.f32 %v3233_v60, %v3175_v13 }
 0xb5f   :  { %3261 = vst.msk [vmem:[%s4136_s8 + $0x8] sm:$0xff] %vm56_vm0, %v3176_v20 }
 0xb60   :  { %3571 = dma.done.wait [#allocation3], 1024  }
 0xb61   :  { %3572 = vsyncadd [#allocation3], 4294966272 }
 0xb62   :  { %3198 = vsyncpa [#allocation3], 1 }

// kernel: transformer_forward_pallas.15
= control target key start
LH: loop header
LB: loop body
LE: loop exit
PB: predicated region body
PF: predicated region fallthrough
CT: control target
= control target key end

     0   :  { %v3594_v2 = vmov 0.0   ;;  %s4168_s0 = inlined_call_operand.vmem [shape: f32[2,8,32], index: 0, kind: input, shape index: {}, may-alias: {0,1,2}]   ;;  %s4169_s1 = inlined_call_operand.vmem [shape: f32[2,8,32], index: 1, kind: input, shape index: {}, may-alias: {0,1,2}]   ;;  %s4170_s2 = inlined_call_operand.vmem [shape: f32[2,8,32], index: 2, kind: input, shape index: {}, may-alias: {0,1,2}]   ;;  %s4171_s3 = inlined_call_operand.vmem [shape: f32[2,8,8], index: 3, kind: input, shape index: {}]   ;;  %s4172_s4 = inlined_call_operand.vmem [shape: f32[3,32,32], index: 4, kind: input, shape index: {}]   ;;  %s4173_s5 = inlined_call_operand.vmem [shape: f32[32,32], index: 5, kind: input, shape index: {}]   ;;  %s4174_s6 = inlined_call_operand.vmem [shape: f32[1,32], index: 6, kind: input, shape index: {}]   ;;  %s4175_s7 = inlined_call_operand.vmem [shape: f32[1,32], index: 7, kind: input, shape index: {}]   ;;  %s4176_s8 = inlined_call_operand.vmem [shape: f32[1,32], index: 8, kind: input, shape index: {}]   ;;  %s4177_s9 = inlined_call_operand.vmem [shape: f32[2,8,32], index: 9, kind: output, shape index: {0}]   ;;  %s4178_s10 = inlined_call_operand.hbm [shape: f32[2,4,8,8], index: 10, kind: output, shape index: {1}]  }
   0x1   :  { %v3664_v0 = vld [vmem:[%s4172_s4 + $0x38] sm:$0xff]  ;;  %3366 = vmatprep.subr.mxu1 %v3594_v2  ;;  %3355 = vmatprep.subr.mxu0 %v3594_v2  ;;  %v3676_v3 = vld [vmem:[%s4172_s4 + $0x30] sm:$0xff]  ;;  %v3690_v5 = vld [vmem:[%s4172_s4 + $0x28] sm:$0xff] }
   0x2   :  { %v3669_v1 = vld [vmem:[%s4172_s4 + $0x18] sm:$0xff]  ;;  %v3681_v4 = vld [vmem:[%s4172_s4 + $0x10] sm:$0xff]  ;;  %3367 = vmatpush3.msra.mxu1 %v3664_v0  ;;  %v3695_v6 = vld [vmem:[%s4172_s4 + $0x8] sm:$0xff] }
   0x3   :  { %3356 = vmatpush3.msra.mxu0 %v3669_v1  ;;  %3368 = vmatprep.subr.mxu1 %v3594_v2 }
   0x4   :  { %3357 = vmatprep.subr.mxu0 %v3594_v2 }
   0x5   :  { %16 = vsyncpa [#allocation3], 0  ;;  %3369 = vmatpush3.msra.mxu1 %v3676_v3  ;;  %3358 = vmatpush3.msra.mxu0 %v3681_v4  ;;  %v3704_v7 = vld [vmem:[%s4172_s4 + $0x20] sm:$0xff]  ;;  %vm59_vm0 = vcmask 261120   ;;  %vm3595_vm1 = vmmov 0   ;;  %s3596_s13 = smov 104   ;;  %v294_v22 = vlaneseq }
   0x6   :  { %3370 = vmatprep.subr.mxu1 %v3594_v2  ;;  %3359 = vmatprep.subr.mxu0 %v3594_v2  ;;  %v57_v8 = vld [vmem:[%s4169_s1] sm:$0xff]  ;;  %s3597_s14 = smov 120   ;;  %s3598_s15 = smov 112   ;;  %v3744_v15 = vld [vmem:[%s4172_s4 + $0x58] sm:$0xff]  ;;  %v3749_v16 = vld [vmem:[%s4172_s4 + $0x50] sm:$0xff]  ;;  %vm717_vm2 = vcmask 64512  }
   0x7   :  { %3371 = vmatpush3.msra.mxu1 %v3690_v5  ;;  %3360 = vmatpush3.msra.mxu0 %v3695_v6  ;;  %v3714_v9 = vld [vmem:[%s4172_s4] sm:$0xff]  ;;  %v3756_v17 = vld [vmem:[%s4172_s4 + $0x48] sm:$0xff]  ;;  %v3599_v20 = vmov 1983009808   ;;  %v3600_v23 = vmov 1934713408  }
   0x8   :  { %3372 = vmatprep.subr.mxu1 %v3594_v2  ;;  %3374 = vmatprep.mubr.msk.f32.mxu1 %vm3595_vm1, %v3594_v2  ;;  %v56_v10 = vld [vmem:[%s4168_s0] sm:$0xff]  ;;  %v292_v21 = vunpack.c.l.s4 %v3599_v20  ;;  %v324_v24 = vunpack.c.l.s4 %v3600_v23  ;;  %v295_v26 = vshrl.u32 %v294_v22, 7  ;;  %s3601_s19 = smov 16   ;;  %s3602_s20 = smov 8   ;;  %vm1523_vm4 = vcmask 130048  }
   0x9   :  { %3373 = vmatpush3.msra.mxu1 %v3704_v7  ;;  %3361 = vmatprep.subr.mxu0 %v3594_v2  ;;  %v3763_v18 = vld [vmem:[%s4172_s4 + $0x40] sm:$0xff]  ;;  %s3603_s21 = smov 24   ;;  %vm1525_vm5 = vcmask 195584  }
   0xa   :  { %3375 = vmatmul.mubr.msk.f32.vlgmr.msra.gmra.mxu1 %vm59_vm0, %v57_v8  ;;  %3362 = vmatpush3.msra.mxu0 %v3714_v9  ;;  %v58_v19 = vld [vmem:[%s4170_s2] sm:$0xff]  ;;  %v293_v25 = vunpack.c.0.s8 %v292_v21  ;;  %v325_v29 = vunpack.c.0.s8 %v324_v24 }
   0xb   :  { %3363 = vmatprep.mubr.msk.f32.mxu0 %vm3595_vm1, %v3594_v2  ;;  %3388 = vmatprep.subr.mxu1 %v3594_v2 }
   0xc   :  { %3364 = vmatmul.mubr.msk.f32.vlgmr.msra.gmra.mxu0 %vm59_vm0, %v56_v10  ;;  %3390 = vmatprep.mubr.msk.f32.mxu1 %vm3595_vm1, %v3594_v2  ;;  %v3775_v30 = vsub.s32 %v293_v25, %v295_v26  ;;  %v3777_v37 = vsub.s32 %v325_v29, %v295_v26 }
   0xd   :  { %3377 = vmatprep.subr.mxu0 %v3594_v2  ;;  %3385 = vmatprep.mubr.msk.f32.mxu0 %vm3595_vm1, %v3594_v2 }
   0xe   :  { %3378 = vmatpush3.msra.mxu0 %v3744_v15 }
   0xf   :  { %3379 = vmatprep.subr.mxu0 %v3594_v2 }
  0x10   :  { %3380 = vmatpush3.msra.mxu0 %v3749_v16 }
  0x11   :  { %3381 = vmatprep.subr.mxu0 %v3594_v2 }
  0x12   :  { %3382 = vmatpush3.msra.mxu0 %v3756_v17 }
  0x13   :  { %3383 = vmatprep.subr.mxu0 %v3594_v2 }
  0x14   :  { %3384 = vmatpush3.msra.mxu0 %v3763_v18 }
  0x15   :  { %3386 = vmatmul.mubr.msk.f32.vlgmr.msra.gmra.mxu0 %vm59_vm0, %v58_v19  ;;  %3408 = vmatprep.subr.mxu0 %v3594_v2 }
  0x16   :  { %3410 = vmatprep.mubr.msk.f32.mxu0 %vm3595_vm1, %v3594_v2 }
  0xca   :  { %v202_v11 = vpop.f32.mrf.mxu1 }
  0xcb   :  { %432 = vrot.lane.b32.xlu1 %v202_v11, %s3596_s13  ;;  %426 = vrot.lane.b32.xlu0 %v202_v11, %s3597_s14 }
  0xcc   :  { %v129_v12 = vpop.f32.mrf.mxu0  ;;  %v3376_v13 = vpop.f32.mrf.mxu1 }
  0xce   :  { %v3365_v14 = vpop.f32.mrf.mxu0 }
  0xcf   :  { %429 = vrot.lane.b32.xlu0 %v202_v11, %s3598_s15  ;;  %280 = vrot.lane.b32.xlu1 %v129_v12, %s3597_s14 }
  0xd3   :  { %283 = vrot.lane.b32.xlu0 %v129_v12, %s3598_s15  ;;  %286 = vrot.lane.b32.xlu1 %v129_v12, %s3596_s13 }
 0x13d   :  { %v433_v27 = vpop.permute.xlu1 %432  ;;  %v427_v28 = vpop.permute.xlu0 %426 }
 0x13e   :  { %v451_v31 = vcombine.low %v427_v28, %v433_v27  ;;  %v452_v32 = vcombine.high %v427_v28, %v433_v27 }
 0x140   :  { %v459_v38 = vrot.slane %v451_v31, %v3775_v30  ;;  %v466_v39 = vrot.slane %v452_v32, %v3775_v30 }
 0x141   :  { %v430_v33 = vpop.permute.xlu0 %429  ;;  %v281_v34 = vpop.permute.xlu1 %280 }
 0x142   :  { %v435_v35 = vcombine.low %v202_v11, %v430_v33  ;;  %v436_v36 = vcombine.high %v202_v11, %v430_v33 }
 0x144   :  { %v443_v40 = vrot.slane %v435_v35, %v3775_v30  ;;  %v450_v41 = vrot.slane %v436_v36, %v3775_v30 }
 0x145   :  { %v284_v42 = vpop.permute.xlu0 %283  ;;  %v287_v43 = vpop.permute.xlu1 %286 }
 0x146   :  { %v467_v44 = vcombine.low %v443_v40, %v459_v38  ;;  %v468_v45 = vcombine.high %v443_v40, %v459_v38  ;;  %v483_v46 = vcombine.low %v450_v41, %v466_v39  ;;  %v484_v47 = vcombine.high %v450_v41, %v466_v39 }
 0x147   :  { %v289_v48 = vcombine.low %v129_v12, %v284_v42  ;;  %v290_v49 = vcombine.high %v129_v12, %v284_v42  ;;  %v305_v50 = vcombine.low %v281_v34, %v287_v43  ;;  %v306_v51 = vcombine.high %v281_v34, %v287_v43 }
 0x148   :  { %v475_v52 = vrot.slane %v467_v44, %v3777_v37  ;;  %v482_v53 = vrot.slane %v468_v45, %v3777_v37  ;;  %v491_v54 = vrot.slane %v483_v46, %v3777_v37  ;;  %v498_v55 = vrot.slane %v484_v47, %v3777_v37 }
 0x149   :  { %v297_v56 = vrot.slane %v289_v48, %v3775_v30  ;;  %v304_v57 = vrot.slane %v290_v49, %v3775_v30  ;;  %v313_v58 = vrot.slane %v305_v50, %v3775_v30  ;;  %v320_v59 = vrot.slane %v306_v51, %v3775_v30 }
 0x14a   :  { %v503_v60 = vcombine.low %v475_v52, %v482_v53  ;;  %v3232_v61 = vcombine.high %v475_v52, %v482_v53  ;;  %v519_v62 = vcombine.low %v491_v54, %v498_v55  ;;  %v3233_v63 = vcombine.high %v491_v54, %v498_v55 }
 0x14b   :  { %v321_v8 = vcombine.low %v297_v56, %v313_v58  ;;  %v322_v10 = vcombine.high %v297_v56, %v313_v58  ;;  %v337_v11 = vcombine.low %v304_v57, %v320_v59  ;;  %v338_v12 = vcombine.high %v304_v57, %v320_v59  ;;  %v3831_v59 = vpop.f32.mrf.mxu0 }
 0x14c   :  { %v510_v13 = vrot.slane %v503_v60, %v3775_v30  ;;  %v518_v14 = vrot.slane %v3232_v61, %v3775_v30  ;;  %v526_v19 = vrot.slane %v519_v62, %v3775_v30  ;;  %v534_v20 = vrot.slane %v3233_v63, %v3775_v30  ;;  %v1026_v61 = vld [vmem:[%s4171_s3] sm:$0xff] }
 0x14d   :  { %v329_v21 = vrot.slane %v321_v8, %v3777_v37  ;;  %v336_v22 = vrot.slane %v322_v10, %v3777_v37  ;;  %v345_v23 = vrot.slane %v337_v11, %v3777_v37  ;;  %v352_v24 = vrot.slane %v338_v12, %v3777_v37  ;;  %v3387_v60 = vpop.f32.mrf.mxu0 }
 0x14e   :  { %v535_v25 = vcombine.low %v510_v13, %v518_v14  ;;  %v551_v26 = vcombine.low %v526_v19, %v534_v20  ;;  %v536_v42 = vcombine.high %v510_v13, %v518_v14  ;;  %v552_v43 = vcombine.high %v526_v19, %v534_v20 }
 0x14f   :  { %v357_v27 = vcombine.low %v329_v21, %v336_v22  ;;  %v3230_v28 = vcombine.high %v329_v21, %v336_v22  ;;  %v373_v29 = vcombine.low %v345_v23, %v352_v24  ;;  %v3231_v31 = vcombine.high %v345_v23, %v352_v24 }
 0x150   :  { %v543_v32 = vrot.slane %v535_v25, %v3777_v37  ;;  %v559_v33 = vrot.slane %v551_v26, %v3777_v37  ;;  %v550_v50 = vrot.slane %v536_v42, %v3777_v37  ;;  %v566_v51 = vrot.slane %v552_v43, %v3777_v37 }
 0x151   :  { %v364_v34 = vrot.slane %v357_v27, %v3775_v30  ;;  %v372_v35 = vrot.slane %v3230_v28, %v3775_v30  ;;  %v380_v36 = vrot.slane %v373_v29, %v3775_v30  ;;  %v388_v38 = vrot.slane %v3231_v31, %v3775_v30 }
 0x152   :  { %v567_v39 = vcombine.low %v543_v32, %v559_v33  ;;  %v568_v49 = vcombine.high %v543_v32, %v559_v33  ;;  %v569_v55 = vcombine.low %v550_v50, %v566_v51  ;;  %v570_v57 = vcombine.high %v550_v50, %v566_v51 }
 0x153   :  { %v389_v40 = vcombine.low %v364_v34, %v372_v35  ;;  %v405_v41 = vcombine.low %v380_v36, %v388_v38  ;;  %v390_v46 = vcombine.high %v364_v34, %v372_v35  ;;  %v406_v47 = vcombine.high %v380_v36, %v388_v38 }
 0x154   :  { %3389 = vmatpush3.xpose.msk.msra.mxu1 %vm717_vm2, %v567_v39  ;;  %vm1027_vm3 = vcmp.gt.f32.partialorder %v1026_v61, 0.0 }
 0x155   :  { %3393 = vmatprep.subr.mxu1 %v3594_v2  ;;  %v397_v44 = vrot.slane %v389_v40, %v3777_v37  ;;  %v413_v45 = vrot.slane %v405_v41, %v3777_v37  ;;  %v404_v53 = vrot.slane %v390_v46, %v3777_v37  ;;  %v420_v54 = vrot.slane %v406_v47, %v3777_v37 }
 0x157   :  { %v421_v48 = vcombine.low %v397_v44, %v413_v45  ;;  %v422_v52 = vcombine.high %v397_v44, %v413_v45  ;;  %v423_v56 = vcombine.low %v404_v53, %v420_v54  ;;  %v424_v58 = vcombine.high %v404_v53, %v420_v54 }
 0x159   :  { %3391 = vmatmul.mubr.msk.f32.vlgmr.msra.gmra.mxu1 %vm717_vm2, %v421_v48 }
 0x15a   :  { %3394 = vmatpush3.xpose.msk.msra.mxu1 %vm717_vm2, %v568_v49  ;;  %3395 = vmatprep.mubr.msk.f32.mxu1 %vm3595_vm1, %v3594_v2 }
 0x15b   :  { %3398 = vmatprep.subr.mxu1 %v3594_v2 }
 0x15d   :  { %3396 = vmatmul.mubr.msk.f32.vlgmr.msra.gmra.mxu1 %vm717_vm2, %v422_v52 }
 0x15e   :  { %3399 = vmatpush3.xpose.msk.msra.mxu1 %vm717_vm2, %v569_v55  ;;  %3400 = vmatprep.mubr.msk.f32.mxu1 %vm3595_vm1, %v3594_v2 }
 0x15f   :  { %3403 = vmatprep.subr.mxu1 %v3594_v2 }
 0x161   :  { %3401 = vmatmul.mubr.msk.f32.vlgmr.msra.gmra.mxu1 %vm717_vm2, %v423_v56 }
 0x162   :  { %3404 = vmatpush3.xpose.msk.msra.mxu1 %vm717_vm2, %v570_v57  ;;  %3405 = vmatprep.mubr.msk.f32.mxu1 %vm3595_vm1, %v3594_v2 }
 0x163   :  { %3413 = vmatprep.subr.mxu1 %v3594_v2 }
 0x165   :  { %3406 = vmatmul.mubr.msk.f32.vlgmr.msra.gmra.mxu1 %vm717_vm2, %v424_v58 }
 0x166   :  { %3415 = vmatprep.mubr.msk.f32.mxu1 %vm3595_vm1, %v3594_v2 }
 0x219   :  { %v790_v62 = vpop.f32.mrf.mxu1 }
 0x21a   :  { %v1022_v63 = vmul.f32 0.17677669, %v790_v62 }
 0x21b   :  { %v3392_v8 = vpop.f32.mrf.mxu1 }
 0x21c   :  { %v1030_v10 = vsel %vm1027_vm3, %v1022_v63, -1e+10 }
 0x21d   :  { %v866_v11 = vpop.f32.mrf.mxu1  ;;  %v1034_v12 = vsel %vm717_vm2, %v1030_v10, -inf }
 0x21e   :  { %v1023_v13 = vmul.f32 0.17677669, %v866_v11  ;;  %1035 = vmax.xlane.f32.xlu0 %v1034_v12 }
 0x21f   :  { %v3397_v14 = vpop.f32.mrf.mxu1 }
 0x220   :  { %v1031_v19 = vsel %vm1027_vm3, %v1023_v13, -1e+10 }
 0x221   :  { %v942_v20 = vpop.f32.mrf.mxu1  ;;  %v1037_v21 = vsel %vm717_vm2, %v1031_v19, -inf }
 0x222   :  { %v1024_v22 = vmul.f32 0.17677669, %v942_v20  ;;  %1038 = vmax.xlane.f32.xlu1 %v1037_v21 }
 0x223   :  { %v3402_v23 = vpop.f32.mrf.mxu1 }
 0x224   :  { %v1032_v24 = vsel %vm1027_vm3, %v1024_v22, -1e+10 }
 0x225   :  { %v1018_v25 = vpop.f32.mrf.mxu1  ;;  %v1040_v26 = vsel %vm717_vm2, %v1032_v24, -inf }
 0x226   :  { %v1025_v27 = vmul.f32 0.17677669, %v1018_v25  ;;  %1041 = vmax.xlane.f32.xlu0 %v1040_v26 }
 0x227   :  { %v3407_v28 = vpop.f32.mrf.mxu1 }
 0x228   :  { %v1033_v29 = vsel %vm1027_vm3, %v1025_v27, -1e+10 }
 0x229   :  { %v1043_v31 = vsel %vm717_vm2, %v1033_v29, -inf }
 0x22a   :  { %1044 = vmax.xlane.f32.xlu0 %v1043_v31 }
 0x233   :  { %572 = vrot.lane.b32.xlu1 %v3831_v59, %s3597_s14 }
 0x2a7   :  { %v1036_v32 = vpop.xlane.xlu0 %1035 }
 0x2a8   :  { %v1046_v33 = vsub.f32 %v1030_v10, %v1036_v32 }
 0x2aa   :  { %v1050_v34 = vmul.f32 1.442695, %v1046_v33 }
 0x2ab   :  { %v1039_v35 = vpop.xlane.xlu1 %1038 }
 0x2ac   :  { %3535 = vpow2.f32 %v1050_v34  ;;  %v1047_v36 = vsub.f32 %v1031_v19, %v1039_v35 }
 0x2ae   :  { %v1052_v38 = vmul.f32 1.442695, %v1047_v36 }
 0x2af   :  { %v1042_v39 = vpop.xlane.xlu0 %1041  ;;  %v573_v53 = vpop.permute.xlu1 %572 }
 0x2b0   :  { %3537 = vpow2.f32 %v1052_v38  ;;  %v1048_v40 = vsub.f32 %v1032_v24, %v1042_v39 }
 0x2b2   :  { %v1054_v41 = vmul.f32 1.442695, %v1048_v40 }
 0x2b3   :  { %v1045_v42 = vpop.xlane.xlu0 %1044 }
 0x2b4   :  { %3539 = vpow2.f32 %v1054_v41  ;;  %v1049_v43 = vsub.f32 %v1033_v29, %v1045_v42 }
 0x2b6   :  { %v1056_v44 = vmul.f32 1.442695, %v1049_v43 }
 0x2b8   :  { %3541 = vpow2.f32 %v1056_v44 }
 0x2b9   :  { %v3536_v45 = vpop.eup %3535 }
 0x2ba   :  { %v1058_v46 = vsel %vm717_vm2, %v3536_v45, 0.0 }
 0x2bb   :  { %1059 = vadd.xlane.f32.xlu1 %v1058_v46 }
 0x2bd   :  { %v3538_v47 = vpop.eup %3537 }
 0x2be   :  { %v1061_v48 = vsel %vm717_vm2, %v3538_v47, 0.0 }
 0x2bf   :  { %1062 = vadd.xlane.f32.xlu0 %v1061_v48 }
 0x2c1   :  { %v3540_v49 = vpop.eup %3539 }
 0x2c2   :  { %v1064_v50 = vsel %vm717_vm2, %v3540_v49, 0.0 }
 0x2c3   :  { %1065 = vadd.xlane.f32.xlu1 %v1064_v50 }
 0x2c5   :  { %v3542_v51 = vpop.eup %3541 }
 0x2c6   :  { %v1067_v52 = vsel %vm717_vm2, %v3542_v51, 0.0 }
 0x2c7   :  { %1068 = vadd.xlane.f32.xlu0 %v1067_v52 }
 0x2d4   :  { %578 = vrot.lane.b32.xlu1 %v3831_v59, %s3596_s13 }
 0x2dd   :  { %575 = vrot.lane.b32.xlu0 %v3831_v59, %s3598_s15 }
 0x344   :  { %v1060_v54 = vpop.xlane.xlu1 %1059 }
 0x345   :  { %3543 = vrcp.f32 %v1060_v54 }
 0x348   :  { %v1063_v55 = vpop.xlane.xlu0 %1062 }
 0x349   :  { %3545 = vrcp.f32 %v1063_v55  ;;  %v3908_v55 = vld [vmem:[%s4173_s5 + $0x10] sm:$0xff] }
 0x34c   :  { %v1066_v56 = vpop.xlane.xlu1 %1065 }
 0x34d   :  { %3547 = vrcp.f32 %v1066_v56 }
 0x350   :  { %v1069_v57 = vpop.xlane.xlu0 %1068  ;;  %v579_v58 = vpop.permute.xlu1 %578 }
 0x351   :  { %3549 = vrcp.f32 %v1069_v57  ;;  %v597_v61 = vcombine.low %v573_v53, %v579_v58  ;;  %v598_v62 = vcombine.high %v573_v53, %v579_v58 }
 0x352   :  { %v3544_v60 = vpop.eup %3543 }
 0x353   :  { %v1074_v63 = vmul.f32 %v3544_v60, %v3536_v45  ;;  %v605_v13 = vrot.slane %v597_v61, %v3775_v30  ;;  %v612_v14 = vrot.slane %v598_v62, %v3775_v30 }
 0x354   :  { %v576_v8 = vpop.permute.xlu0 %575 }
 0x355   :  { %v581_v10 = vcombine.low %v3831_v59, %v576_v8  ;;  %v582_v11 = vcombine.high %v3831_v59, %v576_v8  ;;  %1078 = vst.msk [vmem:[#allocation2] sm:$0xff] %vm717_vm2, %v1074_v63 }
 0x356   :  { %v3546_v12 = vpop.eup %3545 }
 0x357   :  { %v589_v19 = vrot.slane %v581_v10, %v3775_v30  ;;  %v596_v20 = vrot.slane %v582_v11, %v3775_v30  ;;  %v1075_v21 = vmul.f32 %v3546_v12, %v3538_v47 }
 0x359   :  { %v613_v22 = vcombine.low %v589_v19, %v605_v13  ;;  %v614_v23 = vcombine.high %v589_v19, %v605_v13  ;;  %v629_v24 = vcombine.low %v596_v20, %v612_v14  ;;  %v630_v25 = vcombine.high %v596_v20, %v612_v14  ;;  %1079 = vst.msk [vmem:[#allocation2 + $0x8] sm:$0xff] %vm717_vm2, %v1075_v21 }
 0x35a   :  { %v3548_v26 = vpop.eup %3547 }
 0x35b   :  { %v621_v59 = vrot.slane %v613_v22, %v3777_v37  ;;  %v628_v27 = vrot.slane %v614_v23, %v3777_v37  ;;  %v637_v28 = vrot.slane %v629_v24, %v3777_v37  ;;  %v644_v29 = vrot.slane %v630_v25, %v3777_v37  ;;  %v3921_v23 = vld [vmem:[%s4173_s5 + $0x8] sm:$0xff]  ;;  %v3926_v24 = vld [vmem:[%s4173_s5] sm:$0xff] }
 0x35c   :  { %v1076_v31 = vmul.f32 %v3548_v26, %v3540_v49 }
 0x35d   :  { %v649_v32 = vcombine.low %v621_v59, %v628_v27  ;;  %v3234_v33 = vcombine.high %v621_v59, %v628_v27  ;;  %v665_v34 = vcombine.low %v637_v28, %v644_v29  ;;  %v3235_v35 = vcombine.high %v637_v28, %v644_v29 }
 0x35e   :  { %v3550_v36 = vpop.eup %3549  ;;  %1080 = vst.msk [vmem:[#allocation2 + $0x10] sm:$0xff] %vm717_vm2, %v1076_v31 }
 0x35f   :  { %v656_v38 = vrot.slane %v649_v32, %v3775_v30  ;;  %v664_v39 = vrot.slane %v3234_v33, %v3775_v30  ;;  %v672_v40 = vrot.slane %v665_v34, %v3775_v30  ;;  %v680_v41 = vrot.slane %v3235_v35, %v3775_v30 }
 0x360   :  { %v1077_v42 = vmul.f32 %v3550_v36, %v3542_v51 }
 0x361   :  { %v681_v43 = vcombine.low %v656_v38, %v664_v39  ;;  %v697_v44 = vcombine.low %v672_v40, %v680_v41  ;;  %v682_v45 = vcombine.high %v656_v38, %v664_v39  ;;  %v698_v46 = vcombine.high %v672_v40, %v680_v41 }
 0x362   :  { %1081 = vst.msk [vmem:[#allocation2 + $0x18] sm:$0xff] %vm717_vm2, %v1077_v42 }
 0x363   :  { %v689_v47 = vrot.slane %v681_v43, %v3777_v37  ;;  %v705_v48 = vrot.slane %v697_v44, %v3777_v37  ;;  %v696_v49 = vrot.slane %v682_v45, %v3777_v37  ;;  %v712_v50 = vrot.slane %v698_v46, %v3777_v37 }
 0x365   :  { %v713_v52 = vcombine.low %v689_v47, %v705_v48  ;;  %v714_v53 = vcombine.high %v689_v47, %v705_v48  ;;  %v715_v51 = vcombine.low %v696_v49, %v712_v50  ;;  %v716_v54 = vcombine.high %v696_v49, %v712_v50 }
 0x367   :  { %3409 = vmatpush3.msra.mxu0 %v713_v52  ;;  %3414 = vmatpush3.msra.mxu1 %v714_v53 }
 0x368   :  { %3411 = vmatmul.mubr.msk.f32.vlgmr.msra.gmra.mxu0 %vm717_vm2, %v1074_v63  ;;  %3416 = vmatmul.mubr.msk.f32.vlgmr.msra.gmra.mxu1 %vm717_vm2, %v1075_v21 }
 0x369   :  { %3418 = vmatprep.subr.mxu0 %v3594_v2  ;;  %3423 = vmatprep.subr.mxu1 %v3594_v2 }
 0x36a   :  { %3419 = vmatpush3.msra.mxu0 %v715_v51  ;;  %3424 = vmatpush3.msra.mxu1 %v716_v54 }
 0x36b   :  { %3420 = vmatprep.mubr.msk.f32.mxu0 %vm3595_vm1, %v3594_v2  ;;  %3425 = vmatprep.mubr.msk.f32.mxu1 %vm3595_vm1, %v3594_v2 }
 0x36c   :  { %3421 = vmatmul.mubr.msk.f32.vlgmr.msra.gmra.mxu0 %vm717_vm2, %v1076_v31  ;;  %3426 = vmatmul.mubr.msk.f32.vlgmr.msra.gmra.mxu1 %vm717_vm2, %v1077_v42  ;;  %v3943_v42 = vld [vmem:[%s4168_s0 + $0x8] sm:$0xff] }
 0x36d   :  { %3428 = vmatprep.subr.mxu0 %v3594_v2  ;;  %3439 = vmatprep.subr.mxu1 %v3594_v2 }
 0x36e   :  { %3440 = vmatpush3.msra.mxu1 %v3669_v1  ;;  %3436 = vmatprep.mubr.msk.f32.mxu0 %vm3595_vm1, %v3594_v2  ;;  %v3903_v1 = vld [vmem:[%s4173_s5 + $0x18] sm:$0xff] }
 0x36f   :  { %3441 = vmatprep.subr.mxu1 %v3594_v2  ;;  %3447 = vmatprep.mubr.msk.f32.mxu1 %vm3595_vm1, %v3594_v2 }
 0x370   :  { %3442 = vmatpush3.msra.mxu1 %v3681_v4  ;;  %3429 = vmatpush3.msra.mxu0 %v3903_v1 }
 0x371   :  { %3443 = vmatprep.subr.mxu1 %v3594_v2  ;;  %3430 = vmatprep.subr.mxu0 %v3594_v2 }
 0x372   :  { %3444 = vmatpush3.msra.mxu1 %v3695_v6  ;;  %3431 = vmatpush3.msra.mxu0 %v3908_v55 }
 0x373   :  { %3445 = vmatprep.subr.mxu1 %v3594_v2  ;;  %3432 = vmatprep.subr.mxu0 %v3594_v2 }
 0x374   :  { %3446 = vmatpush3.msra.mxu1 %v3714_v9  ;;  %3433 = vmatpush3.msra.mxu0 %v3921_v23 }
 0x375   :  { %3461 = vmatprep.subr.mxu1 %v3594_v2  ;;  %3434 = vmatprep.subr.mxu0 %v3594_v2 }
 0x376   :  { %3435 = vmatpush3.msra.mxu0 %v3926_v24  ;;  %3448 = vmatmul.mubr.msk.f32.vlgmr.msra.gmra.mxu1 %vm59_vm0, %v3943_v42 }
 0x377   :  { %3450 = vmatprep.subr.mxu0 %v3594_v2  ;;  %3462 = vmatpush3.msra.mxu1 %v3744_v15 }
 0x378   :  { %3469 = vmatprep.mubr.msk.f32.mxu1 %vm3595_vm1, %v3594_v2  ;;  %3463 = vmatprep.subr.mxu1 %v3594_v2 }
 0x379   :  { %3464 = vmatpush3.msra.mxu1 %v3749_v16 }
 0x37a   :  { %3465 = vmatprep.subr.mxu1 %v3594_v2 }
 0x37b   :  { %3466 = vmatpush3.msra.mxu1 %v3756_v17 }
 0x37c   :  { %3467 = vmatprep.subr.mxu1 %v3594_v2 }
 0x37d   :  { %3468 = vmatpush3.msra.mxu1 %v3763_v18  ;;  %v3255_v18 = vld [vmem:[%s4169_s1 + $0x8] sm:$0xff] }
 0x37e   :  { %3477 = vmatprep.subr.mxu1 %v3594_v2 }
 0x428   :  { %v1151_v4 = vpop.f32.mrf.mxu0  ;;  %v1224_v6 = vpop.f32.mrf.mxu1 }
 0x42a   :  { %v3412_v9 = vpop.f32.mrf.mxu0  ;;  %v3417_v56 = vpop.f32.mrf.mxu1 }
 0x42c   :  { %v1297_v57 = vpop.f32.mrf.mxu0  ;;  %v1370_v58 = vpop.f32.mrf.mxu1 }
 0x42d   :  { %v1374_v60 = vcombine.low %v1151_v4, %v1297_v57  ;;  %v1375_v61 = vcombine.high %v1151_v4, %v1297_v57  ;;  %v1390_v62 = vcombine.low %v1224_v6, %v1370_v58  ;;  %v1391_v63 = vcombine.high %v1224_v6, %v1370_v58  ;;  %v3256_v6 = vld [vmem:[%s4170_s2 + $0x8] sm:$0xff] }
 0x42e   :  { %v3422_v8 = vpop.f32.mrf.mxu0  ;;  %v3427_v10 = vpop.f32.mrf.mxu1  ;;  %3470 = vmatmul.mubr.msk.f32.vlgmr.msra.gmra.mxu1 %vm59_vm0, %v3256_v6 }
 0x42f   :  { %v1382_v11 = vrot.slane %v1374_v60, %v3775_v30  ;;  %v1389_v12 = vrot.slane %v1375_v61, %v3775_v30  ;;  %v1398_v13 = vrot.slane %v1390_v62, %v3775_v30  ;;  %v1405_v14 = vrot.slane %v1391_v63, %v3775_v30  ;;  %3479 = vmatprep.mubr.msk.f32.mxu1 %vm3595_vm1, %v3594_v2 }
 0x431   :  { %v1406_v19 = vcombine.low %v1382_v11, %v1398_v13  ;;  %v1407_v20 = vcombine.high %v1382_v11, %v1398_v13  ;;  %v1422_v21 = vcombine.low %v1389_v12, %v1405_v14  ;;  %v1423_v22 = vcombine.high %v1389_v12, %v1405_v14 }
 0x433   :  { %v1414_v25 = vrot.slane %v1406_v19, %v3777_v37  ;;  %v1421_v26 = vrot.slane %v1407_v20, %v3777_v37  ;;  %v1430_v59 = vrot.slane %v1422_v21, %v3777_v37  ;;  %v1437_v27 = vrot.slane %v1423_v22, %v3777_v37 }
 0x435   :  { %v1442_v28 = vcombine.low %v1414_v25, %v1421_v26  ;;  %v3248_v29 = vcombine.high %v1414_v25, %v1421_v26  ;;  %v1458_v31 = vcombine.low %v1430_v59, %v1437_v27  ;;  %v3249_v32 = vcombine.high %v1430_v59, %v1437_v27 }
 0x437   :  { %v1449_v33 = vrot.slane %v1442_v28, %v3775_v30  ;;  %v1457_v34 = vrot.slane %v3248_v29, %v3775_v30  ;;  %v1465_v35 = vrot.slane %v1458_v31, %v3775_v30  ;;  %v1473_v36 = vrot.slane %v3249_v32, %v3775_v30 }
 0x439   :  { %v1475_v38 = vcombine.high %v1449_v33, %v1457_v34  ;;  %v1491_v39 = vcombine.high %v1465_v35, %v1473_v36  ;;  %v1474_v40 = vcombine.low %v1449_v33, %v1457_v34  ;;  %v1490_v41 = vcombine.low %v1465_v35, %v1473_v36 }
 0x43b   :  { %v1489_v43 = vrot.slane %v1475_v38, %v3777_v37  ;;  %v1505_v44 = vrot.slane %v1491_v39, %v3777_v37  ;;  %v1482_v45 = vrot.slane %v1474_v40, %v3777_v37  ;;  %v1498_v46 = vrot.slane %v1490_v41, %v3777_v37 }
 0x43d   :  { %v1508_v47 = vcombine.low %v1489_v43, %v1505_v44  ;;  %v1507_v48 = vcombine.high %v1482_v45, %v1498_v46  ;;  %v1506_v49 = vcombine.low %v1482_v45, %v1498_v46  ;;  %v1509_v50 = vcombine.high %v1489_v43, %v1505_v44 }
 0x43f   :  { %1515 = vrot.lane.b32.xlu0 %v1508_v47, %s3601_s19  ;;  %1511 = vrot.lane.b32.xlu1 %v1507_v48, %s3602_s20 }
 0x443   :  { %1519 = vrot.lane.b32.xlu1 %v1509_v50, %s3603_s21 }
 0x4b1   :  { %v1512_v15 = vpop.permute.xlu1 %1511  ;;  %v1516_v16 = vpop.permute.xlu0 %1515 }
 0x4b2   :  { %v1522_v52 = vsel %vm717_vm2, %v1506_v49, %v1512_v15 }
 0x4b3   :  { %v1524_v51 = vsel %vm1523_vm4, %v1522_v52, %v1516_v16 }
 0x4b5   :  { %v1520_v53 = vpop.permute.xlu1 %1519 }
 0x4b6   :  { %v1526_v17 = vsel %vm1525_vm5, %v1524_v51, %v1520_v53 }
 0x4b7   :  { %3437 = vmatmul.mubr.msk.f32.vlgmr.msra.gmra.mxu0 %vm59_vm0, %v1526_v17 }
 0x4b8   :  { %3451 = vmatpush3.msra.mxu0 %v3664_v0  ;;  %3458 = vmatprep.mubr.msk.f32.mxu0 %vm3595_vm1, %v3594_v2  ;;  %v1711_v0 = vpop.f32.mrf.mxu1 }
 0x4b9   :  { %3452 = vmatprep.subr.mxu0 %v3594_v2  ;;  %1862 = vrot.lane.b32.xlu1 %v1711_v0, %s3597_s14 }
 0x4ba   :  { %3453 = vmatpush3.msra.mxu0 %v3676_v3  ;;  %v3449_v3 = vpop.f32.mrf.mxu1 }
 0x4bb   :  { %3454 = vmatprep.subr.mxu0 %v3594_v2 }
 0x4bc   :  { %3455 = vmatpush3.msra.mxu0 %v3690_v5 }
 0x4bd   :  { %3456 = vmatprep.subr.mxu0 %v3594_v2 }
 0x4be   :  { %3457 = vmatpush3.msra.mxu0 %v3704_v7 }
 0x4bf   :  { %3459 = vmatmul.mubr.msk.f32.vlgmr.msra.gmra.mxu0 %vm59_vm0, %v3255_v18  ;;  %3472 = vmatprep.subr.mxu0 %v3594_v2 }
 0x4c0   :  { %3474 = vmatprep.mubr.msk.f32.mxu0 %vm3595_vm1, %v3594_v2 }
 0x52b   :  { %v1863_v9 = vpop.permute.xlu1 %1862 }
 0x577   :  { %v3985_v5 = vpop.f32.mrf.mxu0 }
 0x579   :  { %v3438_v54 = vpop.f32.mrf.mxu0 }
 0x57f   :  { %v1784_v4 = vpop.f32.mrf.mxu0 }
 0x580   :  { %2011 = vrot.lane.b32.xlu1 %v1784_v4, %s3598_s15  ;;  %2008 = vrot.lane.b32.xlu0 %v1784_v4, %s3597_s14 }
 0x581   :  { %v3460_v7 = vpop.f32.mrf.mxu0 }
 0x584   :  { %1868 = vrot.lane.b32.xlu1 %v1711_v0, %s3596_s13  ;;  %2014 = vrot.lane.b32.xlu0 %v1784_v4, %s3596_s13 }
 0x588   :  { %1865 = vrot.lane.b32.xlu0 %v1711_v0, %s3598_s15 }
 0x5f2   :  { %v2012_v56 = vpop.permute.xlu1 %2011  ;;  %v2009_v57 = vpop.permute.xlu0 %2008 }
 0x5f3   :  { %v2017_v58 = vcombine.low %v1784_v4, %v2012_v56  ;;  %v2018_v60 = vcombine.high %v1784_v4, %v2012_v56 }
 0x5f5   :  { %v2025_v10 = vrot.slane %v2017_v58, %v3775_v30  ;;  %v2032_v11 = vrot.slane %v2018_v60, %v3775_v30 }
 0x5f6   :  { %v2015_v61 = vpop.permute.xlu0 %2014  ;;  %v1869_v62 = vpop.permute.xlu1 %1868 }
 0x5f7   :  { %v2033_v63 = vcombine.low %v2009_v57, %v2015_v61  ;;  %v2034_v8 = vcombine.high %v2009_v57, %v2015_v61  ;;  %v1887_v14 = vcombine.low %v1863_v9, %v1869_v62  ;;  %v1888_v19 = vcombine.high %v1863_v9, %v1869_v62 }
 0x5f9   :  { %v2041_v12 = vrot.slane %v2033_v63, %v3775_v30  ;;  %v2048_v13 = vrot.slane %v2034_v8, %v3775_v30  ;;  %v1895_v33 = vrot.slane %v1887_v14, %v3775_v30  ;;  %v1902_v34 = vrot.slane %v1888_v19, %v3775_v30 }
 0x5fa   :  { %v1866_v20 = vpop.permute.xlu0 %1865 }
 0x5fb   :  { %v2049_v21 = vcombine.low %v2025_v10, %v2041_v12  ;;  %v2050_v22 = vcombine.high %v2025_v10, %v2041_v12  ;;  %v2065_v25 = vcombine.low %v2032_v11, %v2048_v13  ;;  %v2066_v26 = vcombine.high %v2032_v11, %v2048_v13 }
 0x5fc   :  { %v1871_v59 = vcombine.low %v1711_v0, %v1866_v20  ;;  %v1872_v27 = vcombine.high %v1711_v0, %v1866_v20 }
 0x5fd   :  { %v2057_v28 = vrot.slane %v2049_v21, %v3777_v37  ;;  %v2064_v29 = vrot.slane %v2050_v22, %v3777_v37  ;;  %v2073_v31 = vrot.slane %v2065_v25, %v3777_v37  ;;  %v2080_v32 = vrot.slane %v2066_v26, %v3777_v37 }
 0x5fe   :  { %v1879_v35 = vrot.slane %v1871_v59, %v3775_v30  ;;  %v1886_v36 = vrot.slane %v1872_v27, %v3775_v30 }
 0x5ff   :  { %v2085_v38 = vcombine.low %v2057_v28, %v2064_v29  ;;  %v3262_v39 = vcombine.high %v2057_v28, %v2064_v29  ;;  %v2101_v40 = vcombine.low %v2073_v31, %v2080_v32  ;;  %v3263_v41 = vcombine.high %v2073_v31, %v2080_v32  ;;  %v4050_v29 = vpop.f32.mrf.mxu1  ;;  %v3274_v32 = vld [vmem:[%s4171_s3 + $0x8] sm:$0xff] }
 0x600   :  { %v1903_v43 = vcombine.low %v1879_v35, %v1895_v33  ;;  %v1904_v44 = vcombine.high %v1879_v35, %v1895_v33  ;;  %v1919_v45 = vcombine.low %v1886_v36, %v1902_v34  ;;  %v1920_v46 = vcombine.high %v1886_v36, %v1902_v34 }
 0x601   :  { %v2092_v47 = vrot.slane %v2085_v38, %v3775_v30  ;;  %v2100_v48 = vrot.slane %v3262_v39, %v3775_v30  ;;  %v2108_v49 = vrot.slane %v2101_v40, %v3775_v30  ;;  %v2116_v50 = vrot.slane %v3263_v41, %v3775_v30  ;;  %v3471_v31 = vpop.f32.mrf.mxu1 }
 0x602   :  { %v1911_v15 = vrot.slane %v1903_v43, %v3777_v37  ;;  %v1918_v16 = vrot.slane %v1904_v44, %v3777_v37  ;;  %v1927_v52 = vrot.slane %v1919_v45, %v3777_v37  ;;  %v1934_v53 = vrot.slane %v1920_v46, %v3777_v37 }
 0x603   :  { %v2117_v51 = vcombine.low %v2092_v47, %v2100_v48  ;;  %v2133_v17 = vcombine.low %v2108_v49, %v2116_v50  ;;  %v2118_v4 = vcombine.high %v2092_v47, %v2100_v48  ;;  %v2134_v7 = vcombine.high %v2108_v49, %v2116_v50 }
 0x604   :  { %v1939_v18 = vcombine.low %v1911_v15, %v1918_v16  ;;  %v3260_v0 = vcombine.high %v1911_v15, %v1918_v16  ;;  %v1955_v3 = vcombine.low %v1927_v52, %v1934_v53  ;;  %v3261_v54 = vcombine.high %v1927_v52, %v1934_v53 }
 0x605   :  { %v2125_v6 = vrot.slane %v2117_v51, %v3777_v37  ;;  %v2141_v9 = vrot.slane %v2133_v17, %v3777_v37  ;;  %v2132_v12 = vrot.slane %v2118_v4, %v3777_v37  ;;  %v2148_v13 = vrot.slane %v2134_v7, %v3777_v37 }
 0x606   :  { %v1946_v56 = vrot.slane %v1939_v18, %v3775_v30  ;;  %v1954_v57 = vrot.slane %v3260_v0, %v3775_v30  ;;  %v1962_v58 = vrot.slane %v1955_v3, %v3775_v30  ;;  %v1970_v60 = vrot.slane %v3261_v54, %v3775_v30 }
 0x607   :  { %v2149_v61 = vcombine.low %v2125_v6, %v2141_v9  ;;  %v2150_v62 = vcombine.high %v2125_v6, %v2141_v9  ;;  %v2151_v26 = vcombine.low %v2132_v12, %v2148_v13  ;;  %v2152_v59 = vcombine.high %v2132_v12, %v2148_v13 }
 0x608   :  { %v1971_v63 = vcombine.low %v1946_v56, %v1954_v57  ;;  %v1972_v8 = vcombine.high %v1946_v56, %v1954_v57  ;;  %v1987_v10 = vcombine.low %v1962_v58, %v1970_v60  ;;  %v1988_v11 = vcombine.high %v1962_v58, %v1970_v60 }
 0x609   :  { %3473 = vmatpush3.xpose.msk.msra.mxu0 %vm717_vm2, %v2149_v61  ;;  %3478 = vmatpush3.xpose.msk.msra.mxu1 %vm717_vm2, %v2150_v62  ;;  %vm2609_vm6 = vcmp.gt.f32.partialorder %v3274_v32, 0.0 }
 0x60a   :  { %3482 = vmatprep.subr.mxu0 %v3594_v2  ;;  %3487 = vmatprep.subr.mxu1 %v3594_v2  ;;  %v1979_v14 = vrot.slane %v1971_v63, %v3777_v37  ;;  %v1995_v19 = vrot.slane %v1987_v10, %v3777_v37  ;;  %v1986_v22 = vrot.slane %v1972_v8, %v3777_v37 }
 0x60b   :  { %v2002_v25 = vrot.slane %v1988_v11, %v3777_v37 }
 0x60c   :  { %v2003_v20 = vcombine.low %v1979_v14, %v1995_v19  ;;  %v2004_v21 = vcombine.high %v1979_v14, %v1995_v19 }
 0x60d   :  { %v2005_v27 = vcombine.low %v1986_v22, %v2002_v25  ;;  %v2006_v28 = vcombine.high %v1986_v22, %v2002_v25 }
 0x60e   :  { %3475 = vmatmul.mubr.msk.f32.vlgmr.msra.gmra.mxu0 %vm717_vm2, %v2003_v20  ;;  %3480 = vmatmul.mubr.msk.f32.vlgmr.msra.gmra.mxu1 %vm717_vm2, %v2004_v21 }
 0x60f   :  { %3483 = vmatpush3.xpose.msk.msra.mxu0 %vm717_vm2, %v2151_v26  ;;  %3488 = vmatpush3.xpose.msk.msra.mxu1 %vm717_vm2, %v2152_v59 }
 0x610   :  { %3484 = vmatprep.mubr.msk.f32.mxu0 %vm3595_vm1, %v3594_v2  ;;  %3489 = vmatprep.mubr.msk.f32.mxu1 %vm3595_vm1, %v3594_v2 }
 0x611   :  { %3492 = vmatprep.subr.mxu0 %v3594_v2  ;;  %3497 = vmatprep.subr.mxu1 %v3594_v2 }
 0x612   :  { %3485 = vmatmul.mubr.msk.f32.vlgmr.msra.gmra.mxu0 %vm717_vm2, %v2005_v27  ;;  %3490 = vmatmul.mubr.msk.f32.vlgmr.msra.gmra.mxu1 %vm717_vm2, %v2006_v28 }
 0x613   :  { %3494 = vmatprep.mubr.msk.f32.mxu0 %vm3595_vm1, %v3594_v2  ;;  %3499 = vmatprep.mubr.msk.f32.mxu1 %vm3595_vm1, %v3594_v2 }
 0x6ce   :  { %v2371_v33 = vpop.f32.mrf.mxu0  ;;  %v2447_v34 = vpop.f32.mrf.mxu1 }
 0x6cf   :  { %v2603_v35 = vmul.f32 0.17677669, %v2371_v33  ;;  %v2604_v36 = vmul.f32 0.17677669, %v2447_v34 }
 0x6d0   :  { %v3476_v38 = vpop.f32.mrf.mxu0  ;;  %v3481_v39 = vpop.f32.mrf.mxu1 }
 0x6d1   :  { %v2613_v40 = vsel %vm2609_vm6, %v2604_v36, -1e+10  ;;  %v2612_v41 = vsel %vm2609_vm6, %v2603_v35, -1e+10 }
 0x6d2   :  { %v2523_v43 = vpop.f32.mrf.mxu0  ;;  %v2599_v44 = vpop.f32.mrf.mxu1  ;;  %v2619_v45 = vsel %vm717_vm2, %v2613_v40, -inf  ;;  %v2616_v46 = vsel %vm717_vm2, %v2612_v41, -inf }
 0x6d3   :  { %v2605_v47 = vmul.f32 0.17677669, %v2523_v43  ;;  %v2606_v48 = vmul.f32 0.17677669, %v2599_v44  ;;  %2620 = vmax.xlane.f32.xlu1 %v2619_v45  ;;  %2617 = vmax.xlane.f32.xlu0 %v2616_v46 }
 0x6d4   :  { %v3486_v49 = vpop.f32.mrf.mxu0  ;;  %v3491_v50 = vpop.f32.mrf.mxu1 }
 0x6d5   :  { %v2614_v15 = vsel %vm2609_vm6, %v2605_v47, -1e+10  ;;  %v2615_v52 = vsel %vm2609_vm6, %v2606_v48, -1e+10 }
 0x6d6   :  { %v2622_v16 = vsel %vm717_vm2, %v2614_v15, -inf  ;;  %v2625_v53 = vsel %vm717_vm2, %v2615_v52, -inf }
 0x6d7   :  { %2623 = vmax.xlane.f32.xlu0 %v2622_v16 }
 0x6db   :  { %2626 = vmax.xlane.f32.xlu0 %v2625_v53 }
 0x6e4   :  { %2154 = vrot.lane.b32.xlu1 %v4050_v29, %s3597_s14 }
 0x75c   :  { %v2621_v51 = vpop.xlane.xlu1 %2620  ;;  %v2618_v17 = vpop.xlane.xlu0 %2617 }
 0x75d   :  { %v2629_v18 = vsub.f32 %v2613_v40, %v2621_v51  ;;  %v2628_v0 = vsub.f32 %v2612_v41, %v2618_v17 }
 0x75f   :  { %v2634_v3 = vmul.f32 1.442695, %v2629_v18  ;;  %v2632_v54 = vmul.f32 1.442695, %v2628_v0 }
 0x760   :  { %v2624_v4 = vpop.xlane.xlu0 %2623  ;;  %v2155_v12 = vpop.permute.xlu1 %2154 }
 0x761   :  { %3551 = vpow2.f32 %v2634_v3  ;;  %v2630_v7 = vsub.f32 %v2614_v15, %v2624_v4 }
 0x762   :  { %3553 = vpow2.f32 %v2632_v54 }
 0x763   :  { %v2636_v6 = vmul.f32 1.442695, %v2630_v7 }
 0x764   :  { %v2627_v9 = vpop.xlane.xlu0 %2626 }
 0x765   :  { %3555 = vpow2.f32 %v2636_v6  ;;  %v2631_v56 = vsub.f32 %v2615_v52, %v2627_v9 }
 0x767   :  { %v2638_v57 = vmul.f32 1.442695, %v2631_v56 }
 0x769   :  { %3557 = vpow2.f32 %v2638_v57 }
 0x76e   :  { %v3552_v58 = vpop.eup %3551 }
 0x76f   :  { %v3554_v60 = vpop.eup %3553  ;;  %v2643_v61 = vsel %vm717_vm2, %v3552_v58, 0.0 }
 0x770   :  { %v2640_v62 = vsel %vm717_vm2, %v3554_v60, 0.0  ;;  %2644 = vadd.xlane.f32.xlu0 %v2643_v61 }
 0x771   :  { %2641 = vadd.xlane.f32.xlu1 %v2640_v62 }
 0x772   :  { %v3556_v63 = vpop.eup %3555 }
 0x773   :  { %v2646_v8 = vsel %vm717_vm2, %v3556_v63, 0.0 }
 0x775   :  { %2647 = vadd.xlane.f32.xlu1 %v2646_v8 }
 0x776   :  { %v3558_v10 = vpop.eup %3557 }
 0x777   :  { %v2649_v11 = vsel %vm717_vm2, %v3558_v10, 0.0 }
 0x778   :  { %2650 = vadd.xlane.f32.xlu0 %v2649_v11 }
 0x786   :  { %2160 = vrot.lane.b32.xlu1 %v4050_v29, %s3596_s13 }
 0x78e   :  { %2157 = vrot.lane.b32.xlu0 %v4050_v29, %s3598_s15 }
 0x7f9   :  { %v2645_v13 = vpop.xlane.xlu0 %2644 }
 0x7fa   :  { %v2642_v14 = vpop.xlane.xlu1 %2641  ;;  %3559 = vrcp.f32 %v2645_v13 }
 0x7fb   :  { %3561 = vrcp.f32 %v2642_v14 }
 0x7fe   :  { %v2648_v19 = vpop.xlane.xlu1 %2647 }
 0x7ff   :  { %3563 = vrcp.f32 %v2648_v19 }
 0x801   :  { %v2651_v20 = vpop.xlane.xlu0 %2650 }
 0x802   :  { %v2161_v21 = vpop.permute.xlu1 %2160  ;;  %3565 = vrcp.f32 %v2651_v20 }
 0x803   :  { %v2179_v22 = vcombine.low %v2155_v12, %v2161_v21  ;;  %v2180_v25 = vcombine.high %v2155_v12, %v2161_v21 }
 0x805   :  { %v2158_v26 = vpop.permute.xlu0 %2157  ;;  %v2187_v31 = vrot.slane %v2179_v22, %v3775_v30  ;;  %v2194_v33 = vrot.slane %v2180_v25, %v3775_v30 }
 0x806   :  { %v2163_v59 = vcombine.low %v4050_v29, %v2158_v26  ;;  %v2164_v27 = vcombine.high %v4050_v29, %v2158_v26 }
 0x807   :  { %v3560_v28 = vpop.eup %3559 }
 0x808   :  { %v3562_v32 = vpop.eup %3561  ;;  %v2171_v34 = vrot.slane %v2163_v59, %v3775_v30  ;;  %v2178_v35 = vrot.slane %v2164_v27, %v3775_v30  ;;  %v2657_v36 = vmul.f32 %v3560_v28, %v3552_v58 }
 0x809   :  { %v2656_v38 = vmul.f32 %v3562_v32, %v3554_v60 }
 0x80a   :  { %v2195_v39 = vcombine.low %v2171_v34, %v2187_v31  ;;  %v2196_v40 = vcombine.high %v2171_v34, %v2187_v31  ;;  %v2211_v41 = vcombine.low %v2178_v35, %v2194_v33  ;;  %v2212_v43 = vcombine.high %v2178_v35, %v2194_v33  ;;  %2662 = vst.msk [vmem:[#allocation2 + $0x28] sm:$0xff] %vm717_vm2, %v2657_v36 }
 0x80b   :  { %2661 = vst.msk [vmem:[#allocation2 + $0x20] sm:$0xff] %vm717_vm2, %v2656_v38 }
 0x80c   :  { %v3564_v29 = vpop.eup %3563  ;;  %v2203_v44 = vrot.slane %v2195_v39, %v3777_v37  ;;  %v2210_v45 = vrot.slane %v2196_v40, %v3777_v37  ;;  %v2219_v46 = vrot.slane %v2211_v41, %v3777_v37  ;;  %v2226_v47 = vrot.slane %v2212_v43, %v3777_v37 }
 0x80d   :  { %v2658_v48 = vmul.f32 %v3564_v29, %v3556_v63 }
 0x80e   :  { %v2231_v49 = vcombine.low %v2203_v44, %v2210_v45  ;;  %v3264_v50 = vcombine.high %v2203_v44, %v2210_v45  ;;  %v2247_v15 = vcombine.low %v2219_v46, %v2226_v47  ;;  %v3265_v16 = vcombine.high %v2219_v46, %v2226_v47 }
 0x80f   :  { %v3566_v52 = vpop.eup %3565  ;;  %2663 = vst.msk [vmem:[#allocation2 + $0x30] sm:$0xff] %vm717_vm2, %v2658_v48 }
 0x810   :  { %v2238_v53 = vrot.slane %v2231_v49, %v3775_v30  ;;  %v2246_v51 = vrot.slane %v3264_v50, %v3775_v30  ;;  %v2254_v17 = vrot.slane %v2247_v15, %v3775_v30  ;;  %v2262_v18 = vrot.slane %v3265_v16, %v3775_v30 }
 0x811   :  { %v2659_v0 = vmul.f32 %v3566_v52, %v3558_v10 }
 0x812   :  { %v2263_v3 = vcombine.low %v2238_v53, %v2246_v51  ;;  %v2279_v54 = vcombine.low %v2254_v17, %v2262_v18  ;;  %v2264_v4 = vcombine.high %v2238_v53, %v2246_v51  ;;  %v2280_v7 = vcombine.high %v2254_v17, %v2262_v18  ;;  %v3250_v53 = vld [vmem:[%s4174_s6] ss:$0 sm:$0xff] }
 0x813   :  { %2664 = vst.msk [vmem:[#allocation2 + $0x38] sm:$0xff] %vm717_vm2, %v2659_v0  ;;  %v1603_v51 = vadd.f32 %v3250_v53, %v3985_v5 }
 0x814   :  { %v2271_v6 = vrot.slane %v2263_v3, %v3777_v37  ;;  %v2287_v9 = vrot.slane %v2279_v54, %v3777_v37  ;;  %v2278_v56 = vrot.slane %v2264_v4, %v3777_v37  ;;  %v2294_v57 = vrot.slane %v2280_v7, %v3777_v37 }
 0x816   :  { %v2295_v58 = vcombine.low %v2271_v6, %v2287_v9  ;;  %v2296_v60 = vcombine.high %v2271_v6, %v2287_v9  ;;  %v2297_v61 = vcombine.low %v2278_v56, %v2294_v57  ;;  %v2298_v62 = vcombine.high %v2278_v56, %v2294_v57 }
 0x818   :  { %3493 = vmatpush3.msra.mxu0 %v2295_v58  ;;  %3498 = vmatpush3.msra.mxu1 %v2296_v60 }
 0x819   :  { %3495 = vmatmul.mubr.msk.f32.vlgmr.msra.gmra.mxu0 %vm717_vm2, %v2656_v38  ;;  %3500 = vmatmul.mubr.msk.f32.vlgmr.msra.gmra.mxu1 %vm717_vm2, %v2657_v36 }
 0x81a   :  { %3502 = vmatprep.subr.mxu0 %v3594_v2  ;;  %3507 = vmatprep.subr.mxu1 %v3594_v2 }
 0x81b   :  { %3503 = vmatpush3.msra.mxu0 %v2297_v61  ;;  %3508 = vmatpush3.msra.mxu1 %v2298_v62 }
 0x81c   :  { %3504 = vmatprep.mubr.msk.f32.mxu0 %vm3595_vm1, %v3594_v2  ;;  %3509 = vmatprep.mubr.msk.f32.mxu1 %vm3595_vm1, %v3594_v2 }
 0x81d   :  { %3505 = vmatmul.mubr.msk.f32.vlgmr.msra.gmra.mxu0 %vm717_vm2, %v2658_v48  ;;  %3510 = vmatmul.mubr.msk.f32.vlgmr.msra.gmra.mxu1 %vm717_vm2, %v2659_v0 }
 0x81e   :  { %3512 = vmatprep.subr.mxu0 %v3594_v2  ;;  %3520 = vmatprep.mubr.msk.f32.mxu0 %vm3595_vm1, %v3594_v2 }
 0x81f   :  { %3513 = vmatpush3.msra.mxu0 %v3903_v1 }
 0x820   :  { %3514 = vmatprep.subr.mxu0 %v3594_v2 }
 0x821   :  { %3515 = vmatpush3.msra.mxu0 %v3908_v55 }
 0x822   :  { %3516 = vmatprep.subr.mxu0 %v3594_v2 }
 0x823   :  { %3517 = vmatpush3.msra.mxu0 %v3921_v23 }
 0x824   :  { %3518 = vmatprep.subr.mxu0 %v3594_v2 }
 0x825   :  { %3519 = vmatpush3.msra.mxu0 %v3926_v24 }
 0x8d9   :  { %v2734_v63 = vpop.f32.mrf.mxu0  ;;  %v2807_v8 = vpop.f32.mrf.mxu1 }
 0x8db   :  { %v3496_v10 = vpop.f32.mrf.mxu0  ;;  %v3501_v11 = vpop.f32.mrf.mxu1 }
 0x8dd   :  { %v2880_v12 = vpop.f32.mrf.mxu0  ;;  %v2953_v13 = vpop.f32.mrf.mxu1 }
 0x8de   :  { %v2957_v14 = vcombine.low %v2734_v63, %v2880_v12  ;;  %v2958_v1 = vcombine.high %v2734_v63, %v2880_v12  ;;  %v2973_v19 = vcombine.low %v2807_v8, %v2953_v13  ;;  %v2974_v20 = vcombine.high %v2807_v8, %v2953_v13 }
 0x8df   :  { %v3506_v21 = vpop.f32.mrf.mxu0  ;;  %v3511_v55 = vpop.f32.mrf.mxu1 }
 0x8e0   :  { %v2965_v22 = vrot.slane %v2957_v14, %v3775_v30  ;;  %v2972_v23 = vrot.slane %v2958_v1, %v3775_v30  ;;  %v2981_v2 = vrot.slane %v2973_v19, %v3775_v30  ;;  %v2988_v24 = vrot.slane %v2974_v20, %v3775_v30  ;;  %v3252_v14 = vld [vmem:[%s4175_s7] ss:$0 sm:$0xff]  ;;  %s3604_s7 = smov [#allocation2]  }
 0x8e1   :  { %v3253_v19 = vld [vmem:[%s4176_s8] ss:$0 sm:$0xff]  ;;  %s3206_s29 = sshll.u32 %s3604_s7, 4  ;;  %s3207_s29 = int_to_ptr.vmem [resolvable:$true] %s3206_s29 }
 0x8e2   :  { %v2989_v25 = vcombine.low %v2965_v22, %v2981_v2  ;;  %v2990_v26 = vcombine.high %v2965_v22, %v2981_v2  ;;  %v3005_v59 = vcombine.low %v2972_v23, %v2988_v24  ;;  %v3006_v27 = vcombine.high %v2972_v23, %v2988_v24  ;;  %s3572_s30 = scalar_lea.vmem %s3207_s29, 1024  ;;  %p3577_p1 = scmp.lt.s32.totalorder %s3207_s29, %s3207_s29 }
 0x8e3   :  { %p3573_p0 = scmp.ne.s32.totalorder %s3207_s29, %s3572_s30  ;;  %p3578_p2 = scmp.lt.s32.totalorder %s3572_s30, %s3572_s30 }
 0x8e4   :  { %v2997_v28 = vrot.slane %v2989_v25, %v3777_v37  ;;  %v3004_v31 = vrot.slane %v2990_v26, %v3777_v37  ;;  %v3013_v32 = vrot.slane %v3005_v59, %v3777_v37  ;;  %v3020_v33 = vrot.slane %v3006_v27, %v3777_v37 }
 0x8e5   :  { %p3579_p3 = por %p3578_p2, %p3577_p1 }
 0x8e6   :  { %v3025_v34 = vcombine.low %v2997_v28, %v3004_v31  ;;  %v3279_v35 = vcombine.high %v2997_v28, %v3004_v31  ;;  %v3041_v36 = vcombine.low %v3013_v32, %v3020_v33  ;;  %v3280_v38 = vcombine.high %v3013_v32, %v3020_v33 }
 0x8e7   :  { %p3580_p4 = pnand %p3579_p3, %p3573_p0 }
 0x8e8   :  { %v3032_v39 = vrot.slane %v3025_v34, %v3775_v30  ;;  %v3040_v40 = vrot.slane %v3279_v35, %v3775_v30  ;;  %v3048_v41 = vrot.slane %v3041_v36, %v3775_v30  ;;  %v3056_v43 = vrot.slane %v3280_v38, %v3775_v30 }
 0x8ea   :  { %v3058_v29 = vcombine.high %v3032_v39, %v3040_v40  ;;  %v3074_v44 = vcombine.high %v3048_v41, %v3056_v43  ;;  %v3057_v45 = vcombine.low %v3032_v39, %v3040_v40  ;;  %v3073_v46 = vcombine.low %v3048_v41, %v3056_v43 }
 0x8ec   :  { %v3072_v47 = vrot.slane %v3058_v29, %v3777_v37  ;;  %v3088_v48 = vrot.slane %v3074_v44, %v3777_v37  ;;  %v3065_v49 = vrot.slane %v3057_v45, %v3777_v37  ;;  %v3081_v50 = vrot.slane %v3073_v46, %v3777_v37  ;;  %v3571_v37 = vld [vmem:[%s4168_s0] sm:$0xff] }
 0x8ed   :  { %v1606_v17 = vadd.f32 %v3571_v37, %v1603_v51 }
 0x8ee   :  { %v3091_v15 = vcombine.low %v3072_v47, %v3088_v48  ;;  %v3090_v16 = vcombine.high %v3065_v49, %v3081_v50  ;;  %v3089_v52 = vcombine.low %v3065_v49, %v3081_v50  ;;  %v3092_v30 = vcombine.high %v3072_v47, %v3088_v48 }
 0x8ef   :  { %v1607_v18 = vsel %vm59_vm0, %v1606_v17, 0.0 }
 0x8f0   :  { %3098 = vrot.lane.b32.xlu0 %v3091_v15, %s3601_s19  ;;  %3094 = vrot.lane.b32.xlu1 %v3090_v16, %s3602_s20 }
 0x8f4   :  { %3102 = vrot.lane.b32.xlu1 %v3092_v30, %s3603_s21 }
 0x90f   :  { %1608 = vadd.xlane.f32.xlu0 %v1607_v18 }
 0x962   :  { %v3095_v0 = vpop.permute.xlu1 %3094  ;;  %v3099_v3 = vpop.permute.xlu0 %3098 }
 0x963   :  { %v3105_v54 = vsel %vm717_vm2, %v3089_v52, %v3095_v0 }
 0x964   :  { %v3106_v7 = vsel %vm1523_vm4, %v3105_v54, %v3099_v3 }
 0x966   :  { %v3103_v4 = vpop.permute.xlu1 %3102 }
 0x967   :  { %v3107_v6 = vsel %vm1525_vm5, %v3106_v7, %v3103_v4 }
 0x968   :  { %3521 = vmatmul.mubr.msk.f32.vlgmr.msra.gmra.mxu0 %vm59_vm0, %v3107_v6 }
 0x998   :  { %v1609_v5 = vpop.xlane.xlu0 %1608 }
 0x999   :  { %v1611_v9 = vmul.f32 0.03125, %v1609_v5 }
 0x99b   :  { %v1612_v56 = vsub.f32 %v1606_v17, %v1611_v9 }
 0x99d   :  { %v1613_v57 = vmul.f32 %v1612_v56, %v1612_v56 }
 0x99f   :  { %v1614_v58 = vsel %vm59_vm0, %v1613_v57, 0.0 }
 0x9a0   :  { %1615 = vadd.xlane.f32.xlu0 %v1614_v58 }
 0xa28   :  { %v3177_v60 = vpop.f32.mrf.mxu0 }
 0xa29   :  { %v3178_v61 = vadd.f32 %v3250_v53, %v3177_v60  ;;  %v1616_v62 = vpop.xlane.xlu0 %1615 }
 0xa2a   :  { %v1617_v63 = vmul.f32 0.03125, %v1616_v62  ;;  %v3522_v8 = vpop.f32.mrf.mxu0 }
 0xa2b   :  { %v3181_v10 = vadd.f32 %v3943_v42, %v3178_v61 }
 0xa2c   :  { %v1618_v11 = vadd.f32 1e-05, %v1617_v63 }
 0xa2d   :  { %v3182_v12 = vsel %vm59_vm0, %v3181_v10, 0.0 }
 0xa2e   :  { %3567 = vrsqrt.f32 %v1618_v11  ;;  %3183 = vadd.xlane.f32.xlu1 %v3182_v12 }
 0xa3b   :  { %v3568_v13 = vpop.eup %3567 }
 0xa3c   :  { %v1620_v1 = vmul.f32 %v3568_v13, %v1612_v56 }
 0xa3e   :  { %v1627_v20 = vmul.f32 %v3252_v14, %v1620_v1 }
 0xa40   :  { %v1634_v21 = vadd.f32 %v3253_v19, %v1627_v20 }
 0xa42   :  { %1635 = vst.msk [vmem:[%s4177_s9] sm:$0xff] %vm59_vm0, %v1634_v21 }
 0xab7   :  { %v3184_v42 = vpop.xlane.xlu1 %3183 }
 0xab8   :  { %v3185_v55 = vmul.f32 0.03125, %v3184_v42 }
 0xaba   :  { %v3186_v22 = vsub.f32 %v3181_v10, %v3185_v55 }
 0xabc   :  { %v3187_v23 = vmul.f32 %v3186_v22, %v3186_v22 }
 0xabe   :  { %v3188_v2 = vsel %vm59_vm0, %v3187_v23, 0.0 }
 0xabf   :  { %3189 = vadd.xlane.f32.xlu0 %v3188_v2 }
 0xac0   :  { %3583 = shalt.err (!%p3580_p4)
}
 0xac1   :  { %s3605_s8 = smov 128  }
 0xac2   :  { %3212 = dma.vmem_to_hbm [thread:$0]  %s3207_s29, 1024, %s4178_s10, [#allocation3], %s3605_s8, %s3605_s8, %s3602_s20  }
 0xb48   :  { %v3190_v24 = vpop.xlane.xlu0 %3189 }
 0xb49   :  { %v3191_v25 = vmul.f32 0.03125, %v3190_v24 }
 0xb4b   :  { %v3192_v26 = vadd.f32 1e-05, %v3191_v25 }
 0xb4d   :  { %3569 = vrsqrt.f32 %v3192_v26 }
 0xb5a   :  { %v3570_v59 = vpop.eup %3569 }
 0xb5b   :  { %v3194_v27 = vmul.f32 %v3570_v59, %v3186_v22 }
 0xb5d   :  { %v3195_v28 = vmul.f32 %v3252_v14, %v3194_v27 }
 0xb5f   :  { %v3196_v31 = vadd.f32 %v3253_v19, %v3195_v28 }
 0xb61   :  { %3282 = vst.msk [vmem:[%s4177_s9 + $0x8] sm:$0xff] %vm59_vm0, %v3196_v31 }
 0xb62   :  { %3592 = dma.done.wait [#allocation3], 1024  }
 0xb63   :  { %3593 = vsyncadd [#allocation3], 4294966272 }
 0xb64   :  { %3218 = vsyncpa [#allocation3], 1 }

</bundles_post_ra>
